<compile_context>
chip_gen: v7x
topology: tpu7x:2x2x1
jax: 0.10.0
libtpu: 0.0.40
codegen_flags: <defaults>
</compile_context>

<pallas_src>
import functools
import math

import jax
import jax.numpy as jnp
from jax.experimental import pallas as pl
from jax.experimental.pallas import tpu as pltpu


def _rup(x, m):
    return ((x + m - 1) // m) * m


def _cdiv(a, b):
    return -(-a // b)


def _pad2d(x, mp, np_, value=0.0):
    m, n = x.shape
    return jnp.pad(x, ((0, mp - m), (0, np_ - n)), constant_values=value)


def _choose_tm(m):
    """M tile: big mem-bound tiles, but >=2 tiles when there is enough work so
    the 'parallel' M axis can feed both v7x TensorCores; derive the tile from
    cdiv(m, n_tiles) so a tail tile is never almost-empty."""
    if m <= 256:
        return _rup(m, 16)
    n_tiles = max(2, _cdiv(m, 512))
    return _rup(_cdiv(m, n_tiles), 16)


# ----------------------------- Pallas kernels ------------------------------

def _matmul_affine_kernel(a_ref, b_ref, sb_ref, o_ref, acc_ref, *,
                          relu, relu_cols):
    """out = [relu]((A @ B) * scale + bias).  K tiled on grid axis 1.

    relu_cols=None -> (no) relu on all columns; int -> relu only on columns
    < relu_cols (used when a no-relu shortcut conv shares the same matmul)."""
    @pl.when(pl.program_id(1) == 0)
    def _():
        acc_ref[...] = jnp.zeros_like(acc_ref)

    acc_ref[...] += jnp.dot(a_ref[...], b_ref[...],
                            preferred_element_type=jnp.float32)

    @pl.when(pl.program_id(1) == pl.num_programs(1) - 1)
    def _():
        sb = sb_ref[...]                       # (2, N): row0 scale, row1 bias
        y = acc_ref[...] * sb[0:1, :] + sb[1:2, :]
        if relu:
            if relu_cols is None:
                y = jnp.maximum(y, 0.0)
            else:
                col = jax.lax.broadcasted_iota(jnp.int32, y.shape, 1)
                y = jnp.where(col < relu_cols, jnp.maximum(y, 0.0), y)
        o_ref[...] = y.astype(o_ref.dtype)


def _matmul_residual_kernel(a_ref, b_ref, sb_ref, sc_ref, o_ref, acc_ref, *,
                            step):
    """out = relu(shortcut + step * ((A @ B) * scale + bias)) -- block tail."""
    @pl.when(pl.program_id(1) == 0)
    def _():
        acc_ref[...] = jnp.zeros_like(acc_ref)

    acc_ref[...] += jnp.dot(a_ref[...], b_ref[...],
                            preferred_element_type=jnp.float32)

    @pl.when(pl.program_id(1) == pl.num_programs(1) - 1)
    def _():
        sb = sb_ref[...]
        y = acc_ref[...] * sb[0:1, :] + sb[1:2, :]
        res = sc_ref[...].astype(jnp.float32) + step * y
        o_ref[...] = jnp.maximum(res, 0.0).astype(o_ref.dtype)


def _window_max_kernel(p_ref, o_ref):
    # p_ref: (KK, tm, cp) -> max over the KK pooling taps.
    o_ref[...] = jnp.max(p_ref[...], axis=0)


def _pool_fc_softmax_kernel(x_ref, w_ref, b_ref, logits_ref, probas_ref, *,
                            inv_hw, num_classes):
    """Fused: global-avg-pool -> FC (+bias) -> exact softmax."""
    feat = jnp.sum(x_ref[...].astype(jnp.float32), axis=1) * inv_hw   # (n, Cp)
    y = jnp.dot(feat, w_ref[...],
                preferred_element_type=jnp.float32) + b_ref[...]
    logits_ref[...] = y
    col = jax.lax.broadcasted_iota(jnp.int32, y.shape, 1)
    ym = jnp.where(col < num_classes, y, -jnp.inf)        # mask lane padding
    m = jnp.max(ym, axis=-1, keepdims=True)
    e = jnp.exp(ym - m)
    s = jnp.sum(e, axis=-1, keepdims=True)
    probas_ref[...] = e / s


# --------------------------- Pallas wrappers --------------------------------

def fused_matmul(a, b, scale, bias, *, relu=False, relu_cols=None,
                 shortcut=None, step=None, out_dtype=jnp.bfloat16):
    """bf16 MXU matmul with a fused BN-affine / ReLU / residual-step epilogue.

    The A operand (and the shortcut slab) are marked for XLA input fusion so
    the im2col stack / pad producers are not materialized in HBM."""
    m, k = a.shape
    _, n = b.shape
    np_ = _rup(n, 128)
    tm = _choose_tm(m)
    mp = _rup(m, tm)
    kp = _rup(k, 128)
    tk = kp if kp <= 1024 else 512      # this model: K <= 640 -> single K step
    kp = _rup(kp, tk)
    nk = kp // tk

    a_p = _pad2d(a.astype(jnp.bfloat16), mp, kp)
    b_p = _pad2d(b.astype(jnp.bfloat16), kp, np_)
    sb = jnp.stack([jnp.pad(scale.astype(jnp.float32), (0, np_ - n)),
                    jnp.pad(bias.astype(jnp.float32), (0, np_ - n))], axis=0)

    in_specs = [pl.BlockSpec((tm, tk), lambda i, kk: (i, kk)),
                pl.BlockSpec((tk, np_), lambda i, kk: (kk, 0)),
                pl.BlockSpec((2, np_), lambda i, kk: (0, 0))]
    args = [a_p, b_p, sb]
    allow_fusion = [True, False, False]

    if shortcut is None:
        kernel = functools.partial(_matmul_affine_kernel, relu=relu,
                                   relu_cols=relu_cols)
    else:
        sc_p = _pad2d(shortcut.astype(jnp.bfloat16), mp, np_)
        in_specs.append(pl.BlockSpec((tm, np_), lambda i, kk: (i, 0)))
        args.append(sc_p)
        allow_fusion.append(True)
        kernel = functools.partial(_matmul_residual_kernel, step=float(step))

    out = pl.pallas_call(
        kernel,
        out_shape=jax.ShapeDtypeStruct((mp, np_), out_dtype),
        grid=(mp // tm, nk),
        in_specs=in_specs,
        out_specs=pl.BlockSpec((tm, np_), lambda i, kk: (i, 0)),
        scratch_shapes=[pltpu.VMEM((tm, np_), jnp.float32)],
        compiler_params=pltpu.CompilerParams(
            dimension_semantics=("parallel", "arbitrary"),
            allow_input_fusion=allow_fusion),
    )(*args)
    return out[:m, :n]


def pallas_window_max(patches):
    """patches: (KK, M, C) -> (M, C) max over KK; M-tiled & pipelined.
    The tap-stack producer is marked for input fusion (no 9x HBM slab)."""
    kk, m, c = patches.shape
    cp = _rup(c, 128)
    tm = 512 if m >= 512 else _rup(m, 16)
    mp = _rup(m, tm)
    p = jnp.pad(patches, ((0, 0), (0, mp - m), (0, cp - c)))
    out = pl.pallas_call(
        _window_max_kernel,
        out_shape=jax.ShapeDtypeStruct((mp, cp), patches.dtype),
        grid=(mp // tm,),
        in_specs=[pl.BlockSpec((kk, tm, cp), lambda i: (0, i, 0))],
        out_specs=pl.BlockSpec((tm, cp), lambda i: (i, 0)),
        compiler_params=pltpu.CompilerParams(
            dimension_semantics=("parallel",),
            allow_input_fusion=[True]),
    )(p)
    return out[:m, :c]


def pallas_pool_fc_softmax(x3d, fc_w, fc_b):
    """(N, HW, C) bf16 -> global-avg-pool -> FC -> softmax, one kernel."""
    n, hw, c = x3d.shape
    num_classes = fc_w.shape[1]
    n_p = _rup(n, 8)
    cp = _rup(c, 128)
    np_ = _rup(num_classes, 128)
    x_p = jnp.pad(x3d, ((0, n_p - n), (0, 0), (0, cp - c)))
    w_p = _pad2d(fc_w.astype(jnp.float32), cp, np_)
    b_p = jnp.pad(fc_b.astype(jnp.float32),
                  (0, np_ - num_classes)).reshape(1, np_)
    logits, probas = pl.pallas_call(
        functools.partial(_pool_fc_softmax_kernel, inv_hw=1.0 / hw,
                          num_classes=num_classes),
        out_shape=(jax.ShapeDtypeStruct((n_p, np_), jnp.float32),
                   jax.ShapeDtypeStruct((n_p, np_), jnp.float32)),
        grid=(1,),
        in_specs=[pl.BlockSpec((n_p, hw, cp), lambda i: (0, 0, 0)),
                  pl.BlockSpec((cp, np_), lambda i: (0, 0)),
                  pl.BlockSpec((1, np_), lambda i: (0, 0))],
        out_specs=(pl.BlockSpec((n_p, np_), lambda i: (0, 0)),
                   pl.BlockSpec((n_p, np_), lambda i: (0, 0))),
    )(x_p, w_p, b_p)
    return logits[:n, :num_classes], probas[:n, :num_classes]


# --------------------------- plain-JAX glue ---------------------------------

def _im2col_cols(x, kh, kw, stride, pad, pad_value):
    n, h, w, c = x.shape
    if pad > 0:
        x = jnp.pad(x, ((0, 0), (pad, pad), (pad, pad), (0, 0)),
                    constant_values=pad_value)
    hp, wp = h + 2 * pad, w + 2 * pad
    ho = (hp - kh) // stride + 1
    wo = (wp - kw) // stride + 1
    cols = []
    for i in range(kh):
        for j in range(kw):
            cols.append(x[:, i:i + (ho - 1) * stride + 1:stride,
                             j:j + (wo - 1) * stride + 1:stride, :])
    return cols, (n, ho, wo)


def conv_bn_act(x, w_hwio, bn, stride, pad, relu):
    """Conv (im2col + MXU) with BN affine and optional ReLU in the epilogue."""
    scale, bias = bn
    kh, kw, cin, cout = w_hwio.shape
    w2d = w_hwio.reshape(kh * kw * cin, cout)
    cols, (n, ho, wo) = _im2col_cols(x, kh, kw, stride, pad, 0.0)
    a = jnp.stack(cols, axis=3).reshape(n * ho * wo, kh * kw * cin)
    y = fused_matmul(a, w2d, scale, bias, relu=relu)
    return y.reshape(n, ho, wo, cout)


def conv1_shortcut_fused(x, w1, bn1, w_sc, bn_sc, stride):
    """conv1 (3x3, stride s, pad 1) + BN + ReLU *and* the 1x1-stride-s shortcut
    conv + BN of a shape-changing block, computed by ONE matmul.

    The 1x1 shortcut is exactly the centre tap of the 3x3 im2col, so its
    weights are zero-embedded there and concatenated along N; the N lanes used
    would otherwise have been 128-wide padding.  ReLU is lane-masked so only
    the conv1 half is rectified."""
    s1, b1 = bn1
    s2, b2 = bn_sc
    kh, kw, cin, planes = w1.shape                       # 3, 3, cin, planes
    w1_2d = w1.reshape(kh * kw * cin, planes)
    center = (kh // 2) * kw + (kw // 2)                  # tap index 4 for 3x3
    w_sc_exp = jnp.zeros((kh * kw * cin, planes), w_sc.dtype)
    w_sc_exp = w_sc_exp.at[center * cin:(center + 1) * cin, :].set(
        w_sc.reshape(cin, planes))
    w_cat = jnp.concatenate([w1_2d, w_sc_exp], axis=1)   # (9*cin, 2*planes)
    scale = jnp.concatenate([s1, s2])
    bias = jnp.concatenate([b1, b2])

    cols, (n, ho, wo) = _im2col_cols(x, kh, kw, stride, 1, 0.0)
    a = jnp.stack(cols, axis=3).reshape(n * ho * wo, kh * kw * cin)
    y = fused_matmul(a, w_cat, scale, bias, relu=True, relu_cols=planes)
    out1 = y[:, :planes].reshape(n, ho, wo, planes)
    sc = y[:, planes:2 * planes].reshape(n, ho, wo, planes)
    return out1, sc


def conv_bn_residual(x, w_hwio, bn, shortcut, step):
    """conv2 + BN affine + learnable-step residual add + ReLU, all fused."""
    scale, bias = bn
    kh, kw, cin, cout = w_hwio.shape
    w2d = w_hwio.reshape(kh * kw * cin, cout)
    cols, (n, ho, wo) = _im2col_cols(x, kh, kw, 1, 1, 0.0)
    a = jnp.stack(cols, axis=3).reshape(n * ho * wo, kh * kw * cin)
    sc2d = shortcut.reshape(n * ho * wo, cout)
    y = fused_matmul(a, w2d, scale, bias, shortcut=sc2d, step=step)
    return y.reshape(n, ho, wo, cout)


def maxpool_3x3_s2_p1(x):
    c = x.shape[-1]
    cols, (n, ho, wo) = _im2col_cols(x, 3, 3, 2, 1, -jnp.inf)
    patches = jnp.stack(cols, axis=0).reshape(9, n * ho * wo, c)
    y = pallas_window_max(patches)
    return y.reshape(n, ho, wo, c)


def block_forward(x, p):
    if 'sc_w' in p:
        out, sc = conv1_shortcut_fused(x, p['conv1_w'], p['bn1'],
                                       p['sc_w'], p['sc_bn'], p['stride'])
    else:
        out = conv_bn_act(x, p['conv1_w'], p['bn1'], p['stride'], 1, relu=True)
        sc = x
    # TODO(synk): conv1 -> conv2 (+residual) of a BasicBlock could be fused
    # into one pallas_call via pltpu.emit_pipeline (keep the intermediate in
    # VMEM) to cut launch overhead further at these tiny shapes.
    return conv_bn_residual(out, p['conv2_w'], p['bn2'], sc, p['step'])


def resnet_wd_forward(x_nchw, params):
    # NCHW -> NHWC, bf16 activations end-to-end (f32 accumulation in-kernel).
    x = jnp.transpose(x_nchw, (0, 2, 3, 1)).astype(jnp.bfloat16)
    out = conv_bn_act(x, params['conv1_w'], params['bn1'], 1, 1, relu=True)
    out = maxpool_3x3_s2_p1(out)
    for layer in params['layers']:
        for blk in layer:
            out = block_forward(out, blk)
    n, h, w, c = out.shape
    # F.avg_pool2d(out, out.size()[3]) with square maps == global average.
    return pallas_pool_fc_softmax(out.reshape(n, h * w, c),
                                  params['fc_w'], params['fc_b'])


# ------------------------- deterministic params ------------------------------

def _conv_init(key, kh, kw, cin, cout):
    std = math.sqrt(2.0 / (kh * kw * cin))
    return std * jax.random.normal(key, (kh, kw, cin, cout), dtype=jnp.float32)


def _bn_init(key, c):
    k1, k2, k3, k4 = jax.random.split(key, 4)
    gamma = 1.0 + 0.1 * jax.random.normal(k1, (c,), dtype=jnp.float32)
    beta = 0.1 * jax.random.normal(k2, (c,), dtype=jnp.float32)
    mean = 0.1 * jax.random.normal(k3, (c,), dtype=jnp.float32)
    var = 0.5 + jnp.abs(jax.random.normal(k4, (c,), dtype=jnp.float32))
    scale = gamma / jnp.sqrt(var + 1e-5)
    bias = beta - mean * scale
    return scale, bias


def _make_block_params(key, in_planes, planes, step, stride):
    keys = jax.random.split(key, 6)
    p = {
        'stride': stride,
        'step': float(step),
        'conv1_w': _conv_init(keys[0], 3, 3, in_planes, planes),
        'bn1': _bn_init(keys[1], planes),
        'conv2_w': _conv_init(keys[2], 3, 3, planes, planes),
        'bn2': _bn_init(keys[3], planes),
    }
    if stride != 1 or in_planes != planes:  # BasicBlock expansion = 1
        p['sc_w'] = _conv_init(keys[4], 1, 1, in_planes, planes)
        p['sc_bn'] = _bn_init(keys[5], planes)
    return p


def make_resnet_wd_params(key, num_blocks, step_size_2d_list, p_drop,
                          num_classes=10):
    up = math.ceil
    in_planes = up(64 * p_drop)
    keys = jax.random.split(key, 8)
    params = {'conv1_w': _conv_init(keys[0], 3, 3, 3, in_planes),
              'bn1': _bn_init(keys[1], in_planes),
              'layers': []}
    widths = [up(64 * p_drop), up(128 * p_drop), up(256 * p_drop),
              up(512 * p_drop)]
    strides0 = [1, 2, 2, 2]
    blk_keys = jax.random.split(keys[2], sum(num_blocks))
    li = 0
    for layer_i in range(4):
        planes = widths[layer_i]
        strides = [strides0[layer_i]] + [1] * (num_blocks[layer_i] - 1)
        blocks = []
        for bi, s in enumerate(strides):
            blocks.append(_make_block_params(blk_keys[li], in_planes, planes,
                                             step_size_2d_list[layer_i][bi], s))
            in_planes = planes
            li += 1
        params['layers'].append(blocks)
    params['fc_w'] = 0.1 * jax.random.normal(
        keys[3], (in_planes, num_classes), dtype=jnp.float32)
    params['fc_b'] = 0.1 * jax.random.normal(
        keys[4], (num_classes,), dtype=jnp.float32)
    return params


if __name__ == "__main__":
    key = jax.random.PRNGKey(0)
    kparam, kx = jax.random.split(key)
    p_drop = 0.125                      # channels: 8, 16, 32, 64
    num_blocks = (1, 1, 1, 1)
    step_list = ((0.5,), (0.6,), (0.7,), (0.8,))
    params = make_resnet_wd_params(kparam, num_blocks, step_list, p_drop,
                                   num_classes=10)
    x = jax.random.normal(kx, (2, 3, 16, 16), dtype=jnp.float32)  # NCHW input

    fwd = jax.jit(lambda xin: resnet_wd_forward(xin, params))
    logits, probas = jax.block_until_ready(fwd(x))

    assert logits.shape == (2, 10) and probas.shape == (2, 10)
    assert bool(jnp.all(jnp.isfinite(logits)))
    assert bool(jnp.all(jnp.isfinite(probas)))
    assert bool(jnp.allclose(jnp.sum(probas, axis=1), 1.0, atol=1e-3))
    print("KERNEL_OK")
</pallas_src>

<mosaic_0001>
module attributes {stable_mosaic.version = 11 : i64} {
  func.func @_matmul_affine_kernel(%arg0: i32, %arg1: i32, %arg2: memref<256x128xbf16, #tpu.memory_space<vmem>>, %arg3: memref<128x128xbf16, #tpu.memory_space<vmem>>, %arg4: memref<2x128xf32, #tpu.memory_space<vmem>>, %arg5: memref<256x128xbf16, #tpu.memory_space<vmem>>, %arg6: memref<256x128xf32, #tpu.memory_space<vmem>>) attributes {dimension_semantics = [#tpu.dimension_semantics<parallel>, #tpu.dimension_semantics<arbitrary>], iteration_bounds = array<i64: 2, 1>, scalar_prefetch = 0 : i64, scratch_operands = 1 : i64, tpu.core_type = #tpu.core_type<tc>, window_params = [{transform_indices = @transform_0, window_bounds = array<i64: 256, 128>}, {transform_indices = @transform_1, window_bounds = array<i64: 128, 128>}, {pipeline_mode = #tpu.pipeline_mode<synchronous>, transform_indices = @transform_2, window_bounds = array<i64: 2, 128>}, {transform_indices = @transform_3, window_bounds = array<i64: 256, 128>}]} {
    %c0_i32 = arith.constant 0 : i32
    %0 = arith.cmpi eq, %arg1, %c0_i32 : i32
    %1 = arith.extui %0 : i1 to i32
    %c0_i32_0 = arith.constant 0 : i32
    %2 = arith.cmpi ne, %1, %c0_i32_0 : i32
    scf.if %2 {
      %cst_10 = arith.constant 0.000000e+00 : f32
      %12 = vector.broadcast %cst_10 : f32 to vector<256x128xf32>
      %c0_11 = arith.constant 0 : index
      %c0_12 = arith.constant 0 : index
      %13 = vector.load %arg6[%c0_11, %c0_12] : memref<256x128xf32, #tpu.memory_space<vmem>>, vector<256x128xf32>
      tpu.vector_store %arg6[%c0_11, %c0_12], %12 {strides = array<i32>} : memref<256x128xf32, #tpu.memory_space<vmem>>, vector<256x128xf32>,
    } else {
    }
    %c0 = arith.constant 0 : index
    %c0_1 = arith.constant 0 : index
    %3 = vector.load %arg6[%c0, %c0_1] : memref<256x128xf32, #tpu.memory_space<vmem>>, vector<256x128xf32>
    %c0_2 = arith.constant 0 : index
    %c0_3 = arith.constant 0 : index
    %4 = vector.load %arg2[%c0_2, %c0_3] : memref<256x128xbf16, #tpu.memory_space<vmem>>, vector<256x128xbf16>
    %c0_4 = arith.constant 0 : index
    %c0_5 = arith.constant 0 : index
    %5 = vector.load %arg3[%c0_4, %c0_5] : memref<128x128xbf16, #tpu.memory_space<vmem>>, vector<128x128xbf16>
    %cst = arith.constant dense<0.000000e+00> : vector<256x128xf32>
    %6 = tpu.matmul %4, %5, %cst {dimension_numbers = #tpu.dot_dimension_numbers<[1], [0], [0], [1], [0, 0, 1, 1], [], []>} : vector<256x128xbf16>, vector<128x128xbf16>, vector<256x128xf32> -> vector<256x128xf32>
    %7 = arith.addf %3, %6 : vector<256x128xf32>
    %c0_6 = arith.constant 0 : index
    %c0_7 = arith.constant 0 : index
    %8 = vector.load %arg6[%c0_6, %c0_7] : memref<256x128xf32, #tpu.memory_space<vmem>>, vector<256x128xf32>
    tpu.vector_store %arg6[%c0_6, %c0_7], %7 {strides = array<i32>} : memref<256x128xf32, #tpu.memory_space<vmem>>, vector<256x128xf32>,
    %c0_i32_8 = arith.constant 0 : i32
    %9 = arith.cmpi eq, %arg1, %c0_i32_8 : i32
    %10 = arith.extui %9 : i1 to i32
    %c0_i32_9 = arith.constant 0 : i32
    %11 = arith.cmpi ne, %10, %c0_i32_9 : i32
    scf.if %11 {
      %c0_10 = arith.constant 0 : index
      %c0_11 = arith.constant 0 : index
      %12 = vector.load %arg4[%c0_10, %c0_11] : memref<2x128xf32, #tpu.memory_space<vmem>>, vector<2x128xf32>
      %c0_12 = arith.constant 0 : index
      %c0_13 = arith.constant 0 : index
      %13 = vector.load %arg6[%c0_12, %c0_13] : memref<256x128xf32, #tpu.memory_space<vmem>>, vector<256x128xf32>
      %14 = vector.extract_strided_slice %12 {offsets = [0, 0], sizes = [1, 128], strides = [1, 1]} : vector<2x128xf32> to vector<1x128xf32>
      %15 = vector.broadcast %14 : vector<1x128xf32> to vector<256x128xf32>
      %16 = arith.mulf %13, %15 : vector<256x128xf32>
      %17 = vector.extract_strided_slice %12 {offsets = [1, 0], sizes = [1, 128], strides = [1, 1]} : vector<2x128xf32> to vector<1x128xf32>
      %18 = vector.broadcast %17 : vector<1x128xf32> to vector<256x128xf32>
      %19 = arith.addf %16, %18 : vector<256x128xf32>
      %cst_14 = arith.constant 0.000000e+00 : f32
      %20 = vector.broadcast %cst_14 : f32 to vector<256x128xf32>
      %21 = arith.maximumf %19, %20 : vector<256x128xf32>
      %22 = arith.truncf %21 : vector<256x128xf32> to vector<256x128xbf16>
      %c0_15 = arith.constant 0 : index
      %c0_16 = arith.constant 0 : index
      %23 = vector.load %arg5[%c0_15, %c0_16] : memref<256x128xbf16, #tpu.memory_space<vmem>>, vector<256x128xbf16>
      tpu.vector_store %arg5[%c0_15, %c0_16], %22 {strides = array<i32>} : memref<256x128xbf16, #tpu.memory_space<vmem>>, vector<256x128xbf16>,
    } else {
    }
    return
  }
  func.func @transform_0(%arg0: i32, %arg1: i32) -> (i32, i32) {
    %c0_i32 = arith.constant 0 : i32
    return %arg0, %arg1 : i32, i32
  }
  func.func @transform_1(%arg0: i32, %arg1: i32) -> (i32, i32) {
    %c0_i32 = arith.constant 0 : i32
    %c0_i32_0 = arith.constant 0 : i32
    return %arg1, %c0_i32 : i32, i32
  }
  func.func @transform_2(%arg0: i32, %arg1: i32) -> (i32, i32) {
    %c0_i32 = arith.constant 0 : i32
    %c0_i32_0 = arith.constant 0 : i32
    %c0_i32_1 = arith.constant 0 : i32
    return %c0_i32, %c0_i32_0 : i32, i32
  }
  func.func @transform_3(%arg0: i32, %arg1: i32) -> (i32, i32) {
    %c0_i32 = arith.constant 0 : i32
    %c0_i32_0 = arith.constant 0 : i32
    return %arg0, %c0_i32 : i32, i32
  }
}

module attributes {stable_mosaic.version = 11 : i64} {
  func.func @_window_max_kernel(%arg0: i32, %arg1: memref<9x128x128xbf16, #tpu.memory_space<vmem>>, %arg2: memref<128x128xbf16, #tpu.memory_space<vmem>>) attributes {dimension_semantics = [#tpu.dimension_semantics<parallel>], iteration_bounds = array<i64: 1>, scalar_prefetch = 0 : i64, scratch_operands = 0 : i64, tpu.core_type = #tpu.core_type<tc>, window_params = [{transform_indices = @transform_0, window_bounds = array<i64: 9, 128, 128>}, {transform_indices = @transform_1, window_bounds = array<i64: 128, 128>}]} {
    %c0 = arith.constant 0 : index
    %c0_0 = arith.constant 0 : index
    %c0_1 = arith.constant 0 : index
    %0 = vector.load %arg1[%c0, %c0_0, %c0_1] : memref<9x128x128xbf16, #tpu.memory_space<vmem>>, vector<9x128x128xbf16>
    %cst = arith.constant dense<0xFF80> : vector<128x128xbf16>
    %1 = vector.multi_reduction <maximumf>, %0, %cst [0] : vector<9x128x128xbf16> to vector<128x128xbf16>
    %c0_2 = arith.constant 0 : index
    %c0_3 = arith.constant 0 : index
    %2 = vector.load %arg2[%c0_2, %c0_3] : memref<128x128xbf16, #tpu.memory_space<vmem>>, vector<128x128xbf16>
    tpu.vector_store %arg2[%c0_2, %c0_3], %1 {strides = array<i32>} : memref<128x128xbf16, #tpu.memory_space<vmem>>, vector<128x128xbf16>,
    return
  }
  func.func @transform_0(%arg0: i32) -> (i32, i32, i32) {
    %c0_i32 = arith.constant 0 : i32
    %c0_i32_0 = arith.constant 0 : i32
    %c0_i32_1 = arith.constant 0 : i32
    return %c0_i32, %arg0, %c0_i32_0 : i32, i32, i32
  }
  func.func @transform_1(%arg0: i32) -> (i32, i32) {
    %c0_i32 = arith.constant 0 : i32
    %c0_i32_0 = arith.constant 0 : i32
    return %arg0, %c0_i32 : i32, i32
  }
}

module attributes {stable_mosaic.version = 11 : i64} {
  func.func @_matmul_affine_kernel(%arg0: i32, %arg1: i32, %arg2: memref<128x128xbf16, #tpu.memory_space<vmem>>, %arg3: memref<128x128xbf16, #tpu.memory_space<vmem>>, %arg4: memref<2x128xf32, #tpu.memory_space<vmem>>, %arg5: memref<128x128xbf16, #tpu.memory_space<vmem>>, %arg6: memref<128x128xf32, #tpu.memory_space<vmem>>) attributes {dimension_semantics = [#tpu.dimension_semantics<parallel>, #tpu.dimension_semantics<arbitrary>], iteration_bounds = array<i64: 1, 1>, scalar_prefetch = 0 : i64, scratch_operands = 1 : i64, tpu.core_type = #tpu.core_type<tc>, window_params = [{transform_indices = @transform_0, window_bounds = array<i64: 128, 128>}, {transform_indices = @transform_1, window_bounds = array<i64: 128, 128>}, {pipeline_mode = #tpu.pipeline_mode<synchronous>, transform_indices = @transform_2, window_bounds = array<i64: 2, 128>}, {transform_indices = @transform_3, window_bounds = array<i64: 128, 128>}]} {
    %c0_i32 = arith.constant 0 : i32
    %0 = arith.cmpi eq, %arg1, %c0_i32 : i32
    %1 = arith.extui %0 : i1 to i32
    %c0_i32_0 = arith.constant 0 : i32
    %2 = arith.cmpi ne, %1, %c0_i32_0 : i32
    scf.if %2 {
      %cst_10 = arith.constant 0.000000e+00 : f32
      %12 = vector.broadcast %cst_10 : f32 to vector<128x128xf32>
      %c0_11 = arith.constant 0 : index
      %c0_12 = arith.constant 0 : index
      %13 = vector.load %arg6[%c0_11, %c0_12] : memref<128x128xf32, #tpu.memory_space<vmem>>, vector<128x128xf32>
      tpu.vector_store %arg6[%c0_11, %c0_12], %12 {strides = array<i32>} : memref<128x128xf32, #tpu.memory_space<vmem>>, vector<128x128xf32>,
    } else {
    }
    %c0 = arith.constant 0 : index
    %c0_1 = arith.constant 0 : index
    %3 = vector.load %arg6[%c0, %c0_1] : memref<128x128xf32, #tpu.memory_space<vmem>>, vector<128x128xf32>
    %c0_2 = arith.constant 0 : index
    %c0_3 = arith.constant 0 : index
    %4 = vector.load %arg2[%c0_2, %c0_3] : memref<128x128xbf16, #tpu.memory_space<vmem>>, vector<128x128xbf16>
    %c0_4 = arith.constant 0 : index
    %c0_5 = arith.constant 0 : index
    %5 = vector.load %arg3[%c0_4, %c0_5] : memref<128x128xbf16, #tpu.memory_space<vmem>>, vector<128x128xbf16>
    %cst = arith.constant dense<0.000000e+00> : vector<128x128xf32>
    %6 = tpu.matmul %4, %5, %cst {dimension_numbers = #tpu.dot_dimension_numbers<[1], [0], [0], [1], [0, 0, 1, 1], [], []>} : vector<128x128xbf16>, vector<128x128xbf16>, vector<128x128xf32> -> vector<128x128xf32>
    %7 = arith.addf %3, %6 : vector<128x128xf32>
    %c0_6 = arith.constant 0 : index
    %c0_7 = arith.constant 0 : index
    %8 = vector.load %arg6[%c0_6, %c0_7] : memref<128x128xf32, #tpu.memory_space<vmem>>, vector<128x128xf32>
    tpu.vector_store %arg6[%c0_6, %c0_7], %7 {strides = array<i32>} : memref<128x128xf32, #tpu.memory_space<vmem>>, vector<128x128xf32>,
    %c0_i32_8 = arith.constant 0 : i32
    %9 = arith.cmpi eq, %arg1, %c0_i32_8 : i32
    %10 = arith.extui %9 : i1 to i32
    %c0_i32_9 = arith.constant 0 : i32
    %11 = arith.cmpi ne, %10, %c0_i32_9 : i32
    scf.if %11 {
      %c0_10 = arith.constant 0 : index
      %c0_11 = arith.constant 0 : index
      %12 = vector.load %arg4[%c0_10, %c0_11] : memref<2x128xf32, #tpu.memory_space<vmem>>, vector<2x128xf32>
      %c0_12 = arith.constant 0 : index
      %c0_13 = arith.constant 0 : index
      %13 = vector.load %arg6[%c0_12, %c0_13] : memref<128x128xf32, #tpu.memory_space<vmem>>, vector<128x128xf32>
      %14 = vector.extract_strided_slice %12 {offsets = [0, 0], sizes = [1, 128], strides = [1, 1]} : vector<2x128xf32> to vector<1x128xf32>
      %15 = vector.broadcast %14 : vector<1x128xf32> to vector<128x128xf32>
      %16 = arith.mulf %13, %15 : vector<128x128xf32>
      %17 = vector.extract_strided_slice %12 {offsets = [1, 0], sizes = [1, 128], strides = [1, 1]} : vector<2x128xf32> to vector<1x128xf32>
      %18 = vector.broadcast %17 : vector<1x128xf32> to vector<128x128xf32>
      %19 = arith.addf %16, %18 : vector<128x128xf32>
      %cst_14 = arith.constant 0.000000e+00 : f32
      %20 = vector.broadcast %cst_14 : f32 to vector<128x128xf32>
      %21 = arith.maximumf %19, %20 : vector<128x128xf32>
      %22 = arith.truncf %21 : vector<128x128xf32> to vector<128x128xbf16>
      %c0_15 = arith.constant 0 : index
      %c0_16 = arith.constant 0 : index
      %23 = vector.load %arg5[%c0_15, %c0_16] : memref<128x128xbf16, #tpu.memory_space<vmem>>, vector<128x128xbf16>
      tpu.vector_store %arg5[%c0_15, %c0_16], %22 {strides = array<i32>} : memref<128x128xbf16, #tpu.memory_space<vmem>>, vector<128x128xbf16>,
    } else {
    }
    return
  }
  func.func @transform_0(%arg0: i32, %arg1: i32) -> (i32, i32) {
    %c0_i32 = arith.constant 0 : i32
    return %arg0, %arg1 : i32, i32
  }
  func.func @transform_1(%arg0: i32, %arg1: i32) -> (i32, i32) {
    %c0_i32 = arith.constant 0 : i32
    %c0_i32_0 = arith.constant 0 : i32
    return %arg1, %c0_i32 : i32, i32
  }
  func.func @transform_2(%arg0: i32, %arg1: i32) -> (i32, i32) {
    %c0_i32 = arith.constant 0 : i32
    %c0_i32_0 = arith.constant 0 : i32
    %c0_i32_1 = arith.constant 0 : i32
    return %c0_i32, %c0_i32_0 : i32, i32
  }
  func.func @transform_3(%arg0: i32, %arg1: i32) -> (i32, i32) {
    %c0_i32 = arith.constant 0 : i32
    %c0_i32_0 = arith.constant 0 : i32
    return %arg0, %c0_i32 : i32, i32
  }
}

module attributes {stable_mosaic.version = 11 : i64} {
  func.func @_matmul_residual_kernel(%arg0: i32, %arg1: i32, %arg2: memref<128x128xbf16, #tpu.memory_space<vmem>>, %arg3: memref<128x128xbf16, #tpu.memory_space<vmem>>, %arg4: memref<2x128xf32, #tpu.memory_space<vmem>>, %arg5: memref<128x128xbf16, #tpu.memory_space<vmem>>, %arg6: memref<128x128xbf16, #tpu.memory_space<vmem>>, %arg7: memref<128x128xf32, #tpu.memory_space<vmem>>) attributes {dimension_semantics = [#tpu.dimension_semantics<parallel>, #tpu.dimension_semantics<arbitrary>], iteration_bounds = array<i64: 1, 1>, scalar_prefetch = 0 : i64, scratch_operands = 1 : i64, tpu.core_type = #tpu.core_type<tc>, window_params = [{transform_indices = @transform_0, window_bounds = array<i64: 128, 128>}, {transform_indices = @transform_1, window_bounds = array<i64: 128, 128>}, {pipeline_mode = #tpu.pipeline_mode<synchronous>, transform_indices = @transform_2, window_bounds = array<i64: 2, 128>}, {transform_indices = @transform_3, window_bounds = array<i64: 128, 128>}, {transform_indices = @transform_4, window_bounds = array<i64: 128, 128>}]} {
    %c0_i32 = arith.constant 0 : i32
    %0 = arith.cmpi eq, %arg1, %c0_i32 : i32
    %1 = arith.extui %0 : i1 to i32
    %c0_i32_0 = arith.constant 0 : i32
    %2 = arith.cmpi ne, %1, %c0_i32_0 : i32
    scf.if %2 {
      %cst_10 = arith.constant 0.000000e+00 : f32
      %12 = vector.broadcast %cst_10 : f32 to vector<128x128xf32>
      %c0_11 = arith.constant 0 : index
      %c0_12 = arith.constant 0 : index
      %13 = vector.load %arg7[%c0_11, %c0_12] : memref<128x128xf32, #tpu.memory_space<vmem>>, vector<128x128xf32>
      tpu.vector_store %arg7[%c0_11, %c0_12], %12 {strides = array<i32>} : memref<128x128xf32, #tpu.memory_space<vmem>>, vector<128x128xf32>,
    } else {
    }
    %c0 = arith.constant 0 : index
    %c0_1 = arith.constant 0 : index
    %3 = vector.load %arg7[%c0, %c0_1] : memref<128x128xf32, #tpu.memory_space<vmem>>, vector<128x128xf32>
    %c0_2 = arith.constant 0 : index
    %c0_3 = arith.constant 0 : index
    %4 = vector.load %arg2[%c0_2, %c0_3] : memref<128x128xbf16, #tpu.memory_space<vmem>>, vector<128x128xbf16>
    %c0_4 = arith.constant 0 : index
    %c0_5 = arith.constant 0 : index
    %5 = vector.load %arg3[%c0_4, %c0_5] : memref<128x128xbf16, #tpu.memory_space<vmem>>, vector<128x128xbf16>
    %cst = arith.constant dense<0.000000e+00> : vector<128x128xf32>
    %6 = tpu.matmul %4, %5, %cst {dimension_numbers = #tpu.dot_dimension_numbers<[1], [0], [0], [1], [0, 0, 1, 1], [], []>} : vector<128x128xbf16>, vector<128x128xbf16>, vector<128x128xf32> -> vector<128x128xf32>
    %7 = arith.addf %3, %6 : vector<128x128xf32>
    %c0_6 = arith.constant 0 : index
    %c0_7 = arith.constant 0 : index
    %8 = vector.load %arg7[%c0_6, %c0_7] : memref<128x128xf32, #tpu.memory_space<vmem>>, vector<128x128xf32>
    tpu.vector_store %arg7[%c0_6, %c0_7], %7 {strides = array<i32>} : memref<128x128xf32, #tpu.memory_space<vmem>>, vector<128x128xf32>,
    %c0_i32_8 = arith.constant 0 : i32
    %9 = arith.cmpi eq, %arg1, %c0_i32_8 : i32
    %10 = arith.extui %9 : i1 to i32
    %c0_i32_9 = arith.constant 0 : i32
    %11 = arith.cmpi ne, %10, %c0_i32_9 : i32
    scf.if %11 {
      %c0_10 = arith.constant 0 : index
      %c0_11 = arith.constant 0 : index
      %12 = vector.load %arg4[%c0_10, %c0_11] : memref<2x128xf32, #tpu.memory_space<vmem>>, vector<2x128xf32>
      %c0_12 = arith.constant 0 : index
      %c0_13 = arith.constant 0 : index
      %13 = vector.load %arg7[%c0_12, %c0_13] : memref<128x128xf32, #tpu.memory_space<vmem>>, vector<128x128xf32>
      %14 = vector.extract_strided_slice %12 {offsets = [0, 0], sizes = [1, 128], strides = [1, 1]} : vector<2x128xf32> to vector<1x128xf32>
      %15 = vector.broadcast %14 : vector<1x128xf32> to vector<128x128xf32>
      %16 = arith.mulf %13, %15 : vector<128x128xf32>
      %17 = vector.extract_strided_slice %12 {offsets = [1, 0], sizes = [1, 128], strides = [1, 1]} : vector<2x128xf32> to vector<1x128xf32>
      %18 = vector.broadcast %17 : vector<1x128xf32> to vector<128x128xf32>
      %19 = arith.addf %16, %18 : vector<128x128xf32>
      %c0_14 = arith.constant 0 : index
      %c0_15 = arith.constant 0 : index
      %20 = vector.load %arg5[%c0_14, %c0_15] : memref<128x128xbf16, #tpu.memory_space<vmem>>, vector<128x128xbf16>
      %21 = arith.extf %20 : vector<128x128xbf16> to vector<128x128xf32>
      %cst_16 = arith.constant 5.000000e-01 : f32
      %22 = vector.broadcast %cst_16 : f32 to vector<128x128xf32>
      %23 = arith.mulf %22, %19 : vector<128x128xf32>
      %24 = arith.addf %21, %23 : vector<128x128xf32>
      %cst_17 = arith.constant 0.000000e+00 : f32
      %25 = vector.broadcast %cst_17 : f32 to vector<128x128xf32>
      %26 = arith.maximumf %24, %25 : vector<128x128xf32>
      %27 = arith.truncf %26 : vector<128x128xf32> to vector<128x128xbf16>
      %c0_18 = arith.constant 0 : index
      %c0_19 = arith.constant 0 : index
      %28 = vector.load %arg6[%c0_18, %c0_19] : memref<128x128xbf16, #tpu.memory_space<vmem>>, vector<128x128xbf16>
      tpu.vector_store %arg6[%c0_18, %c0_19], %27 {strides = array<i32>} : memref<128x128xbf16, #tpu.memory_space<vmem>>, vector<128x128xbf16>,
    } else {
    }
    return
  }
  func.func @transform_0(%arg0: i32, %arg1: i32) -> (i32, i32) {
    %c0_i32 = arith.constant 0 : i32
    return %arg0, %arg1 : i32, i32
  }
  func.func @transform_1(%arg0: i32, %arg1: i32) -> (i32, i32) {
    %c0_i32 = arith.constant 0 : i32
    %c0_i32_0 = arith.constant 0 : i32
    return %arg1, %c0_i32 : i32, i32
  }
  func.func @transform_2(%arg0: i32, %arg1: i32) -> (i32, i32) {
    %c0_i32 = arith.constant 0 : i32
    %c0_i32_0 = arith.constant 0 : i32
    %c0_i32_1 = arith.constant 0 : i32
    return %c0_i32, %c0_i32_0 : i32, i32
  }
  func.func @transform_3(%arg0: i32, %arg1: i32) -> (i32, i32) {
    %c0_i32 = arith.constant 0 : i32
    %c0_i32_0 = arith.constant 0 : i32
    return %arg0, %c0_i32 : i32, i32
  }
  func.func @transform_4(%arg0: i32, %arg1: i32) -> (i32, i32) {
    %c0_i32 = arith.constant 0 : i32
    %c0_i32_0 = arith.constant 0 : i32
    return %arg0, %c0_i32 : i32, i32
  }
}

module attributes {stable_mosaic.version = 11 : i64} {
  func.func @_matmul_affine_kernel(%arg0: i32, %arg1: i32, %arg2: memref<32x128xbf16, #tpu.memory_space<vmem>>, %arg3: memref<128x128xbf16, #tpu.memory_space<vmem>>, %arg4: memref<2x128xf32, #tpu.memory_space<vmem>>, %arg5: memref<32x128xbf16, #tpu.memory_space<vmem>>, %arg6: memref<32x128xf32, #tpu.memory_space<vmem>>) attributes {dimension_semantics = [#tpu.dimension_semantics<parallel>, #tpu.dimension_semantics<arbitrary>], iteration_bounds = array<i64: 1, 1>, scalar_prefetch = 0 : i64, scratch_operands = 1 : i64, tpu.core_type = #tpu.core_type<tc>, window_params = [{transform_indices = @transform_0, window_bounds = array<i64: 32, 128>}, {transform_indices = @transform_1, window_bounds = array<i64: 128, 128>}, {pipeline_mode = #tpu.pipeline_mode<synchronous>, transform_indices = @transform_2, window_bounds = array<i64: 2, 128>}, {transform_indices = @transform_3, window_bounds = array<i64: 32, 128>}]} {
    %c0_i32 = arith.constant 0 : i32
    %0 = arith.cmpi eq, %arg1, %c0_i32 : i32
    %1 = arith.extui %0 : i1 to i32
    %c0_i32_0 = arith.constant 0 : i32
    %2 = arith.cmpi ne, %1, %c0_i32_0 : i32
    scf.if %2 {
      %cst_10 = arith.constant 0.000000e+00 : f32
      %12 = vector.broadcast %cst_10 : f32 to vector<32x128xf32>
      %c0_11 = arith.constant 0 : index
      %c0_12 = arith.constant 0 : index
      %13 = vector.load %arg6[%c0_11, %c0_12] : memref<32x128xf32, #tpu.memory_space<vmem>>, vector<32x128xf32>
      tpu.vector_store %arg6[%c0_11, %c0_12], %12 {strides = array<i32>} : memref<32x128xf32, #tpu.memory_space<vmem>>, vector<32x128xf32>,
    } else {
    }
    %c0 = arith.constant 0 : index
    %c0_1 = arith.constant 0 : index
    %3 = vector.load %arg6[%c0, %c0_1] : memref<32x128xf32, #tpu.memory_space<vmem>>, vector<32x128xf32>
    %c0_2 = arith.constant 0 : index
    %c0_3 = arith.constant 0 : index
    %4 = vector.load %arg2[%c0_2, %c0_3] : memref<32x128xbf16, #tpu.memory_space<vmem>>, vector<32x128xbf16>
    %c0_4 = arith.constant 0 : index
    %c0_5 = arith.constant 0 : index
    %5 = vector.load %arg3[%c0_4, %c0_5] : memref<128x128xbf16, #tpu.memory_space<vmem>>, vector<128x128xbf16>
    %cst = arith.constant dense<0.000000e+00> : vector<32x128xf32>
    %6 = tpu.matmul %4, %5, %cst {dimension_numbers = #tpu.dot_dimension_numbers<[1], [0], [0], [1], [0, 0, 1, 1], [], []>} : vector<32x128xbf16>, vector<128x128xbf16>, vector<32x128xf32> -> vector<32x128xf32>
    %7 = arith.addf %3, %6 : vector<32x128xf32>
    %c0_6 = arith.constant 0 : index
    %c0_7 = arith.constant 0 : index
    %8 = vector.load %arg6[%c0_6, %c0_7] : memref<32x128xf32, #tpu.memory_space<vmem>>, vector<32x128xf32>
    tpu.vector_store %arg6[%c0_6, %c0_7], %7 {strides = array<i32>} : memref<32x128xf32, #tpu.memory_space<vmem>>, vector<32x128xf32>,
    %c0_i32_8 = arith.constant 0 : i32
    %9 = arith.cmpi eq, %arg1, %c0_i32_8 : i32
    %10 = arith.extui %9 : i1 to i32
    %c0_i32_9 = arith.constant 0 : i32
    %11 = arith.cmpi ne, %10, %c0_i32_9 : i32
    scf.if %11 {
      %c0_10 = arith.constant 0 : index
      %c0_11 = arith.constant 0 : index
      %12 = vector.load %arg4[%c0_10, %c0_11] : memref<2x128xf32, #tpu.memory_space<vmem>>, vector<2x128xf32>
      %c0_12 = arith.constant 0 : index
      %c0_13 = arith.constant 0 : index
      %13 = vector.load %arg6[%c0_12, %c0_13] : memref<32x128xf32, #tpu.memory_space<vmem>>, vector<32x128xf32>
      %14 = vector.extract_strided_slice %12 {offsets = [0, 0], sizes = [1, 128], strides = [1, 1]} : vector<2x128xf32> to vector<1x128xf32>
      %15 = vector.broadcast %14 : vector<1x128xf32> to vector<32x128xf32>
      %16 = arith.mulf %13, %15 : vector<32x128xf32>
      %17 = vector.extract_strided_slice %12 {offsets = [1, 0], sizes = [1, 128], strides = [1, 1]} : vector<2x128xf32> to vector<1x128xf32>
      %18 = vector.broadcast %17 : vector<1x128xf32> to vector<32x128xf32>
      %19 = arith.addf %16, %18 : vector<32x128xf32>
      %20 = tpu.iota {dimensions = array<i32: 1>} : vector<32x128xi32>
      %c16_i32 = arith.constant 16 : i32
      %21 = vector.broadcast %c16_i32 : i32 to vector<32x128xi32>
      %22 = arith.cmpi slt, %20, %21 : vector<32x128xi32>
      %cst_14 = arith.constant 0.000000e+00 : f32
      %23 = vector.broadcast %cst_14 : f32 to vector<32x128xf32>
      %24 = arith.maximumf %19, %23 : vector<32x128xf32>
      %25 = arith.select %22, %24, %19 : vector<32x128xi1>, vector<32x128xf32>
      %26 = arith.truncf %25 : vector<32x128xf32> to vector<32x128xbf16>
      %c0_15 = arith.constant 0 : index
      %c0_16 = arith.constant 0 : index
      %27 = vector.load %arg5[%c0_15, %c0_16] : memref<32x128xbf16, #tpu.memory_space<vmem>>, vector<32x128xbf16>
      tpu.vector_store %arg5[%c0_15, %c0_16], %26 {strides = array<i32>} : memref<32x128xbf16, #tpu.memory_space<vmem>>, vector<32x128xbf16>,
    } else {
    }
    return
  }
  func.func @transform_0(%arg0: i32, %arg1: i32) -> (i32, i32) {
    %c0_i32 = arith.constant 0 : i32
    return %arg0, %arg1 : i32, i32
  }
  func.func @transform_1(%arg0: i32, %arg1: i32) -> (i32, i32) {
    %c0_i32 = arith.constant 0 : i32
    %c0_i32_0 = arith.constant 0 : i32
    return %arg1, %c0_i32 : i32, i32
  }
  func.func @transform_2(%arg0: i32, %arg1: i32) -> (i32, i32) {
    %c0_i32 = arith.constant 0 : i32
    %c0_i32_0 = arith.constant 0 : i32
    %c0_i32_1 = arith.constant 0 : i32
    return %c0_i32, %c0_i32_0 : i32, i32
  }
  func.func @transform_3(%arg0: i32, %arg1: i32) -> (i32, i32) {
    %c0_i32 = arith.constant 0 : i32
    %c0_i32_0 = arith.constant 0 : i32
    return %arg0, %c0_i32 : i32, i32
  }
}

module attributes {stable_mosaic.version = 11 : i64} {
  func.func @_matmul_residual_kernel(%arg0: i32, %arg1: i32, %arg2: memref<32x256xbf16, #tpu.memory_space<vmem>>, %arg3: memref<256x128xbf16, #tpu.memory_space<vmem>>, %arg4: memref<2x128xf32, #tpu.memory_space<vmem>>, %arg5: memref<32x128xbf16, #tpu.memory_space<vmem>>, %arg6: memref<32x128xbf16, #tpu.memory_space<vmem>>, %arg7: memref<32x128xf32, #tpu.memory_space<vmem>>) attributes {dimension_semantics = [#tpu.dimension_semantics<parallel>, #tpu.dimension_semantics<arbitrary>], iteration_bounds = array<i64: 1, 1>, scalar_prefetch = 0 : i64, scratch_operands = 1 : i64, tpu.core_type = #tpu.core_type<tc>, window_params = [{transform_indices = @transform_0, window_bounds = array<i64: 32, 256>}, {transform_indices = @transform_1, window_bounds = array<i64: 256, 128>}, {pipeline_mode = #tpu.pipeline_mode<synchronous>, transform_indices = @transform_2, window_bounds = array<i64: 2, 128>}, {transform_indices = @transform_3, window_bounds = array<i64: 32, 128>}, {transform_indices = @transform_4, window_bounds = array<i64: 32, 128>}]} {
    %c0_i32 = arith.constant 0 : i32
    %0 = arith.cmpi eq, %arg1, %c0_i32 : i32
    %1 = arith.extui %0 : i1 to i32
    %c0_i32_0 = arith.constant 0 : i32
    %2 = arith.cmpi ne, %1, %c0_i32_0 : i32
    scf.if %2 {
      %cst_10 = arith.constant 0.000000e+00 : f32
      %12 = vector.broadcast %cst_10 : f32 to vector<32x128xf32>
      %c0_11 = arith.constant 0 : index
      %c0_12 = arith.constant 0 : index
      %13 = vector.load %arg7[%c0_11, %c0_12] : memref<32x128xf32, #tpu.memory_space<vmem>>, vector<32x128xf32>
      tpu.vector_store %arg7[%c0_11, %c0_12], %12 {strides = array<i32>} : memref<32x128xf32, #tpu.memory_space<vmem>>, vector<32x128xf32>,
    } else {
    }
    %c0 = arith.constant 0 : index
    %c0_1 = arith.constant 0 : index
    %3 = vector.load %arg7[%c0, %c0_1] : memref<32x128xf32, #tpu.memory_space<vmem>>, vector<32x128xf32>
    %c0_2 = arith.constant 0 : index
    %c0_3 = arith.constant 0 : index
    %4 = vector.load %arg2[%c0_2, %c0_3] : memref<32x256xbf16, #tpu.memory_space<vmem>>, vector<32x256xbf16>
    %c0_4 = arith.constant 0 : index
    %c0_5 = arith.constant 0 : index
    %5 = vector.load %arg3[%c0_4, %c0_5] : memref<256x128xbf16, #tpu.memory_space<vmem>>, vector<256x128xbf16>
    %cst = arith.constant dense<0.000000e+00> : vector<32x128xf32>
    %6 = tpu.matmul %4, %5, %cst {dimension_numbers = #tpu.dot_dimension_numbers<[1], [0], [0], [1], [0, 0, 1, 1], [], []>} : vector<32x256xbf16>, vector<256x128xbf16>, vector<32x128xf32> -> vector<32x128xf32>
    %7 = arith.addf %3, %6 : vector<32x128xf32>
    %c0_6 = arith.constant 0 : index
    %c0_7 = arith.constant 0 : index
    %8 = vector.load %arg7[%c0_6, %c0_7] : memref<32x128xf32, #tpu.memory_space<vmem>>, vector<32x128xf32>
    tpu.vector_store %arg7[%c0_6, %c0_7], %7 {strides = array<i32>} : memref<32x128xf32, #tpu.memory_space<vmem>>, vector<32x128xf32>,
    %c0_i32_8 = arith.constant 0 : i32
    %9 = arith.cmpi eq, %arg1, %c0_i32_8 : i32
    %10 = arith.extui %9 : i1 to i32
    %c0_i32_9 = arith.constant 0 : i32
    %11 = arith.cmpi ne, %10, %c0_i32_9 : i32
    scf.if %11 {
      %c0_10 = arith.constant 0 : index
      %c0_11 = arith.constant 0 : index
      %12 = vector.load %arg4[%c0_10, %c0_11] : memref<2x128xf32, #tpu.memory_space<vmem>>, vector<2x128xf32>
      %c0_12 = arith.constant 0 : index
      %c0_13 = arith.constant 0 : index
      %13 = vector.load %arg7[%c0_12, %c0_13] : memref<32x128xf32, #tpu.memory_space<vmem>>, vector<32x128xf32>
      %14 = vector.extract_strided_slice %12 {offsets = [0, 0], sizes = [1, 128], strides = [1, 1]} : vector<2x128xf32> to vector<1x128xf32>
      %15 = vector.broadcast %14 : vector<1x128xf32> to vector<32x128xf32>
      %16 = arith.mulf %13, %15 : vector<32x128xf32>
      %17 = vector.extract_strided_slice %12 {offsets = [1, 0], sizes = [1, 128], strides = [1, 1]} : vector<2x128xf32> to vector<1x128xf32>
      %18 = vector.broadcast %17 : vector<1x128xf32> to vector<32x128xf32>
      %19 = arith.addf %16, %18 : vector<32x128xf32>
      %c0_14 = arith.constant 0 : index
      %c0_15 = arith.constant 0 : index
      %20 = vector.load %arg5[%c0_14, %c0_15] : memref<32x128xbf16, #tpu.memory_space<vmem>>, vector<32x128xbf16>
      %21 = arith.extf %20 : vector<32x128xbf16> to vector<32x128xf32>
      %cst_16 = arith.constant 6.000000e-01 : f32
      %22 = vector.broadcast %cst_16 : f32 to vector<32x128xf32>
      %23 = arith.mulf %22, %19 : vector<32x128xf32>
      %24 = arith.addf %21, %23 : vector<32x128xf32>
      %cst_17 = arith.constant 0.000000e+00 : f32
      %25 = vector.broadcast %cst_17 : f32 to vector<32x128xf32>
      %26 = arith.maximumf %24, %25 : vector<32x128xf32>
      %27 = arith.truncf %26 : vector<32x128xf32> to vector<32x128xbf16>
      %c0_18 = arith.constant 0 : index
      %c0_19 = arith.constant 0 : index
      %28 = vector.load %arg6[%c0_18, %c0_19] : memref<32x128xbf16, #tpu.memory_space<vmem>>, vector<32x128xbf16>
      tpu.vector_store %arg6[%c0_18, %c0_19], %27 {strides = array<i32>} : memref<32x128xbf16, #tpu.memory_space<vmem>>, vector<32x128xbf16>,
    } else {
    }
    return
  }
  func.func @transform_0(%arg0: i32, %arg1: i32) -> (i32, i32) {
    %c0_i32 = arith.constant 0 : i32
    return %arg0, %arg1 : i32, i32
  }
  func.func @transform_1(%arg0: i32, %arg1: i32) -> (i32, i32) {
    %c0_i32 = arith.constant 0 : i32
    %c0_i32_0 = arith.constant 0 : i32
    return %arg1, %c0_i32 : i32, i32
  }
  func.func @transform_2(%arg0: i32, %arg1: i32) -> (i32, i32) {
    %c0_i32 = arith.constant 0 : i32
    %c0_i32_0 = arith.constant 0 : i32
    %c0_i32_1 = arith.constant 0 : i32
    return %c0_i32, %c0_i32_0 : i32, i32
  }
  func.func @transform_3(%arg0: i32, %arg1: i32) -> (i32, i32) {
    %c0_i32 = arith.constant 0 : i32
    %c0_i32_0 = arith.constant 0 : i32
    return %arg0, %c0_i32 : i32, i32
  }
  func.func @transform_4(%arg0: i32, %arg1: i32) -> (i32, i32) {
    %c0_i32 = arith.constant 0 : i32
    %c0_i32_0 = arith.constant 0 : i32
    return %arg0, %c0_i32 : i32, i32
  }
}

module attributes {stable_mosaic.version = 11 : i64} {
  func.func @_matmul_affine_kernel(%arg0: i32, %arg1: i32, %arg2: memref<16x256xbf16, #tpu.memory_space<vmem>>, %arg3: memref<256x128xbf16, #tpu.memory_space<vmem>>, %arg4: memref<2x128xf32, #tpu.memory_space<vmem>>, %arg5: memref<16x128xbf16, #tpu.memory_space<vmem>>, %arg6: memref<16x128xf32, #tpu.memory_space<vmem>>) attributes {dimension_semantics = [#tpu.dimension_semantics<parallel>, #tpu.dimension_semantics<arbitrary>], iteration_bounds = array<i64: 1, 1>, scalar_prefetch = 0 : i64, scratch_operands = 1 : i64, tpu.core_type = #tpu.core_type<tc>, window_params = [{transform_indices = @transform_0, window_bounds = array<i64: 16, 256>}, {transform_indices = @transform_1, window_bounds = array<i64: 256, 128>}, {pipeline_mode = #tpu.pipeline_mode<synchronous>, transform_indices = @transform_2, window_bounds = array<i64: 2, 128>}, {transform_indices = @transform_3, window_bounds = array<i64: 16, 128>}]} {
    %c0_i32 = arith.constant 0 : i32
    %0 = arith.cmpi eq, %arg1, %c0_i32 : i32
    %1 = arith.extui %0 : i1 to i32
    %c0_i32_0 = arith.constant 0 : i32
    %2 = arith.cmpi ne, %1, %c0_i32_0 : i32
    scf.if %2 {
      %cst_10 = arith.constant 0.000000e+00 : f32
      %12 = vector.broadcast %cst_10 : f32 to vector<16x128xf32>
      %c0_11 = arith.constant 0 : index
      %c0_12 = arith.constant 0 : index
      %13 = vector.load %arg6[%c0_11, %c0_12] : memref<16x128xf32, #tpu.memory_space<vmem>>, vector<16x128xf32>
      tpu.vector_store %arg6[%c0_11, %c0_12], %12 {strides = array<i32>} : memref<16x128xf32, #tpu.memory_space<vmem>>, vector<16x128xf32>,
    } else {
    }
    %c0 = arith.constant 0 : index
    %c0_1 = arith.constant 0 : index
    %3 = vector.load %arg6[%c0, %c0_1] : memref<16x128xf32, #tpu.memory_space<vmem>>, vector<16x128xf32>
    %c0_2 = arith.constant 0 : index
    %c0_3 = arith.constant 0 : index
    %4 = vector.load %arg2[%c0_2, %c0_3] : memref<16x256xbf16, #tpu.memory_space<vmem>>, vector<16x256xbf16>
    %c0_4 = arith.constant 0 : index
    %c0_5 = arith.constant 0 : index
    %5 = vector.load %arg3[%c0_4, %c0_5] : memref<256x128xbf16, #tpu.memory_space<vmem>>, vector<256x128xbf16>
    %cst = arith.constant dense<0.000000e+00> : vector<16x128xf32>
    %6 = tpu.matmul %4, %5, %cst {dimension_numbers = #tpu.dot_dimension_numbers<[1], [0], [0], [1], [0, 0, 1, 1], [], []>} : vector<16x256xbf16>, vector<256x128xbf16>, vector<16x128xf32> -> vector<16x128xf32>
    %7 = arith.addf %3, %6 : vector<16x128xf32>
    %c0_6 = arith.constant 0 : index
    %c0_7 = arith.constant 0 : index
    %8 = vector.load %arg6[%c0_6, %c0_7] : memref<16x128xf32, #tpu.memory_space<vmem>>, vector<16x128xf32>
    tpu.vector_store %arg6[%c0_6, %c0_7], %7 {strides = array<i32>} : memref<16x128xf32, #tpu.memory_space<vmem>>, vector<16x128xf32>,
    %c0_i32_8 = arith.constant 0 : i32
    %9 = arith.cmpi eq, %arg1, %c0_i32_8 : i32
    %10 = arith.extui %9 : i1 to i32
    %c0_i32_9 = arith.constant 0 : i32
    %11 = arith.cmpi ne, %10, %c0_i32_9 : i32
    scf.if %11 {
      %c0_10 = arith.constant 0 : index
      %c0_11 = arith.constant 0 : index
      %12 = vector.load %arg4[%c0_10, %c0_11] : memref<2x128xf32, #tpu.memory_space<vmem>>, vector<2x128xf32>
      %c0_12 = arith.constant 0 : index
      %c0_13 = arith.constant 0 : index
      %13 = vector.load %arg6[%c0_12, %c0_13] : memref<16x128xf32, #tpu.memory_space<vmem>>, vector<16x128xf32>
      %14 = vector.extract_strided_slice %12 {offsets = [0, 0], sizes = [1, 128], strides = [1, 1]} : vector<2x128xf32> to vector<1x128xf32>
      %15 = vector.broadcast %14 : vector<1x128xf32> to vector<16x128xf32>
      %16 = arith.mulf %13, %15 : vector<16x128xf32>
      %17 = vector.extract_strided_slice %12 {offsets = [1, 0], sizes = [1, 128], strides = [1, 1]} : vector<2x128xf32> to vector<1x128xf32>
      %18 = vector.broadcast %17 : vector<1x128xf32> to vector<16x128xf32>
      %19 = arith.addf %16, %18 : vector<16x128xf32>
      %20 = tpu.iota {dimensions = array<i32: 1>} : vector<16x128xi32>
      %c32_i32 = arith.constant 32 : i32
      %21 = vector.broadcast %c32_i32 : i32 to vector<16x128xi32>
      %22 = arith.cmpi slt, %20, %21 : vector<16x128xi32>
      %cst_14 = arith.constant 0.000000e+00 : f32
      %23 = vector.broadcast %cst_14 : f32 to vector<16x128xf32>
      %24 = arith.maximumf %19, %23 : vector<16x128xf32>
      %25 = arith.select %22, %24, %19 : vector<16x128xi1>, vector<16x128xf32>
      %26 = arith.truncf %25 : vector<16x128xf32> to vector<16x128xbf16>
      %c0_15 = arith.constant 0 : index
      %c0_16 = arith.constant 0 : index
      %27 = vector.load %arg5[%c0_15, %c0_16] : memref<16x128xbf16, #tpu.memory_space<vmem>>, vector<16x128xbf16>
      tpu.vector_store %arg5[%c0_15, %c0_16], %26 {strides = array<i32>} : memref<16x128xbf16, #tpu.memory_space<vmem>>, vector<16x128xbf16>,
    } else {
    }
    return
  }
  func.func @transform_0(%arg0: i32, %arg1: i32) -> (i32, i32) {
    %c0_i32 = arith.constant 0 : i32
    return %arg0, %arg1 : i32, i32
  }
  func.func @transform_1(%arg0: i32, %arg1: i32) -> (i32, i32) {
    %c0_i32 = arith.constant 0 : i32
    %c0_i32_0 = arith.constant 0 : i32
    return %arg1, %c0_i32 : i32, i32
  }
  func.func @transform_2(%arg0: i32, %arg1: i32) -> (i32, i32) {
    %c0_i32 = arith.constant 0 : i32
    %c0_i32_0 = arith.constant 0 : i32
    %c0_i32_1 = arith.constant 0 : i32
    return %c0_i32, %c0_i32_0 : i32, i32
  }
  func.func @transform_3(%arg0: i32, %arg1: i32) -> (i32, i32) {
    %c0_i32 = arith.constant 0 : i32
    %c0_i32_0 = arith.constant 0 : i32
    return %arg0, %c0_i32 : i32, i32
  }
}

module attributes {stable_mosaic.version = 11 : i64} {
  func.func @_matmul_residual_kernel(%arg0: i32, %arg1: i32, %arg2: memref<16x384xbf16, #tpu.memory_space<vmem>>, %arg3: memref<384x128xbf16, #tpu.memory_space<vmem>>, %arg4: memref<2x128xf32, #tpu.memory_space<vmem>>, %arg5: memref<16x128xbf16, #tpu.memory_space<vmem>>, %arg6: memref<16x128xbf16, #tpu.memory_space<vmem>>, %arg7: memref<16x128xf32, #tpu.memory_space<vmem>>) attributes {dimension_semantics = [#tpu.dimension_semantics<parallel>, #tpu.dimension_semantics<arbitrary>], iteration_bounds = array<i64: 1, 1>, scalar_prefetch = 0 : i64, scratch_operands = 1 : i64, tpu.core_type = #tpu.core_type<tc>, window_params = [{transform_indices = @transform_0, window_bounds = array<i64: 16, 384>}, {transform_indices = @transform_1, window_bounds = array<i64: 384, 128>}, {pipeline_mode = #tpu.pipeline_mode<synchronous>, transform_indices = @transform_2, window_bounds = array<i64: 2, 128>}, {transform_indices = @transform_3, window_bounds = array<i64: 16, 128>}, {transform_indices = @transform_4, window_bounds = array<i64: 16, 128>}]} {
    %c0_i32 = arith.constant 0 : i32
    %0 = arith.cmpi eq, %arg1, %c0_i32 : i32
    %1 = arith.extui %0 : i1 to i32
    %c0_i32_0 = arith.constant 0 : i32
    %2 = arith.cmpi ne, %1, %c0_i32_0 : i32
    scf.if %2 {
      %cst_10 = arith.constant 0.000000e+00 : f32
      %12 = vector.broadcast %cst_10 : f32 to vector<16x128xf32>
      %c0_11 = arith.constant 0 : index
      %c0_12 = arith.constant 0 : index
      %13 = vector.load %arg7[%c0_11, %c0_12] : memref<16x128xf32, #tpu.memory_space<vmem>>, vector<16x128xf32>
      tpu.vector_store %arg7[%c0_11, %c0_12], %12 {strides = array<i32>} : memref<16x128xf32, #tpu.memory_space<vmem>>, vector<16x128xf32>,
    } else {
    }
    %c0 = arith.constant 0 : index
    %c0_1 = arith.constant 0 : index
    %3 = vector.load %arg7[%c0, %c0_1] : memref<16x128xf32, #tpu.memory_space<vmem>>, vector<16x128xf32>
    %c0_2 = arith.constant 0 : index
    %c0_3 = arith.constant 0 : index
    %4 = vector.load %arg2[%c0_2, %c0_3] : memref<16x384xbf16, #tpu.memory_space<vmem>>, vector<16x384xbf16>
    %c0_4 = arith.constant 0 : index
    %c0_5 = arith.constant 0 : index
    %5 = vector.load %arg3[%c0_4, %c0_5] : memref<384x128xbf16, #tpu.memory_space<vmem>>, vector<384x128xbf16>
    %cst = arith.constant dense<0.000000e+00> : vector<16x128xf32>
    %6 = tpu.matmul %4, %5, %cst {dimension_numbers = #tpu.dot_dimension_numbers<[1], [0], [0], [1], [0, 0, 1, 1], [], []>} : vector<16x384xbf16>, vector<384x128xbf16>, vector<16x128xf32> -> vector<16x128xf32>
    %7 = arith.addf %3, %6 : vector<16x128xf32>
    %c0_6 = arith.constant 0 : index
    %c0_7 = arith.constant 0 : index
    %8 = vector.load %arg7[%c0_6, %c0_7] : memref<16x128xf32, #tpu.memory_space<vmem>>, vector<16x128xf32>
    tpu.vector_store %arg7[%c0_6, %c0_7], %7 {strides = array<i32>} : memref<16x128xf32, #tpu.memory_space<vmem>>, vector<16x128xf32>,
    %c0_i32_8 = arith.constant 0 : i32
    %9 = arith.cmpi eq, %arg1, %c0_i32_8 : i32
    %10 = arith.extui %9 : i1 to i32
    %c0_i32_9 = arith.constant 0 : i32
    %11 = arith.cmpi ne, %10, %c0_i32_9 : i32
    scf.if %11 {
      %c0_10 = arith.constant 0 : index
      %c0_11 = arith.constant 0 : index
      %12 = vector.load %arg4[%c0_10, %c0_11] : memref<2x128xf32, #tpu.memory_space<vmem>>, vector<2x128xf32>
      %c0_12 = arith.constant 0 : index
      %c0_13 = arith.constant 0 : index
      %13 = vector.load %arg7[%c0_12, %c0_13] : memref<16x128xf32, #tpu.memory_space<vmem>>, vector<16x128xf32>
      %14 = vector.extract_strided_slice %12 {offsets = [0, 0], sizes = [1, 128], strides = [1, 1]} : vector<2x128xf32> to vector<1x128xf32>
      %15 = vector.broadcast %14 : vector<1x128xf32> to vector<16x128xf32>
      %16 = arith.mulf %13, %15 : vector<16x128xf32>
      %17 = vector.extract_strided_slice %12 {offsets = [1, 0], sizes = [1, 128], strides = [1, 1]} : vector<2x128xf32> to vector<1x128xf32>
      %18 = vector.broadcast %17 : vector<1x128xf32> to vector<16x128xf32>
      %19 = arith.addf %16, %18 : vector<16x128xf32>
      %c0_14 = arith.constant 0 : index
      %c0_15 = arith.constant 0 : index
      %20 = vector.load %arg5[%c0_14, %c0_15] : memref<16x128xbf16, #tpu.memory_space<vmem>>, vector<16x128xbf16>
      %21 = arith.extf %20 : vector<16x128xbf16> to vector<16x128xf32>
      %cst_16 = arith.constant 0.699999988 : f32
      %22 = vector.broadcast %cst_16 : f32 to vector<16x128xf32>
      %23 = arith.mulf %22, %19 : vector<16x128xf32>
      %24 = arith.addf %21, %23 : vector<16x128xf32>
      %cst_17 = arith.constant 0.000000e+00 : f32
      %25 = vector.broadcast %cst_17 : f32 to vector<16x128xf32>
      %26 = arith.maximumf %24, %25 : vector<16x128xf32>
      %27 = arith.truncf %26 : vector<16x128xf32> to vector<16x128xbf16>
      %c0_18 = arith.constant 0 : index
      %c0_19 = arith.constant 0 : index
      %28 = vector.load %arg6[%c0_18, %c0_19] : memref<16x128xbf16, #tpu.memory_space<vmem>>, vector<16x128xbf16>
      tpu.vector_store %arg6[%c0_18, %c0_19], %27 {strides = array<i32>} : memref<16x128xbf16, #tpu.memory_space<vmem>>, vector<16x128xbf16>,
    } else {
    }
    return
  }
  func.func @transform_0(%arg0: i32, %arg1: i32) -> (i32, i32) {
    %c0_i32 = arith.constant 0 : i32
    return %arg0, %arg1 : i32, i32
  }
  func.func @transform_1(%arg0: i32, %arg1: i32) -> (i32, i32) {
    %c0_i32 = arith.constant 0 : i32
    %c0_i32_0 = arith.constant 0 : i32
    return %arg1, %c0_i32 : i32, i32
  }
  func.func @transform_2(%arg0: i32, %arg1: i32) -> (i32, i32) {
    %c0_i32 = arith.constant 0 : i32
    %c0_i32_0 = arith.constant 0 : i32
    %c0_i32_1 = arith.constant 0 : i32
    return %c0_i32, %c0_i32_0 : i32, i32
  }
  func.func @transform_3(%arg0: i32, %arg1: i32) -> (i32, i32) {
    %c0_i32 = arith.constant 0 : i32
    %c0_i32_0 = arith.constant 0 : i32
    return %arg0, %c0_i32 : i32, i32
  }
  func.func @transform_4(%arg0: i32, %arg1: i32) -> (i32, i32) {
    %c0_i32 = arith.constant 0 : i32
    %c0_i32_0 = arith.constant 0 : i32
    return %arg0, %c0_i32 : i32, i32
  }
}

module attributes {stable_mosaic.version = 11 : i64} {
  func.func @_matmul_affine_kernel(%arg0: i32, %arg1: i32, %arg2: memref<16x384xbf16, #tpu.memory_space<vmem>>, %arg3: memref<384x128xbf16, #tpu.memory_space<vmem>>, %arg4: memref<2x128xf32, #tpu.memory_space<vmem>>, %arg5: memref<16x128xbf16, #tpu.memory_space<vmem>>, %arg6: memref<16x128xf32, #tpu.memory_space<vmem>>) attributes {dimension_semantics = [#tpu.dimension_semantics<parallel>, #tpu.dimension_semantics<arbitrary>], iteration_bounds = array<i64: 1, 1>, scalar_prefetch = 0 : i64, scratch_operands = 1 : i64, tpu.core_type = #tpu.core_type<tc>, window_params = [{transform_indices = @transform_0, window_bounds = array<i64: 16, 384>}, {transform_indices = @transform_1, window_bounds = array<i64: 384, 128>}, {pipeline_mode = #tpu.pipeline_mode<synchronous>, transform_indices = @transform_2, window_bounds = array<i64: 2, 128>}, {transform_indices = @transform_3, window_bounds = array<i64: 16, 128>}]} {
    %c0_i32 = arith.constant 0 : i32
    %0 = arith.cmpi eq, %arg1, %c0_i32 : i32
    %1 = arith.extui %0 : i1 to i32
    %c0_i32_0 = arith.constant 0 : i32
    %2 = arith.cmpi ne, %1, %c0_i32_0 : i32
    scf.if %2 {
      %cst_10 = arith.constant 0.000000e+00 : f32
      %12 = vector.broadcast %cst_10 : f32 to vector<16x128xf32>
      %c0_11 = arith.constant 0 : index
      %c0_12 = arith.constant 0 : index
      %13 = vector.load %arg6[%c0_11, %c0_12] : memref<16x128xf32, #tpu.memory_space<vmem>>, vector<16x128xf32>
      tpu.vector_store %arg6[%c0_11, %c0_12], %12 {strides = array<i32>} : memref<16x128xf32, #tpu.memory_space<vmem>>, vector<16x128xf32>,
    } else {
    }
    %c0 = arith.constant 0 : index
    %c0_1 = arith.constant 0 : index
    %3 = vector.load %arg6[%c0, %c0_1] : memref<16x128xf32, #tpu.memory_space<vmem>>, vector<16x128xf32>
    %c0_2 = arith.constant 0 : index
    %c0_3 = arith.constant 0 : index
    %4 = vector.load %arg2[%c0_2, %c0_3] : memref<16x384xbf16, #tpu.memory_space<vmem>>, vector<16x384xbf16>
    %c0_4 = arith.constant 0 : index
    %c0_5 = arith.constant 0 : index
    %5 = vector.load %arg3[%c0_4, %c0_5] : memref<384x128xbf16, #tpu.memory_space<vmem>>, vector<384x128xbf16>
    %cst = arith.constant dense<0.000000e+00> : vector<16x128xf32>
    %6 = tpu.matmul %4, %5, %cst {dimension_numbers = #tpu.dot_dimension_numbers<[1], [0], [0], [1], [0, 0, 1, 1], [], []>} : vector<16x384xbf16>, vector<384x128xbf16>, vector<16x128xf32> -> vector<16x128xf32>
    %7 = arith.addf %3, %6 : vector<16x128xf32>
    %c0_6 = arith.constant 0 : index
    %c0_7 = arith.constant 0 : index
    %8 = vector.load %arg6[%c0_6, %c0_7] : memref<16x128xf32, #tpu.memory_space<vmem>>, vector<16x128xf32>
    tpu.vector_store %arg6[%c0_6, %c0_7], %7 {strides = array<i32>} : memref<16x128xf32, #tpu.memory_space<vmem>>, vector<16x128xf32>,
    %c0_i32_8 = arith.constant 0 : i32
    %9 = arith.cmpi eq, %arg1, %c0_i32_8 : i32
    %10 = arith.extui %9 : i1 to i32
    %c0_i32_9 = arith.constant 0 : i32
    %11 = arith.cmpi ne, %10, %c0_i32_9 : i32
    scf.if %11 {
      %c0_10 = arith.constant 0 : index
      %c0_11 = arith.constant 0 : index
      %12 = vector.load %arg4[%c0_10, %c0_11] : memref<2x128xf32, #tpu.memory_space<vmem>>, vector<2x128xf32>
      %c0_12 = arith.constant 0 : index
      %c0_13 = arith.constant 0 : index
      %13 = vector.load %arg6[%c0_12, %c0_13] : memref<16x128xf32, #tpu.memory_space<vmem>>, vector<16x128xf32>
      %14 = vector.extract_strided_slice %12 {offsets = [0, 0], sizes = [1, 128], strides = [1, 1]} : vector<2x128xf32> to vector<1x128xf32>
      %15 = vector.broadcast %14 : vector<1x128xf32> to vector<16x128xf32>
      %16 = arith.mulf %13, %15 : vector<16x128xf32>
      %17 = vector.extract_strided_slice %12 {offsets = [1, 0], sizes = [1, 128], strides = [1, 1]} : vector<2x128xf32> to vector<1x128xf32>
      %18 = vector.broadcast %17 : vector<1x128xf32> to vector<16x128xf32>
      %19 = arith.addf %16, %18 : vector<16x128xf32>
      %20 = tpu.iota {dimensions = array<i32: 1>} : vector<16x128xi32>
      %c64_i32 = arith.constant 64 : i32
      %21 = vector.broadcast %c64_i32 : i32 to vector<16x128xi32>
      %22 = arith.cmpi slt, %20, %21 : vector<16x128xi32>
      %cst_14 = arith.constant 0.000000e+00 : f32
      %23 = vector.broadcast %cst_14 : f32 to vector<16x128xf32>
      %24 = arith.maximumf %19, %23 : vector<16x128xf32>
      %25 = arith.select %22, %24, %19 : vector<16x128xi1>, vector<16x128xf32>
      %26 = arith.truncf %25 : vector<16x128xf32> to vector<16x128xbf16>
      %c0_15 = arith.constant 0 : index
      %c0_16 = arith.constant 0 : index
      %27 = vector.load %arg5[%c0_15, %c0_16] : memref<16x128xbf16, #tpu.memory_space<vmem>>, vector<16x128xbf16>
      tpu.vector_store %arg5[%c0_15, %c0_16], %26 {strides = array<i32>} : memref<16x128xbf16, #tpu.memory_space<vmem>>, vector<16x128xbf16>,
    } else {
    }
    return
  }
  func.func @transform_0(%arg0: i32, %arg1: i32) -> (i32, i32) {
    %c0_i32 = arith.constant 0 : i32
    return %arg0, %arg1 : i32, i32
  }
  func.func @transform_1(%arg0: i32, %arg1: i32) -> (i32, i32) {
    %c0_i32 = arith.constant 0 : i32
    %c0_i32_0 = arith.constant 0 : i32
    return %arg1, %c0_i32 : i32, i32
  }
  func.func @transform_2(%arg0: i32, %arg1: i32) -> (i32, i32) {
    %c0_i32 = arith.constant 0 : i32
    %c0_i32_0 = arith.constant 0 : i32
    %c0_i32_1 = arith.constant 0 : i32
    return %c0_i32, %c0_i32_0 : i32, i32
  }
  func.func @transform_3(%arg0: i32, %arg1: i32) -> (i32, i32) {
    %c0_i32 = arith.constant 0 : i32
    %c0_i32_0 = arith.constant 0 : i32
    return %arg0, %c0_i32 : i32, i32
  }
}

module attributes {stable_mosaic.version = 11 : i64} {
  func.func @_matmul_residual_kernel(%arg0: i32, %arg1: i32, %arg2: memref<16x640xbf16, #tpu.memory_space<vmem>>, %arg3: memref<640x128xbf16, #tpu.memory_space<vmem>>, %arg4: memref<2x128xf32, #tpu.memory_space<vmem>>, %arg5: memref<16x128xbf16, #tpu.memory_space<vmem>>, %arg6: memref<16x128xbf16, #tpu.memory_space<vmem>>, %arg7: memref<16x128xf32, #tpu.memory_space<vmem>>) attributes {dimension_semantics = [#tpu.dimension_semantics<parallel>, #tpu.dimension_semantics<arbitrary>], iteration_bounds = array<i64: 1, 1>, scalar_prefetch = 0 : i64, scratch_operands = 1 : i64, tpu.core_type = #tpu.core_type<tc>, window_params = [{transform_indices = @transform_0, window_bounds = array<i64: 16, 640>}, {transform_indices = @transform_1, window_bounds = array<i64: 640, 128>}, {pipeline_mode = #tpu.pipeline_mode<synchronous>, transform_indices = @transform_2, window_bounds = array<i64: 2, 128>}, {transform_indices = @transform_3, window_bounds = array<i64: 16, 128>}, {transform_indices = @transform_4, window_bounds = array<i64: 16, 128>}]} {
    %c0_i32 = arith.constant 0 : i32
    %0 = arith.cmpi eq, %arg1, %c0_i32 : i32
    %1 = arith.extui %0 : i1 to i32
    %c0_i32_0 = arith.constant 0 : i32
    %2 = arith.cmpi ne, %1, %c0_i32_0 : i32
    scf.if %2 {
      %cst_10 = arith.constant 0.000000e+00 : f32
      %12 = vector.broadcast %cst_10 : f32 to vector<16x128xf32>
      %c0_11 = arith.constant 0 : index
      %c0_12 = arith.constant 0 : index
      %13 = vector.load %arg7[%c0_11, %c0_12] : memref<16x128xf32, #tpu.memory_space<vmem>>, vector<16x128xf32>
      tpu.vector_store %arg7[%c0_11, %c0_12], %12 {strides = array<i32>} : memref<16x128xf32, #tpu.memory_space<vmem>>, vector<16x128xf32>,
    } else {
    }
    %c0 = arith.constant 0 : index
    %c0_1 = arith.constant 0 : index
    %3 = vector.load %arg7[%c0, %c0_1] : memref<16x128xf32, #tpu.memory_space<vmem>>, vector<16x128xf32>
    %c0_2 = arith.constant 0 : index
    %c0_3 = arith.constant 0 : index
    %4 = vector.load %arg2[%c0_2, %c0_3] : memref<16x640xbf16, #tpu.memory_space<vmem>>, vector<16x640xbf16>
    %c0_4 = arith.constant 0 : index
    %c0_5 = arith.constant 0 : index
    %5 = vector.load %arg3[%c0_4, %c0_5] : memref<640x128xbf16, #tpu.memory_space<vmem>>, vector<640x128xbf16>
    %cst = arith.constant dense<0.000000e+00> : vector<16x128xf32>
    %6 = tpu.matmul %4, %5, %cst {dimension_numbers = #tpu.dot_dimension_numbers<[1], [0], [0], [1], [0, 0, 1, 1], [], []>} : vector<16x640xbf16>, vector<640x128xbf16>, vector<16x128xf32> -> vector<16x128xf32>
    %7 = arith.addf %3, %6 : vector<16x128xf32>
    %c0_6 = arith.constant 0 : index
    %c0_7 = arith.constant 0 : index
    %8 = vector.load %arg7[%c0_6, %c0_7] : memref<16x128xf32, #tpu.memory_space<vmem>>, vector<16x128xf32>
    tpu.vector_store %arg7[%c0_6, %c0_7], %7 {strides = array<i32>} : memref<16x128xf32, #tpu.memory_space<vmem>>, vector<16x128xf32>,
    %c0_i32_8 = arith.constant 0 : i32
    %9 = arith.cmpi eq, %arg1, %c0_i32_8 : i32
    %10 = arith.extui %9 : i1 to i32
    %c0_i32_9 = arith.constant 0 : i32
    %11 = arith.cmpi ne, %10, %c0_i32_9 : i32
    scf.if %11 {
      %c0_10 = arith.constant 0 : index
      %c0_11 = arith.constant 0 : index
      %12 = vector.load %arg4[%c0_10, %c0_11] : memref<2x128xf32, #tpu.memory_space<vmem>>, vector<2x128xf32>
      %c0_12 = arith.constant 0 : index
      %c0_13 = arith.constant 0 : index
      %13 = vector.load %arg7[%c0_12, %c0_13] : memref<16x128xf32, #tpu.memory_space<vmem>>, vector<16x128xf32>
      %14 = vector.extract_strided_slice %12 {offsets = [0, 0], sizes = [1, 128], strides = [1, 1]} : vector<2x128xf32> to vector<1x128xf32>
      %15 = vector.broadcast %14 : vector<1x128xf32> to vector<16x128xf32>
      %16 = arith.mulf %13, %15 : vector<16x128xf32>
      %17 = vector.extract_strided_slice %12 {offsets = [1, 0], sizes = [1, 128], strides = [1, 1]} : vector<2x128xf32> to vector<1x128xf32>
      %18 = vector.broadcast %17 : vector<1x128xf32> to vector<16x128xf32>
      %19 = arith.addf %16, %18 : vector<16x128xf32>
      %c0_14 = arith.constant 0 : index
      %c0_15 = arith.constant 0 : index
      %20 = vector.load %arg5[%c0_14, %c0_15] : memref<16x128xbf16, #tpu.memory_space<vmem>>, vector<16x128xbf16>
      %21 = arith.extf %20 : vector<16x128xbf16> to vector<16x128xf32>
      %cst_16 = arith.constant 8.000000e-01 : f32
      %22 = vector.broadcast %cst_16 : f32 to vector<16x128xf32>
      %23 = arith.mulf %22, %19 : vector<16x128xf32>
      %24 = arith.addf %21, %23 : vector<16x128xf32>
      %cst_17 = arith.constant 0.000000e+00 : f32
      %25 = vector.broadcast %cst_17 : f32 to vector<16x128xf32>
      %26 = arith.maximumf %24, %25 : vector<16x128xf32>
      %27 = arith.truncf %26 : vector<16x128xf32> to vector<16x128xbf16>
      %c0_18 = arith.constant 0 : index
      %c0_19 = arith.constant 0 : index
      %28 = vector.load %arg6[%c0_18, %c0_19] : memref<16x128xbf16, #tpu.memory_space<vmem>>, vector<16x128xbf16>
      tpu.vector_store %arg6[%c0_18, %c0_19], %27 {strides = array<i32>} : memref<16x128xbf16, #tpu.memory_space<vmem>>, vector<16x128xbf16>,
    } else {
    }
    return
  }
  func.func @transform_0(%arg0: i32, %arg1: i32) -> (i32, i32) {
    %c0_i32 = arith.constant 0 : i32
    return %arg0, %arg1 : i32, i32
  }
  func.func @transform_1(%arg0: i32, %arg1: i32) -> (i32, i32) {
    %c0_i32 = arith.constant 0 : i32
    %c0_i32_0 = arith.constant 0 : i32
    return %arg1, %c0_i32 : i32, i32
  }
  func.func @transform_2(%arg0: i32, %arg1: i32) -> (i32, i32) {
    %c0_i32 = arith.constant 0 : i32
    %c0_i32_0 = arith.constant 0 : i32
    %c0_i32_1 = arith.constant 0 : i32
    return %c0_i32, %c0_i32_0 : i32, i32
  }
  func.func @transform_3(%arg0: i32, %arg1: i32) -> (i32, i32) {
    %c0_i32 = arith.constant 0 : i32
    %c0_i32_0 = arith.constant 0 : i32
    return %arg0, %c0_i32 : i32, i32
  }
  func.func @transform_4(%arg0: i32, %arg1: i32) -> (i32, i32) {
    %c0_i32 = arith.constant 0 : i32
    %c0_i32_0 = arith.constant 0 : i32
    return %arg0, %c0_i32 : i32, i32
  }
}

module attributes {stable_mosaic.version = 11 : i64} {
  func.func @_pool_fc_softmax_kernel(%arg0: i32, %arg1: memref<8x1x128xbf16, #tpu.memory_space<vmem>>, %arg2: memref<128x128xf32, #tpu.memory_space<vmem>>, %arg3: memref<1x128xf32, #tpu.memory_space<vmem>>, %arg4: memref<8x128xf32, #tpu.memory_space<vmem>>, %arg5: memref<8x128xf32, #tpu.memory_space<vmem>>) attributes {dimension_semantics = [#tpu.dimension_semantics<arbitrary>], iteration_bounds = array<i64: 1>, scalar_prefetch = 0 : i64, scratch_operands = 0 : i64, tpu.core_type = #tpu.core_type<tc>, window_params = [{pipeline_mode = #tpu.pipeline_mode<synchronous>, transform_indices = @transform_0, window_bounds = array<i64: 8, 1, 128>}, {pipeline_mode = #tpu.pipeline_mode<synchronous>, transform_indices = @transform_1, window_bounds = array<i64: 128, 128>}, {pipeline_mode = #tpu.pipeline_mode<synchronous>, transform_indices = @transform_2, window_bounds = array<i64: 1, 128>}, {pipeline_mode = #tpu.pipeline_mode<synchronous>, transform_indices = @transform_3, window_bounds = array<i64: 8, 128>}, {pipeline_mode = #tpu.pipeline_mode<synchronous>, transform_indices = @transform_4, window_bounds = array<i64: 8, 128>}]} {
    %c0 = arith.constant 0 : index
    %c0_0 = arith.constant 0 : index
    %c0_1 = arith.constant 0 : index
    %0 = vector.load %arg1[%c0, %c0_0, %c0_1] : memref<8x1x128xbf16, #tpu.memory_space<vmem>>, vector<8x1x128xbf16>
    %1 = arith.extf %0 : vector<8x1x128xbf16> to vector<8x1x128xf32>
    %cst = arith.constant dense<0.000000e+00> : vector<8x128xf32>
    %2 = vector.multi_reduction <add>, %1, %cst [1] : vector<8x1x128xf32> to vector<8x128xf32>
    %cst_2 = arith.constant 1.000000e+00 : f32
    %3 = vector.broadcast %cst_2 : f32 to vector<8x128xf32>
    %4 = arith.mulf %2, %3 : vector<8x128xf32>
    %c0_3 = arith.constant 0 : index
    %c0_4 = arith.constant 0 : index
    %5 = vector.load %arg2[%c0_3, %c0_4] : memref<128x128xf32, #tpu.memory_space<vmem>>, vector<128x128xf32>
    %cst_5 = arith.constant dense<0.000000e+00> : vector<8x128xf32>
    %6 = tpu.matmul %4, %5, %cst_5 {dimension_numbers = #tpu.dot_dimension_numbers<[1], [0], [0], [1], [0, 0, 1, 1], [], []>} : vector<8x128xf32>, vector<128x128xf32>, vector<8x128xf32> -> vector<8x128xf32>
    %c0_6 = arith.constant 0 : index
    %c0_7 = arith.constant 0 : index
    %7 = vector.load %arg3[%c0_6, %c0_7] : memref<1x128xf32, #tpu.memory_space<vmem>>, vector<1x128xf32>
    %8 = vector.broadcast %7 : vector<1x128xf32> to vector<8x128xf32>
    %9 = arith.addf %6, %8 : vector<8x128xf32>
    %c0_8 = arith.constant 0 : index
    %c0_9 = arith.constant 0 : index
    %10 = vector.load %arg4[%c0_8, %c0_9] : memref<8x128xf32, #tpu.memory_space<vmem>>, vector<8x128xf32>
    tpu.vector_store %arg4[%c0_8, %c0_9], %9 {strides = array<i32>} : memref<8x128xf32, #tpu.memory_space<vmem>>, vector<8x128xf32>,
    %11 = tpu.iota {dimensions = array<i32: 1>} : vector<8x128xi32>
    %c10_i32 = arith.constant 10 : i32
    %12 = vector.broadcast %c10_i32 : i32 to vector<8x128xi32>
    %13 = arith.cmpi slt, %11, %12 : vector<8x128xi32>
    %cst_10 = arith.constant 0xFF800000 : f32
    %14 = vector.broadcast %cst_10 : f32 to vector<8x128xf32>
    %15 = arith.select %13, %9, %14 : vector<8x128xi1>, vector<8x128xf32>
    %cst_11 = arith.constant dense<0xFF800000> : vector<8xf32>
    %16 = vector.multi_reduction <maximumf>, %15, %cst_11 [1] : vector<8x128xf32> to vector<8xf32>
    %17 = vector.shape_cast %16 : vector<8xf32> to vector<8x1xf32>
    %18 = vector.broadcast %17 : vector<8x1xf32> to vector<8x128xf32>
    %19 = arith.subf %15, %18 : vector<8x128xf32>
    %20 = math.exp %19 : vector<8x128xf32>
    %cst_12 = arith.constant dense<0.000000e+00> : vector<8xf32>
    %21 = vector.multi_reduction <add>, %20, %cst_12 [1] : vector<8x128xf32> to vector<8xf32>
    %22 = vector.shape_cast %21 : vector<8xf32> to vector<8x1xf32>
    %23 = vector.broadcast %22 : vector<8x1xf32> to vector<8x128xf32>
    %24 = arith.divf %20, %23 : vector<8x128xf32>
    %c0_13 = arith.constant 0 : index
    %c0_14 = arith.constant 0 : index
    %25 = vector.load %arg5[%c0_13, %c0_14] : memref<8x128xf32, #tpu.memory_space<vmem>>, vector<8x128xf32>
    tpu.vector_store %arg5[%c0_13, %c0_14], %24 {strides = array<i32>} : memref<8x128xf32, #tpu.memory_space<vmem>>, vector<8x128xf32>,
    return
  }
  func.func @transform_0(%arg0: i32) -> (i32, i32, i32) {
    %c0_i32 = arith.constant 0 : i32
    %c0_i32_0 = arith.constant 0 : i32
    %c0_i32_1 = arith.constant 0 : i32
    %c0_i32_2 = arith.constant 0 : i32
    return %c0_i32, %c0_i32_0, %c0_i32_1 : i32, i32, i32
  }
  func.func @transform_1(%arg0: i32) -> (i32, i32) {
    %c0_i32 = arith.constant 0 : i32
    %c0_i32_0 = arith.constant 0 : i32
    %c0_i32_1 = arith.constant 0 : i32
    return %c0_i32, %c0_i32_0 : i32, i32
  }
  func.func @transform_2(%arg0: i32) -> (i32, i32) {
    %c0_i32 = arith.constant 0 : i32
    %c0_i32_0 = arith.constant 0 : i32
    %c0_i32_1 = arith.constant 0 : i32
    return %c0_i32, %c0_i32_0 : i32, i32
  }
  func.func @transform_3(%arg0: i32) -> (i32, i32) {
    %c0_i32 = arith.constant 0 : i32
    %c0_i32_0 = arith.constant 0 : i32
    %c0_i32_1 = arith.constant 0 : i32
    return %c0_i32, %c0_i32_0 : i32, i32
  }
  func.func @transform_4(%arg0: i32) -> (i32, i32) {
    %c0_i32 = arith.constant 0 : i32
    %c0_i32_0 = arith.constant 0 : i32
    %c0_i32_1 = arith.constant 0 : i32
    return %c0_i32, %c0_i32_0 : i32, i32
  }
}

</mosaic_0001>

<bundles_post_ra>
// kernel: _lambda_.23
= control target key start
LH: loop header
LB: loop body
LE: loop exit
PB: predicated region body
PF: predicated region fallthrough
CT: control target
= control target key end

     0   :  { %s2440_s17 = smov 0   ;;  %s2442_s18 = smov 0   ;;  %s2744_s0 = inlined_call_operand.vmem [shape: bf16[128,128], index: 0, kind: input, shape index: {}]   ;;  %s2745_s1 = inlined_call_operand.vmem [shape: f32[2,128], index: 1, kind: input, shape index: {}]   ;;  %s2746_s2 = inlined_call_operand.vmem [shape: bf16[512,27], index: 2, kind: input, shape index: {}]   ;;  %s2747_s3 = inlined_call_operand.<no memory space> [shape: bf16[], index: 3, kind: input, shape index: {}]   ;;  %s2748_s4 = inlined_call_operand.vmem [shape: bf16[512,128], index: 4, kind: output, shape index: {}]  }
   0x1   :  { %v9_v0 = vstv %s2747_s3  ;;  %s2444_s19 = smov 0  }
   0x2   :  { %v2438_v1 = vunpack.i.l.bf16 %v9_v0 }
   0x3 LB: > { %s31_s3 = sadd.s32 1, %s2403_s18  ;;  %p2043_p0 = scmp.ge.s32.totalorder %s2407_s19, 1  ;;  %s2407_s19 = sphi %s2444_s19, %s19_s19   ;;  %s2403_s18 = sphi %s2442_s18, %s2750_s18   ;;  %s2399_s17 = sphi %s2440_s17, %s2749_s17  }
   0x4   : > { %p33_p1 = scmp.ge.s32.totalorder %s31_s3, 2  ;;  %p176_p2 = scmp.lt.s32.totalorder %s2407_s19, 3 }
   0x6   : > { %s2752_s3 = smov (%p33_p1, %s31_s3), 0  ;;  %p177_p3 = pnand %p2043_p0, %p176_p2 }
   0x8   : > { %180 = sbr.rel (%p177_p3) target bundleno = 297 (0x129), region = 32 }
   0xf   : > { %v1326_v2 = vld [vmem:[%s2744_s0] sm:$0xff]  ;;  %v1327_v3 = vld [vmem:[%s2744_s0 + $0x8] sm:$0xff]  ;;  %s2044_s24 = sshll.u32 %s2399_s17, 5  ;;  %v255_v4 = vlaneseq  ;;  %v1328_v6 = vld [vmem:[%s2744_s0 + $0x10] sm:$0xff]  ;;  %v2409_v25 = vmov 0.0  }
  0x10   : > { %2280 = vmatprep.subr.bf16.mxu0 %v1326_v2  ;;  %2328 = vmatprep.subr.bf16.mxu1 %v1326_v2  ;;  %p213_p4 = scmp.lt.s32.totalorder %s2044_s24, 63  ;;  %v1329_v10 = vld [vmem:[%s2744_s0 + $0x18] sm:$0xff]  ;;  %v1330_v31 = vld [vmem:[%s2744_s0 + $0x20] sm:$0xff]  ;;  %v1331_v51 = vld [vmem:[%s2744_s0 + $0x28] sm:$0xff] }
  0x11   : > { %2281 = vmatpush3.bf16.msra.mxu0 %v1326_v2  ;;  %2336 = vmatpush3.bf16.msra.mxu1 %v1326_v2  ;;  %v2467_v5 = vand.u32 127, %v255_v4  ;;  %v1332_v61 = vld [vmem:[%s2744_s0 + $0x30] sm:$0xff] }
  0x12   : > { %2282 = vmatprep.subr.bf16.mxu0 %v1327_v3  ;;  %2329 = vmatprep.subr.bf16.mxu1 %v1327_v3  ;;  %s2754_s24 = smov (!%p213_p4, %s2044_s24), 63 }
  0x13   : > { %s2045_s27 = sshll.u32 %s2754_s24, 2  ;;  %vm259_vm0 = vcmp.lt.s32.totalorder %v2467_v5, 27 }
  0x14   : > { %s2478_s30 = scalar_lea.vmem %s2746_s2, %s2045_s27  ;;  %s2669_s21 = scalar_lea.vmem %s2748_s4, %s2045_s27 }
  0x15   : > { %2283 = vmatpush3.bf16.msra.mxu0 %v1327_v3  ;;  %2337 = vmatpush3.bf16.msra.mxu1 %v1327_v3  ;;  %v247_v7 = vld [vmem:[%s2478_s30] sm:$0xff]   ;;  %v2049_v9 = vld [vmem:[%s2478_s30 + $0x8] sm:$0xff]   ;;  %v2051_v16 = vld [vmem:[%s2478_s30 + $0x10] sm:$0xff]  }
  0x16   : > { %2284 = vmatprep.subr.bf16.mxu0 %v1328_v6  ;;  %2330 = vmatprep.subr.bf16.mxu1 %v1328_v6  ;;  %v2063_v8 = vld [vmem:[%s2478_s30 + $0x40] sm:$0xff]   ;;  %v248_v11 = vunpack.c.l.bf16 %v247_v7  ;;  %v278_v12 = vunpack.c.h.bf16 %v247_v7  ;;  %v2065_v15 = vld [vmem:[%s2478_s30 + $0x48] sm:$0xff]   ;;  %v309_v17 = vunpack.c.l.bf16 %v2049_v9  ;;  %v340_v18 = vunpack.c.h.bf16 %v2049_v9  ;;  %v2067_v30 = vld [vmem:[%s2478_s30 + $0x50] sm:$0xff]  }
  0x17   : > { %v743_v13 = vunpack.c.l.bf16 %v2063_v8  ;;  %v774_v14 = vunpack.c.h.bf16 %v2063_v8  ;;  %v805_v19 = vunpack.c.l.bf16 %v2065_v15  ;;  %v836_v20 = vunpack.c.h.bf16 %v2065_v15  ;;  %v2053_v40 = vld [vmem:[%s2478_s30 + $0x18] sm:$0xff]   ;;  %v2055_v46 = vld [vmem:[%s2478_s30 + $0x20] sm:$0xff]   ;;  %v2057_v9 = vld [vmem:[%s2478_s30 + $0x28] sm:$0xff]  }
  0x18   : > { %v260_v21 = vsel %vm259_vm0, %v248_v11, %v2438_v1  ;;  %v290_v22 = vsel %vm259_vm0, %v278_v12, %v2438_v1  ;;  %v371_v24 = vunpack.c.l.bf16 %v2051_v16  ;;  %v402_v29 = vunpack.c.h.bf16 %v2051_v16  ;;  %v2069_v41 = vld [vmem:[%s2478_s30 + $0x58] sm:$0xff]   ;;  %v2071_v56 = vld [vmem:[%s2478_s30 + $0x60] sm:$0xff]   ;;  %v2059_v11 = vld [vmem:[%s2478_s30 + $0x30] sm:$0xff]  }
  0x19   : > { %2285 = vmatpush3.bf16.msra.mxu0 %v1328_v6  ;;  %2338 = vmatpush3.bf16.msra.mxu1 %v1328_v6  ;;  %v755_v23 = vsel %vm259_vm0, %v743_v13, %v2438_v1  ;;  %v261_v26 = vpack.c.bf16 %v2409_v25, %v260_v21  ;;  %v292_v27 = vpack.c.bf16 %v2409_v25, %v290_v22  ;;  %v867_v45 = vunpack.c.l.bf16 %v2067_v30  ;;  %v2075_v21 = vld [vmem:[%s2478_s30 + $0x70] sm:$0xff]  }
  0x1a   : > { %2286 = vmatprep.subr.bf16.mxu0 %v1329_v10  ;;  %2331 = vmatprep.subr.bf16.mxu1 %v1329_v10  ;;  %v757_v28 = vpack.c.bf16 %v2409_v25, %v755_v23  ;;  %v786_v32 = vsel %vm259_vm0, %v774_v14, %v2438_v1  ;;  %v321_v33 = vsel %vm259_vm0, %v309_v17, %v2438_v1  ;;  %v898_v50 = vunpack.c.h.bf16 %v2067_v30 }
  0x1b   : > { %v352_v34 = vsel %vm259_vm0, %v340_v18, %v2438_v1  ;;  %v817_v35 = vsel %vm259_vm0, %v805_v19, %v2438_v1  ;;  %263 = vst [vmem:[#allocation8] sm:$0xf] %v261_v26  ;;  %294 = vst [vmem:[#allocation8 + $0x4] sm:$0xf] %v292_v27  ;;  %v788_v36 = vpack.c.bf16 %v2409_v25, %v786_v32  ;;  %v433_v53 = vunpack.c.l.bf16 %v2053_v40 }
  0x1c   : > { %759 = vst [vmem:[#allocation8 + $0x40] sm:$0xf] %v757_v28  ;;  %v323_v37 = vpack.c.bf16 %v2409_v25, %v321_v33  ;;  %v354_v38 = vpack.c.bf16 %v2409_v25, %v352_v34  ;;  %v819_v39 = vpack.c.bf16 %v2409_v25, %v817_v35  ;;  %v848_v42 = vsel %vm259_vm0, %v836_v20, %v2438_v1  ;;  %v1333_v28 = vld [vmem:[%s2744_s0 + $0x38] sm:$0xff] }
  0x1d   : > { %2287 = vmatpush3.bf16.msra.mxu0 %v1329_v10  ;;  %2339 = vmatpush3.bf16.msra.mxu1 %v1329_v10  ;;  %v383_v43 = vsel %vm259_vm0, %v371_v24, %v2438_v1  ;;  %v414_v44 = vsel %vm259_vm0, %v402_v29, %v2438_v1  ;;  %790 = vst [vmem:[#allocation8 + $0x44] sm:$0xf] %v788_v36  ;;  %v464_v54 = vunpack.c.h.bf16 %v2053_v40  ;;  %v929_v55 = vunpack.c.l.bf16 %v2069_v41  ;;  %v2073_v10 = vld [vmem:[%s2478_s30 + $0x68] sm:$0xff]  }
  0x1e   : > { %2288 = vmatprep.subr.bf16.mxu0 %v1330_v31  ;;  %2332 = vmatprep.subr.bf16.mxu1 %v1330_v31  ;;  %325 = vst [vmem:[#allocation8 + $0x8] sm:$0xf] %v323_v37  ;;  %356 = vst [vmem:[#allocation8 + $0xc] sm:$0xf] %v354_v38  ;;  %v850_v47 = vpack.c.bf16 %v2409_v25, %v848_v42  ;;  %v385_v48 = vpack.c.bf16 %v2409_v25, %v383_v43  ;;  %v960_v59 = vunpack.c.h.bf16 %v2069_v41  ;;  %v2061_v37 = vld [vmem:[%s2478_s30 + $0x38] sm:$0xff]  }
  0x1f   : > { %821 = vst [vmem:[#allocation8 + $0x48] sm:$0xf] %v819_v39  ;;  %v416_v49 = vpack.c.bf16 %v2409_v25, %v414_v44  ;;  %v879_v52 = vsel %vm259_vm0, %v867_v45, %v2438_v1  ;;  %v910_v58 = vsel %vm259_vm0, %v898_v50, %v2438_v1  ;;  %v495_v60 = vunpack.c.l.bf16 %v2055_v46 }
  0x20   : > { %852 = vst [vmem:[#allocation8 + $0x4c] sm:$0xf] %v850_v47  ;;  %387 = vst [vmem:[#allocation8 + $0x10] sm:$0xf] %v385_v48  ;;  %v881_v57 = vpack.c.bf16 %v2409_v25, %v879_v52  ;;  %v912_v62 = vpack.c.bf16 %v2409_v25, %v910_v58  ;;  %v445_v63 = vsel %vm259_vm0, %v433_v53, %v2438_v1  ;;  %v526_v2 = vunpack.c.h.bf16 %v2055_v46  ;;  %v2077_v46 = vld [vmem:[%s2478_s30 + $0x78] sm:$0xff]  }
  0x21   : > { %418 = vst [vmem:[#allocation8 + $0x14] sm:$0xf] %v416_v49  ;;  %2289 = vmatpush3.bf16.msra.mxu0 %v1330_v31  ;;  %2340 = vmatpush3.bf16.msra.mxu1 %v1330_v31  ;;  %v476_v0 = vsel %vm259_vm0, %v464_v54, %v2438_v1  ;;  %v447_v3 = vpack.c.bf16 %v2409_v25, %v445_v63  ;;  %v991_v8 = vunpack.c.l.bf16 %v2071_v56  ;;  %v1022_v24 = vunpack.c.h.bf16 %v2071_v56 }
  0x22   : > { %2290 = vmatprep.subr.bf16.mxu0 %v1331_v51  ;;  %2333 = vmatprep.subr.bf16.mxu1 %v1331_v51  ;;  %883 = vst [vmem:[#allocation8 + $0x50] sm:$0xf] %v881_v57  ;;  %v478_v6 = vpack.c.bf16 %v2409_v25, %v476_v0  ;;  %v941_v7 = vsel %vm259_vm0, %v929_v55, %v2438_v1  ;;  %v2369_v12 = vld [vmem:[#allocation8] sm:$0xff]   ;;  %914 = vst [vmem:[#allocation8 + $0x54] sm:$0xf] %v912_v62  ;;  %v557_v26 = vunpack.c.l.bf16 %v2057_v9 }
  0x23   : > { %v943_v13 = vpack.c.bf16 %v2409_v25, %v941_v7  ;;  %v972_v14 = vsel %vm259_vm0, %v960_v59, %v2438_v1  ;;  %v507_v15 = vsel %vm259_vm0, %v495_v60, %v2438_v1  ;;  %v538_v16 = vsel %vm259_vm0, %v526_v2, %v2438_v1  ;;  %449 = vst [vmem:[#allocation8 + $0x18] sm:$0xf] %v447_v3 }
  0x24   : > { %480 = vst [vmem:[#allocation8 + $0x1c] sm:$0xf] %v478_v6  ;;  %v974_v17 = vpack.c.bf16 %v2409_v25, %v972_v14  ;;  %v509_v18 = vpack.c.bf16 %v2409_v25, %v507_v15  ;;  %v540_v19 = vpack.c.bf16 %v2409_v25, %v538_v16  ;;  %v1003_v20 = vsel %vm259_vm0, %v991_v8, %v2438_v1  ;;  %v2370_v22 = vld [vmem:[#allocation8 + $0x40] sm:$0xff]  }
  0x25   : > { %2291 = vmatpush3.bf16.msra.mxu0 %v1331_v51  ;;  %2341 = vmatpush3.bf16.msra.mxu1 %v1331_v51  ;;  %945 = vst [vmem:[#allocation8 + $0x58] sm:$0xf] %v943_v13  ;;  %v1005_v23 = vpack.c.bf16 %v2409_v25, %v1003_v20  ;;  %v588_v27 = vunpack.c.h.bf16 %v2057_v9  ;;  %v1053_v29 = vunpack.c.l.bf16 %v2073_v10  ;;  %v1084_v30 = vunpack.c.h.bf16 %v2073_v10  ;;  %v2371_v51 = vld [vmem:[#allocation8 + $0x8] sm:$0xff]   ;;  %v1658_v20 = vld [vmem:[%s2745_s1] sm:$0x3] }
  0x26   : > { %2292 = vmatprep.subr.bf16.mxu0 %v1332_v61  ;;  %2334 = vmatprep.subr.bf16.mxu1 %v1332_v61  ;;  %976 = vst [vmem:[#allocation8 + $0x5c] sm:$0xf] %v974_v17  ;;  %511 = vst [vmem:[#allocation8 + $0x20] sm:$0xf] %v509_v18  ;;  %v619_v31 = vunpack.c.l.bf16 %v2059_v11  ;;  %v650_v32 = vunpack.c.h.bf16 %v2059_v11  ;;  %v1034_v33 = vsel %vm259_vm0, %v1022_v24, %v2438_v1  ;;  %v1115_v36 = vunpack.c.l.bf16 %v2075_v21 }
  0x27   : > { %542 = vst [vmem:[#allocation8 + $0x24] sm:$0xf] %v540_v19  ;;  %2296 = vmatprep.mubr.bf16.mxu0 %v2369_v12  ;;  %2312 = vmatprep.mubr.bf16.mxu1 %v2370_v22  ;;  %1007 = vst [vmem:[#allocation8 + $0x60] sm:$0xf] %v1005_v23  ;;  %v569_v34 = vsel %vm259_vm0, %v557_v26, %v2438_v1  ;;  %v600_v35 = vsel %vm259_vm0, %v588_v27, %v2438_v1  ;;  %v1146_v45 = vunpack.c.h.bf16 %v2075_v21  ;;  %v2372_v56 = vld [vmem:[#allocation8 + $0x48] sm:$0xff]  }
  0x28   : > { %v1036_v38 = vpack.c.bf16 %v2409_v25, %v1034_v33  ;;  %v571_v39 = vpack.c.bf16 %v2409_v25, %v569_v34  ;;  %v602_v40 = vpack.c.bf16 %v2409_v25, %v600_v35  ;;  %v1065_v41 = vsel %vm259_vm0, %v1053_v29, %v2438_v1  ;;  %v2373_v57 = vld [vmem:[#allocation8 + $0x10] sm:$0xff]  }
  0x29   : > { %2293 = vmatpush3.bf16.msra.mxu0 %v1332_v61  ;;  %2342 = vmatpush3.bf16.msra.mxu1 %v1332_v61  ;;  %v1067_v42 = vpack.c.bf16 %v2409_v25, %v1065_v41  ;;  %v1096_v43 = vsel %vm259_vm0, %v1084_v30, %v2438_v1  ;;  %v631_v44 = vsel %vm259_vm0, %v619_v31, %v2438_v1  ;;  %v681_v50 = vunpack.c.l.bf16 %v2061_v37  ;;  %v2374_v62 = vld [vmem:[#allocation8 + $0x50] sm:$0xff]  }
  0x2a   : > { %2294 = vmatprep.subr.bf16.mxu0 %v1333_v28  ;;  %2335 = vmatprep.subr.bf16.mxu1 %v1333_v28  ;;  %1038 = vst [vmem:[#allocation8 + $0x64] sm:$0xf] %v1036_v38  ;;  %573 = vst [vmem:[#allocation8 + $0x28] sm:$0xf] %v571_v39  ;;  %v1098_v47 = vpack.c.bf16 %v2409_v25, %v1096_v43  ;;  %v633_v48 = vpack.c.bf16 %v2409_v25, %v631_v44  ;;  %v712_v55 = vunpack.c.h.bf16 %v2061_v37 }
  0x2b   : > { %604 = vst [vmem:[#allocation8 + $0x2c] sm:$0xf] %v602_v40  ;;  %v662_v49 = vsel %vm259_vm0, %v650_v32, %v2438_v1  ;;  %1069 = vst [vmem:[#allocation8 + $0x68] sm:$0xf] %v1067_v42  ;;  %v1127_v53 = vsel %vm259_vm0, %v1115_v36, %v2438_v1  ;;  %v1158_v54 = vsel %vm259_vm0, %v1146_v45, %v2438_v1  ;;  %v1177_v61 = vunpack.c.l.bf16 %v2077_v46  ;;  %v2375_v10 = vld [vmem:[#allocation8 + $0x18] sm:$0xff]  }
  0x2c   : > { %v664_v52 = vpack.c.bf16 %v2409_v25, %v662_v49  ;;  %1100 = vst [vmem:[#allocation8 + $0x6c] sm:$0xf] %v1098_v47  ;;  %635 = vst [vmem:[#allocation8 + $0x30] sm:$0xf] %v633_v48  ;;  %v1129_v58 = vpack.c.bf16 %v2409_v25, %v1127_v53  ;;  %v1160_v59 = vpack.c.bf16 %v2409_v25, %v1158_v54  ;;  %v1208_v2 = vunpack.c.h.bf16 %v2077_v46 }
  0x2d   : > { %v693_v60 = vsel %vm259_vm0, %v681_v50, %v2438_v1  ;;  %2295 = vmatpush3.bf16.msra.mxu0 %v1333_v28  ;;  %2343 = vmatpush3.bf16.msra.mxu1 %v1333_v28  ;;  %v724_v0 = vsel %vm259_vm0, %v712_v55, %v2438_v1  ;;  %v1189_v6 = vsel %vm259_vm0, %v1177_v61, %v2438_v1  ;;  %v2376_v11 = vld [vmem:[#allocation8 + $0x58] sm:$0xff]   ;;  %v1692_v18 = vshrl.u32 %v255_v4, 7 }
  0x2e   : > { %666 = vst [vmem:[#allocation8 + $0x34] sm:$0xf] %v664_v52  ;;  %v695_v63 = vpack.c.bf16 %v2409_v25, %v693_v60  ;;  %1131 = vst [vmem:[#allocation8 + $0x70] sm:$0xf] %v1129_v58  ;;  %v726_v3 = vpack.c.bf16 %v2409_v25, %v724_v0  ;;  %v1191_v7 = vpack.c.bf16 %v2409_v25, %v1189_v6  ;;  %v2377_v12 = vld [vmem:[#allocation8 + $0x20] sm:$0xff]  }
  0x2f   : > { %1162 = vst [vmem:[#allocation8 + $0x74] sm:$0xf] %v1160_v59  ;;  %v1220_v8 = vsel %vm259_vm0, %v1208_v2, %v2438_v1  ;;  %v1693_v19 = vsub.s32 0, %v1692_v18  ;;  %v1729_v21 = vsub.s32 1, %v1692_v18 }
  0x30   : > { %697 = vst [vmem:[#allocation8 + $0x38] sm:$0xf] %v695_v63  ;;  %2297 = vmatmul.mubr.bf16.vlgmr.msra.gmra.mrb[0].mxu0 %v2371_v51  ;;  %2313 = vmatmul.mubr.bf16.vlgmr.msra.gmra.mrb[0].mxu1 %v2372_v56  ;;  %728 = vst [vmem:[#allocation8 + $0x3c] sm:$0xf] %v726_v3  ;;  %v1222_v9 = vpack.c.bf16 %v2409_v25, %v1220_v8 }
  0x31   : > { %2300 = vmatprep.mubr.bf16.mxu0 %v2373_v57  ;;  %2316 = vmatprep.mubr.bf16.mxu1 %v2374_v62  ;;  %1193 = vst [vmem:[#allocation8 + $0x78] sm:$0xf] %v1191_v7  ;;  %v2378_v13 = vld [vmem:[#allocation8 + $0x60] sm:$0xff]   ;;  %v2644_v22 = vrot.slane %v1658_v20, %v1693_v19  ;;  %v2646_v23 = vrot.slane %v1658_v20, %v1729_v21 }
  0x32   : > { %1224 = vst [vmem:[#allocation8 + $0x7c] sm:$0xf] %v1222_v9  ;;  %v2379_v14 = vld [vmem:[#allocation8 + $0x28] sm:$0xff]  }
  0x33   : > { %v2380_v5 = vld [vmem:[#allocation8 + $0x68] sm:$0xff]  }
  0x35   : > { %v2381_v15 = vld [vmem:[#allocation8 + $0x30] sm:$0xff]  }
  0x36   : > { %v2382_v16 = vld [vmem:[#allocation8 + $0x70] sm:$0xff]  }
  0x37   : > { %v2383_v25 = vld [vmem:[#allocation8 + $0x38] sm:$0xff]  }
  0x38   : > { %2301 = vmatmul.mubr.bf16.gmra.mrb[4].mxu0 %v2375_v10  ;;  %2317 = vmatmul.mubr.bf16.gmra.mrb[4].mxu1 %v2376_v11 }
  0x39   : > { %2304 = vmatprep.mubr.bf16.mxu0 %v2377_v12  ;;  %2320 = vmatprep.mubr.bf16.mxu1 %v2378_v13  ;;  %v2384_v17 = vld [vmem:[#allocation8 + $0x78] sm:$0xff]  }
  0x40   : > { %2305 = vmatmul.mubr.bf16.gmra.mrb[8].mxu0 %v2379_v14  ;;  %2321 = vmatmul.mubr.bf16.gmra.mrb[8].mxu1 %v2380_v5 }
  0x41   : > { %2308 = vmatprep.mubr.bf16.mxu0 %v2381_v15  ;;  %2324 = vmatprep.mubr.bf16.mxu1 %v2382_v16 }
  0x48   : > { %2309 = vmatmul.mubr.bf16.gmra.mrb[12].mxu0 %v2383_v25  ;;  %2325 = vmatmul.mubr.bf16.gmra.mrb[12].mxu1 %v2384_v17 }
 0x103   : > { %v2298_v24 = vpop.f32.mrb[0].mxu0  ;;  %v2314_v26 = vpop.f32.mrb[0].mxu1 }
 0x104   : > { %v1697_v27 = vmul.f32 %v2298_v24, %v2644_v22  ;;  %v1713_v28 = vmul.f32 %v2314_v26, %v2644_v22  ;;  %v1464_v29 = vpop.f32.mrb[1].mxu0  ;;  %v1528_v30 = vpop.f32.mrb[1].mxu1 }
 0x105   : > { %v1695_v4 = vmul.f32 %v2644_v22, %v1464_v29  ;;  %v1711_v31 = vmul.f32 %v2644_v22, %v1528_v30  ;;  %v2299_v32 = vpop.f32.mrb[2].mxu0  ;;  %v2315_v33 = vpop.f32.mrb[2].mxu1 }
 0x106   : > { %v1733_v34 = vadd.f32 %v2646_v23, %v1697_v27  ;;  %v1749_v35 = vadd.f32 %v2646_v23, %v1713_v28  ;;  %v1698_v36 = vmul.f32 %v2299_v32, %v2644_v22  ;;  %v1714_v37 = vmul.f32 %v2315_v33, %v2644_v22  ;;  %v1467_v38 = vpop.f32.mrb[3].mxu0  ;;  %v1531_v39 = vpop.f32.mrb[3].mxu1 }
 0x107   : > { %v1731_v40 = vadd.f32 %v2646_v23, %v1695_v4  ;;  %v1747_v41 = vadd.f32 %v2646_v23, %v1711_v31  ;;  %v1696_v42 = vmul.f32 %v2644_v22, %v1467_v38  ;;  %v1712_v43 = vmul.f32 %v2644_v22, %v1531_v39 }
 0x108   : > { %v1734_v44 = vadd.f32 %v2646_v23, %v1698_v36  ;;  %v1750_v45 = vadd.f32 %v2646_v23, %v1714_v37  ;;  %v1765_v48 = vmax.f32 %v1733_v34, 0.0  ;;  %v1781_v49 = vmax.f32 %v1749_v35, 0.0 }
 0x109   : > { %v1732_v46 = vadd.f32 %v2646_v23, %v1696_v42  ;;  %v1748_v47 = vadd.f32 %v2646_v23, %v1712_v43  ;;  %v1763_v52 = vmax.f32 %v1731_v40, 0.0  ;;  %v1779_v53 = vmax.f32 %v1747_v41, 0.0 }
 0x10a   : > { %v1766_v50 = vmax.f32 %v1734_v44, 0.0  ;;  %v1782_v51 = vmax.f32 %v1750_v45, 0.0 }
 0x10b   : > { %v1764_v54 = vmax.f32 %v1732_v46, 0.0  ;;  %v1780_v55 = vmax.f32 %v1748_v47, 0.0  ;;  %v2302_v56 = vpop.f32.mrb[4].mxu0  ;;  %v2318_v57 = vpop.f32.mrb[4].mxu1 }
 0x10c   : > { %v2169_v58 = vpack.c.bf16 %v1766_v50, %v1765_v48  ;;  %v2209_v59 = vpack.c.bf16 %v1782_v51, %v1781_v49  ;;  %v1701_v60 = vmul.f32 %v2302_v56, %v2644_v22  ;;  %v1717_v61 = vmul.f32 %v2318_v57, %v2644_v22  ;;  %v1480_v62 = vpop.f32.mrb[5].mxu0  ;;  %v1544_v63 = vpop.f32.mrb[5].mxu1 }
 0x10d   : > { %v2164_v0 = vpack.c.bf16 %v1764_v54, %v1763_v52  ;;  %v2204_v2 = vpack.c.bf16 %v1780_v55, %v1779_v53  ;;  %v1699_v3 = vmul.f32 %v2644_v22, %v1480_v62  ;;  %v1715_v6 = vmul.f32 %v2644_v22, %v1544_v63  ;;  %v2303_v7 = vpop.f32.mrb[6].mxu0  ;;  %v2319_v8 = vpop.f32.mrb[6].mxu1 }
 0x10e   : > { %2241 = vst [vmem:[%s2669_s21 + $0x8] sm:$0xff] %v2169_v58   ;;  %2249 = vst [vmem:[%s2669_s21 + $0x48] sm:$0xff] %v2209_v59   ;;  %v1737_v9 = vadd.f32 %v2646_v23, %v1701_v60  ;;  %v1753_v10 = vadd.f32 %v2646_v23, %v1717_v61  ;;  %v1702_v11 = vmul.f32 %v2303_v7, %v2644_v22  ;;  %v1483_v13 = vpop.f32.mrb[7].mxu0  ;;  %v1547_v14 = vpop.f32.mrb[7].mxu1 }
 0x10f   : > { %v1718_v12 = vmul.f32 %v2319_v8, %v2644_v22  ;;  %2165 = vst [vmem:[%s2669_s21] sm:$0xff] %v2164_v0   ;;  %2248 = vst [vmem:[%s2669_s21 + $0x40] sm:$0xff] %v2204_v2   ;;  %v1735_v5 = vadd.f32 %v2646_v23, %v1699_v3  ;;  %v1751_v15 = vadd.f32 %v2646_v23, %v1715_v6 }
 0x110   : > { %v1700_v16 = vmul.f32 %v2644_v22, %v1483_v13  ;;  %v1716_v25 = vmul.f32 %v2644_v22, %v1547_v14  ;;  %v1738_v17 = vadd.f32 %v2646_v23, %v1702_v11  ;;  %v1769_v21 = vmax.f32 %v1737_v9, 0.0 }
 0x111   : > { %v1754_v18 = vadd.f32 %v2646_v23, %v1718_v12  ;;  %v1785_v24 = vmax.f32 %v1753_v10, 0.0  ;;  %v1767_v28 = vmax.f32 %v1735_v5, 0.0  ;;  %v1783_v29 = vmax.f32 %v1751_v15, 0.0 }
 0x112   : > { %v1736_v19 = vadd.f32 %v2646_v23, %v1700_v16  ;;  %v1752_v20 = vadd.f32 %v2646_v23, %v1716_v25  ;;  %v1770_v26 = vmax.f32 %v1738_v17, 0.0 }
 0x113   : > { %v1786_v27 = vmax.f32 %v1754_v18, 0.0  ;;  %v2306_v31 = vpop.f32.mrb[8].mxu0  ;;  %v2322_v32 = vpop.f32.mrb[8].mxu1 }
 0x114   : > { %v1768_v30 = vmax.f32 %v1736_v19, 0.0  ;;  %v1784_v4 = vmax.f32 %v1752_v20, 0.0  ;;  %v2179_v33 = vpack.c.bf16 %v1770_v26, %v1769_v21  ;;  %v1705_v35 = vmul.f32 %v2306_v31, %v2644_v22  ;;  %v1496_v37 = vpop.f32.mrb[9].mxu0  ;;  %v1560_v38 = vpop.f32.mrb[9].mxu1 }
 0x115   : > { %v2219_v34 = vpack.c.bf16 %v1786_v27, %v1785_v24  ;;  %v1721_v36 = vmul.f32 %v2322_v32, %v2644_v22  ;;  %v1703_v41 = vmul.f32 %v2644_v22, %v1496_v37  ;;  %v1719_v42 = vmul.f32 %v2644_v22, %v1560_v38  ;;  %v2307_v43 = vpop.f32.mrb[10].mxu0  ;;  %v2323_v44 = vpop.f32.mrb[10].mxu1 }
 0x116   : > { %v2174_v39 = vpack.c.bf16 %v1768_v30, %v1767_v28  ;;  %v2214_v40 = vpack.c.bf16 %v1784_v4, %v1783_v29  ;;  %2243 = vst [vmem:[%s2669_s21 + $0x18] sm:$0xff] %v2179_v33   ;;  %v1741_v45 = vadd.f32 %v2646_v23, %v1705_v35  ;;  %v1706_v47 = vmul.f32 %v2307_v43, %v2644_v22  ;;  %v1499_v49 = vpop.f32.mrb[11].mxu0  ;;  %v1563_v50 = vpop.f32.mrb[11].mxu1 }
 0x117   : > { %2251 = vst [vmem:[%s2669_s21 + $0x58] sm:$0xff] %v2219_v34   ;;  %v1757_v46 = vadd.f32 %v2646_v23, %v1721_v36  ;;  %v1722_v48 = vmul.f32 %v2323_v44, %v2644_v22  ;;  %v1739_v51 = vadd.f32 %v2646_v23, %v1703_v41  ;;  %v1755_v52 = vadd.f32 %v2646_v23, %v1719_v42 }
 0x118   : > { %2242 = vst [vmem:[%s2669_s21 + $0x10] sm:$0xff] %v2174_v39   ;;  %2250 = vst [vmem:[%s2669_s21 + $0x50] sm:$0xff] %v2214_v40   ;;  %v1704_v53 = vmul.f32 %v2644_v22, %v1499_v49  ;;  %v1720_v54 = vmul.f32 %v2644_v22, %v1563_v50  ;;  %v1742_v55 = vadd.f32 %v2646_v23, %v1706_v47  ;;  %v1773_v59 = vmax.f32 %v1741_v45, 0.0 }
 0x119   : > { %v1758_v56 = vadd.f32 %v2646_v23, %v1722_v48  ;;  %v1789_v60 = vmax.f32 %v1757_v46, 0.0  ;;  %v1771_v63 = vmax.f32 %v1739_v51, 0.0  ;;  %v1787_v0 = vmax.f32 %v1755_v52, 0.0 }
 0x11a   : > { %v1740_v57 = vadd.f32 %v2646_v23, %v1704_v53  ;;  %v1756_v58 = vadd.f32 %v2646_v23, %v1720_v54  ;;  %v1774_v61 = vmax.f32 %v1742_v55, 0.0 }
 0x11b   : > { %v1790_v62 = vmax.f32 %v1758_v56, 0.0  ;;  %v2310_v6 = vpop.f32.mrb[12].mxu0  ;;  %v2326_v7 = vpop.f32.mrb[12].mxu1 }
 0x11c   : > { %v1772_v2 = vmax.f32 %v1740_v57, 0.0  ;;  %v1788_v3 = vmax.f32 %v1756_v58, 0.0  ;;  %v2189_v8 = vpack.c.bf16 %v1774_v61, %v1773_v59  ;;  %v1709_v10 = vmul.f32 %v2310_v6, %v2644_v22  ;;  %v1512_v12 = vpop.f32.mrb[13].mxu0  ;;  %v1576_v13 = vpop.f32.mrb[13].mxu1 }
 0x11d   : > { %v2229_v9 = vpack.c.bf16 %v1790_v62, %v1789_v60  ;;  %v1725_v11 = vmul.f32 %v2326_v7, %v2644_v22  ;;  %v1707_v15 = vmul.f32 %v2644_v22, %v1512_v12  ;;  %v1723_v16 = vmul.f32 %v2644_v22, %v1576_v13  ;;  %v2311_v25 = vpop.f32.mrb[14].mxu0  ;;  %v2327_v17 = vpop.f32.mrb[14].mxu1 }
 0x11e   : > { %v2184_v14 = vpack.c.bf16 %v1772_v2, %v1771_v63  ;;  %v2224_v5 = vpack.c.bf16 %v1788_v3, %v1787_v0  ;;  %2245 = vst [vmem:[%s2669_s21 + $0x28] sm:$0xff] %v2189_v8   ;;  %v1745_v18 = vadd.f32 %v2646_v23, %v1709_v10  ;;  %v1710_v20 = vmul.f32 %v2311_v25, %v2644_v22  ;;  %v1515_v24 = vpop.f32.mrb[15].mxu0  ;;  %v1579_v26 = vpop.f32.mrb[15].mxu1 }
 0x11f   : > { %2253 = vst [vmem:[%s2669_s21 + $0x68] sm:$0xff] %v2229_v9   ;;  %v1761_v19 = vadd.f32 %v2646_v23, %v1725_v11  ;;  %v1726_v21 = vmul.f32 %v2327_v17, %v2644_v22  ;;  %v1743_v27 = vadd.f32 %v2646_v23, %v1707_v15  ;;  %v1759_v28 = vadd.f32 %v2646_v23, %v1723_v16 }
 0x120   : > { %2244 = vst [vmem:[%s2669_s21 + $0x20] sm:$0xff] %v2184_v14   ;;  %2252 = vst [vmem:[%s2669_s21 + $0x60] sm:$0xff] %v2224_v5   ;;  %v1708_v29 = vmul.f32 %v2644_v22, %v1515_v24  ;;  %v1724_v30 = vmul.f32 %v2644_v22, %v1579_v26  ;;  %v1746_v4 = vadd.f32 %v2646_v23, %v1710_v20  ;;  %v1777_v34 = vmax.f32 %v1745_v18, 0.0 }
 0x121   : > { %v1762_v31 = vadd.f32 %v2646_v23, %v1726_v21  ;;  %v1793_v35 = vmax.f32 %v1761_v19, 0.0  ;;  %v1775_v38 = vmax.f32 %v1743_v27, 0.0  ;;  %v1791_v39 = vmax.f32 %v1759_v28, 0.0 }
 0x122   : > { %v1744_v32 = vadd.f32 %v2646_v23, %v1708_v29  ;;  %v1760_v33 = vadd.f32 %v2646_v23, %v1724_v30  ;;  %v1778_v36 = vmax.f32 %v1746_v4, 0.0 }
 0x123   : > { %v1794_v37 = vmax.f32 %v1762_v31, 0.0 }
 0x124   : > { %v1776_v40 = vmax.f32 %v1744_v32, 0.0  ;;  %v1792_v22 = vmax.f32 %v1760_v33, 0.0  ;;  %v2199_v41 = vpack.c.bf16 %v1778_v36, %v1777_v34 }
 0x125   : > { %v2239_v42 = vpack.c.bf16 %v1794_v37, %v1793_v35 }
 0x126   : > { %v2194_v43 = vpack.c.bf16 %v1776_v40, %v1775_v38  ;;  %v2234_v44 = vpack.c.bf16 %v1792_v22, %v1791_v39  ;;  %2247 = vst [vmem:[%s2669_s21 + $0x38] sm:$0xff] %v2199_v41  }
 0x127   : > { %2255 = vst [vmem:[%s2669_s21 + $0x78] sm:$0xff] %v2239_v42  }
 0x128   : > { %2246 = vst [vmem:[%s2669_s21 + $0x30] sm:$0xff] %v2194_v43   ;;  %2254 = vst [vmem:[%s2669_s21 + $0x70] sm:$0xff] %v2234_v44  }
 0x129 PF: > { %s19_s19 = sadd.s32 1, %s2407_s19   ;;  %s2749_s17 = smov %s2403_s18 }
 0x12a   : > { %p16_p5 = scmp.ge.s32.totalorder %s19_s19, 4   ;;  %s2750_s18 = smov %s2752_s3 }
 0x12c   :  { %18 = sbr.rel (!%p16_p5) target bundleno = 3 (0x3), region = 135 }

// kernel: _lambda_.22
= control target key start
LH: loop header
LB: loop body
LE: loop exit
PB: predicated region body
PF: predicated region fallthrough
CT: control target
= control target key end

     0   :  { %s5090_s0 = inlined_call_operand.vmem [shape: bf16[9,128,8], index: 0, kind: input, shape index: {}]   ;;  %s5091_s1 = inlined_call_operand.<no memory space> [shape: bf16[], index: 1, kind: input, shape index: {}]   ;;  %s5092_s2 = inlined_call_operand.vmem [shape: bf16[128,128], index: 2, kind: output, shape index: {}]  }
   0x1   :  { %v7_v0 = vstv %s5091_s1 }
   0x2   :  { %v4125_v1 = vunpack.i.l.bf16 %v7_v0 }
   0x3   :  { %v23_v2 = vld [vmem:[%s5090_s0] sm:$0xff]   ;;  %v26_v3 = vlaneseq  ;;  %v3908_v4 = vld [vmem:[%s5090_s0 + $0x8] sm:$0xff]   ;;  %v3910_v5 = vld [vmem:[%s5090_s0 + $0x10] sm:$0xff]   ;;  %v4106_v29 = vmov 0.0   ;;  %vm3325_vm1 = vcmask 1043456  }
   0x4   :  { %v24_v6 = vunpack.c.l.bf16 %v23_v2  ;;  %v45_v7 = vunpack.c.h.bf16 %v23_v2  ;;  %v67_v8 = vunpack.c.l.bf16 %v3908_v4  ;;  %v89_v9 = vunpack.c.h.bf16 %v3908_v4  ;;  %v3912_v10 = vld [vmem:[%s5090_s0 + $0x18] sm:$0xff]   ;;  %v3914_v11 = vld [vmem:[%s5090_s0 + $0x20] sm:$0xff]   ;;  %v3916_v12 = vld [vmem:[%s5090_s0 + $0x28] sm:$0xff]  }
   0x5   :  { %v4145_v13 = vand.u32 127, %v26_v3  ;;  %v111_v14 = vunpack.c.l.bf16 %v3910_v5  ;;  %v133_v15 = vunpack.c.h.bf16 %v3910_v5  ;;  %v155_v16 = vunpack.c.l.bf16 %v3912_v10  ;;  %v3918_v17 = vld [vmem:[%s5090_s0 + $0x30] sm:$0xff]   ;;  %v3920_v42 = vld [vmem:[%s5090_s0 + $0x38] sm:$0xff]   ;;  %v3922_v47 = vld [vmem:[%s5090_s0 + $0x40] sm:$0xff]  }
   0x6   :  { %v177_v18 = vunpack.c.h.bf16 %v3912_v10  ;;  %v199_v19 = vunpack.c.l.bf16 %v3914_v11  ;;  %v221_v20 = vunpack.c.h.bf16 %v3914_v11  ;;  %v243_v21 = vunpack.c.l.bf16 %v3916_v12  ;;  %v3924_v52 = vld [vmem:[%s5090_s0 + $0x48] sm:$0xff]   ;;  %v3926_v2 = vld [vmem:[%s5090_s0 + $0x50] sm:$0xff]  }
   0x7   :  { %vm29_vm0 = vcmp.lt.s32.totalorder %v4145_v13, 8  ;;  %v265_v22 = vunpack.c.h.bf16 %v3916_v12  ;;  %v287_v23 = vunpack.c.l.bf16 %v3918_v17  ;;  %v309_v24 = vunpack.c.h.bf16 %v3918_v17 }
   0x8   :  { %v30_v25 = vsel %vm29_vm0, %v24_v6, %v4125_v1  ;;  %v51_v26 = vsel %vm29_vm0, %v45_v7, %v4125_v1  ;;  %v73_v27 = vsel %vm29_vm0, %v67_v8, %v4125_v1  ;;  %v95_v28 = vsel %vm29_vm0, %v89_v9, %v4125_v1  ;;  %v3928_v7 = vld [vmem:[%s5090_s0 + $0x58] sm:$0xff]   ;;  %v3930_v8 = vld [vmem:[%s5090_s0 + $0x60] sm:$0xff]  }
   0x9   :  { %v31_v30 = vpack.c.bf16 %v4106_v29, %v30_v25  ;;  %v53_v31 = vpack.c.bf16 %v4106_v29, %v51_v26  ;;  %v75_v32 = vpack.c.bf16 %v4106_v29, %v73_v27  ;;  %v97_v33 = vpack.c.bf16 %v4106_v29, %v95_v28 }
   0xa   :  { %v117_v34 = vsel %vm29_vm0, %v111_v14, %v4125_v1  ;;  %v139_v35 = vsel %vm29_vm0, %v133_v15, %v4125_v1  ;;  %v161_v36 = vsel %vm29_vm0, %v155_v16, %v4125_v1  ;;  %v183_v37 = vsel %vm29_vm0, %v177_v18, %v4125_v1  ;;  %v3932_v14 = vld [vmem:[%s5090_s0 + $0x68] sm:$0xff]  }
   0xb   :  { %33 = vst [vmem:[#allocation7] sm:$0xf] %v31_v30  ;;  %55 = vst [vmem:[#allocation7 + $0x4] sm:$0xf] %v53_v31  ;;  %v119_v38 = vpack.c.bf16 %v4106_v29, %v117_v34  ;;  %v141_v39 = vpack.c.bf16 %v4106_v29, %v139_v35  ;;  %v163_v40 = vpack.c.bf16 %v4106_v29, %v161_v36  ;;  %v331_v55 = vunpack.c.l.bf16 %v3920_v42 }
   0xc   :  { %77 = vst [vmem:[#allocation7 + $0x8] sm:$0xf] %v75_v32  ;;  %99 = vst [vmem:[#allocation7 + $0xc] sm:$0xf] %v97_v33  ;;  %v185_v41 = vpack.c.bf16 %v4106_v29, %v183_v37  ;;  %v205_v43 = vsel %vm29_vm0, %v199_v19, %v4125_v1  ;;  %v227_v44 = vsel %vm29_vm0, %v221_v20, %v4125_v1  ;;  %v353_v56 = vunpack.c.h.bf16 %v3920_v42  ;;  %v3934_v32 = vld [vmem:[%s5090_s0 + $0x70] sm:$0xff]   ;;  %v3936_v37 = vld [vmem:[%s5090_s0 + $0x78] sm:$0xff]  }
   0xd   :  { %v249_v45 = vsel %vm29_vm0, %v243_v21, %v4125_v1  ;;  %v271_v46 = vsel %vm29_vm0, %v265_v22, %v4125_v1  ;;  %121 = vst [vmem:[#allocation7 + $0x10] sm:$0xf] %v119_v38  ;;  %143 = vst [vmem:[#allocation7 + $0x14] sm:$0xf] %v141_v39  ;;  %v207_v48 = vpack.c.bf16 %v4106_v29, %v205_v43  ;;  %v375_v59 = vunpack.c.l.bf16 %v3922_v47  ;;  %v3938_v38 = vld [vmem:[%s5090_s0 + $0x80] sm:$0xff]   ;;  %v3940_v43 = vld [vmem:[%s5090_s0 + $0x88] sm:$0xff]  }
   0xe   :  { %165 = vst [vmem:[#allocation7 + $0x18] sm:$0xf] %v163_v40  ;;  %187 = vst [vmem:[#allocation7 + $0x1c] sm:$0xf] %v185_v41  ;;  %v229_v49 = vpack.c.bf16 %v4106_v29, %v227_v44  ;;  %v251_v50 = vpack.c.bf16 %v4106_v29, %v249_v45  ;;  %v273_v51 = vpack.c.bf16 %v4106_v29, %v271_v46  ;;  %v397_v60 = vunpack.c.h.bf16 %v3922_v47 }
   0xf   :  { %v293_v53 = vsel %vm29_vm0, %v287_v23, %v4125_v1  ;;  %v315_v54 = vsel %vm29_vm0, %v309_v24, %v4125_v1  ;;  %209 = vst [vmem:[#allocation7 + $0x20] sm:$0xf] %v207_v48  ;;  %v337_v61 = vsel %vm29_vm0, %v331_v55, %v4125_v1  ;;  %v359_v62 = vsel %vm29_vm0, %v353_v56, %v4125_v1 }
  0x10   :  { %231 = vst [vmem:[#allocation7 + $0x24] sm:$0xf] %v229_v49  ;;  %253 = vst [vmem:[#allocation7 + $0x28] sm:$0xf] %v251_v50  ;;  %v295_v57 = vpack.c.bf16 %v4106_v29, %v293_v53  ;;  %v317_v58 = vpack.c.bf16 %v4106_v29, %v315_v54  ;;  %v419_v63 = vunpack.c.l.bf16 %v3924_v52  ;;  %v441_v0 = vunpack.c.h.bf16 %v3924_v52 }
  0x11   :  { %275 = vst [vmem:[#allocation7 + $0x2c] sm:$0xf] %v273_v51  ;;  %v339_v3 = vpack.c.bf16 %v4106_v29, %v337_v61  ;;  %v361_v4 = vpack.c.bf16 %v4106_v29, %v359_v62  ;;  %v381_v5 = vsel %vm29_vm0, %v375_v59, %v4125_v1  ;;  %v403_v6 = vsel %vm29_vm0, %v397_v60, %v4125_v1  ;;  %v3942_v60 = vld [vmem:[%s5090_s0 + $0x90] sm:$0xff]  }
  0x12   :  { %297 = vst [vmem:[#allocation7 + $0x30] sm:$0xf] %v295_v57  ;;  %319 = vst [vmem:[#allocation7 + $0x34] sm:$0xf] %v317_v58  ;;  %v383_v9 = vpack.c.bf16 %v4106_v29, %v381_v5  ;;  %v405_v10 = vpack.c.bf16 %v4106_v29, %v403_v6  ;;  %v425_v11 = vsel %vm29_vm0, %v419_v63, %v4125_v1  ;;  %v463_v17 = vunpack.c.l.bf16 %v3926_v2 }
  0x13   :  { %v447_v12 = vsel %vm29_vm0, %v441_v0, %v4125_v1  ;;  %341 = vst [vmem:[#allocation7 + $0x38] sm:$0xf] %v339_v3  ;;  %363 = vst [vmem:[#allocation7 + $0x3c] sm:$0xf] %v361_v4  ;;  %v427_v15 = vpack.c.bf16 %v4106_v29, %v425_v11  ;;  %v485_v18 = vunpack.c.h.bf16 %v3926_v2  ;;  %v507_v19 = vunpack.c.l.bf16 %v3928_v7  ;;  %v3944_v2 = vld [vmem:[%s5090_s0 + $0x98] sm:$0xff]   ;;  %v3946_v3 = vld [vmem:[%s5090_s0 + $0xa0] sm:$0xff]  }
  0x14   :  { %v449_v16 = vpack.c.bf16 %v4106_v29, %v447_v12  ;;  %385 = vst [vmem:[#allocation7 + $0x40] sm:$0xf] %v383_v9  ;;  %407 = vst [vmem:[#allocation7 + $0x44] sm:$0xf] %v405_v10  ;;  %v529_v20 = vunpack.c.h.bf16 %v3928_v7  ;;  %v551_v21 = vunpack.c.l.bf16 %v3930_v8  ;;  %v573_v22 = vunpack.c.h.bf16 %v3930_v8  ;;  %v3948_v8 = vld [vmem:[%s5090_s0 + $0xa8] sm:$0xff]  }
  0x15   :  { %429 = vst [vmem:[#allocation7 + $0x48] sm:$0xf] %v427_v15  ;;  %v469_v23 = vsel %vm29_vm0, %v463_v17, %v4125_v1  ;;  %v491_v24 = vsel %vm29_vm0, %v485_v18, %v4125_v1  ;;  %v595_v25 = vunpack.c.l.bf16 %v3932_v14  ;;  %v617_v26 = vunpack.c.h.bf16 %v3932_v14 }
  0x16   :  { %451 = vst [vmem:[#allocation7 + $0x4c] sm:$0xf] %v449_v16  ;;  %v471_v27 = vpack.c.bf16 %v4106_v29, %v469_v23  ;;  %v493_v28 = vpack.c.bf16 %v4106_v29, %v491_v24  ;;  %v513_v30 = vsel %vm29_vm0, %v507_v19, %v4125_v1  ;;  %v535_v31 = vsel %vm29_vm0, %v529_v20, %v4125_v1 }
  0x17   :  { %v515_v33 = vpack.c.bf16 %v4106_v29, %v513_v30  ;;  %v537_v34 = vpack.c.bf16 %v4106_v29, %v535_v31  ;;  %v557_v35 = vsel %vm29_vm0, %v551_v21, %v4125_v1  ;;  %v579_v36 = vsel %vm29_vm0, %v573_v22, %v4125_v1 }
  0x18   :  { %473 = vst [vmem:[#allocation7 + $0x50] sm:$0xf] %v471_v27  ;;  %495 = vst [vmem:[#allocation7 + $0x54] sm:$0xf] %v493_v28  ;;  %v559_v39 = vpack.c.bf16 %v4106_v29, %v557_v35  ;;  %v581_v40 = vpack.c.bf16 %v4106_v29, %v579_v36  ;;  %v601_v41 = vsel %vm29_vm0, %v595_v25, %v4125_v1  ;;  %v639_v46 = vunpack.c.l.bf16 %v3934_v32 }
  0x19   :  { %v623_v42 = vsel %vm29_vm0, %v617_v26, %v4125_v1  ;;  %517 = vst [vmem:[#allocation7 + $0x58] sm:$0xf] %v515_v33  ;;  %539 = vst [vmem:[#allocation7 + $0x5c] sm:$0xf] %v537_v34  ;;  %v603_v44 = vpack.c.bf16 %v4106_v29, %v601_v41  ;;  %v661_v47 = vunpack.c.h.bf16 %v3934_v32  ;;  %v683_v48 = vunpack.c.l.bf16 %v3936_v37  ;;  %v3950_v26 = vld [vmem:[%s5090_s0 + $0xb0] sm:$0xff]   ;;  %v3952_v32 = vld [vmem:[%s5090_s0 + $0xb8] sm:$0xff]  }
  0x1a   :  { %v625_v45 = vpack.c.bf16 %v4106_v29, %v623_v42  ;;  %561 = vst [vmem:[#allocation7 + $0x60] sm:$0xf] %v559_v39  ;;  %583 = vst [vmem:[#allocation7 + $0x64] sm:$0xf] %v581_v40  ;;  %v705_v49 = vunpack.c.h.bf16 %v3936_v37  ;;  %v727_v50 = vunpack.c.l.bf16 %v3938_v38  ;;  %v749_v51 = vunpack.c.h.bf16 %v3938_v38  ;;  %v3954_v33 = vld [vmem:[%s5090_s0 + $0xc0] sm:$0xff]   ;;  %v3956_v38 = vld [vmem:[%s5090_s0 + $0xc8] sm:$0xff]  }
  0x1b   :  { %605 = vst [vmem:[#allocation7 + $0x68] sm:$0xf] %v603_v44  ;;  %v645_v52 = vsel %vm29_vm0, %v639_v46, %v4125_v1  ;;  %v667_v53 = vsel %vm29_vm0, %v661_v47, %v4125_v1  ;;  %v771_v54 = vunpack.c.l.bf16 %v3940_v43  ;;  %v793_v55 = vunpack.c.h.bf16 %v3940_v43 }
  0x1c   :  { %627 = vst [vmem:[#allocation7 + $0x6c] sm:$0xf] %v625_v45  ;;  %v647_v56 = vpack.c.bf16 %v4106_v29, %v645_v52  ;;  %v669_v57 = vpack.c.bf16 %v4106_v29, %v667_v53  ;;  %v689_v58 = vsel %vm29_vm0, %v683_v48, %v4125_v1  ;;  %v711_v59 = vsel %vm29_vm0, %v705_v49, %v4125_v1 }
  0x1d   :  { %v691_v61 = vpack.c.bf16 %v4106_v29, %v689_v58  ;;  %v713_v62 = vpack.c.bf16 %v4106_v29, %v711_v59  ;;  %v733_v63 = vsel %vm29_vm0, %v727_v50, %v4125_v1  ;;  %v755_v0 = vsel %vm29_vm0, %v749_v51, %v4125_v1 }
  0x1e   :  { %649 = vst [vmem:[#allocation7 + $0x70] sm:$0xf] %v647_v56  ;;  %671 = vst [vmem:[#allocation7 + $0x74] sm:$0xf] %v669_v57  ;;  %v735_v4 = vpack.c.bf16 %v4106_v29, %v733_v63  ;;  %v757_v5 = vpack.c.bf16 %v4106_v29, %v755_v0  ;;  %v777_v6 = vsel %vm29_vm0, %v771_v54, %v4125_v1  ;;  %v815_v11 = vunpack.c.l.bf16 %v3942_v60 }
  0x1f   :  { %v799_v7 = vsel %vm29_vm0, %v793_v55, %v4125_v1  ;;  %693 = vst [vmem:[#allocation7 + $0x78] sm:$0xf] %v691_v61  ;;  %715 = vst [vmem:[#allocation7 + $0x7c] sm:$0xf] %v713_v62  ;;  %v779_v9 = vpack.c.bf16 %v4106_v29, %v777_v6  ;;  %v837_v12 = vunpack.c.h.bf16 %v3942_v60  ;;  %v859_v14 = vunpack.c.l.bf16 %v3944_v2  ;;  %v3958_v55 = vld [vmem:[%s5090_s0 + $0xd0] sm:$0xff]   ;;  %v3960_v60 = vld [vmem:[%s5090_s0 + $0xd8] sm:$0xff]  }
  0x20   :  { %v801_v10 = vpack.c.bf16 %v4106_v29, %v799_v7  ;;  %737 = vst [vmem:[#allocation7 + $0x80] sm:$0xf] %v735_v4  ;;  %759 = vst [vmem:[#allocation7 + $0x84] sm:$0xf] %v757_v5  ;;  %v881_v15 = vunpack.c.h.bf16 %v3944_v2  ;;  %v903_v16 = vunpack.c.l.bf16 %v3946_v3  ;;  %v925_v17 = vunpack.c.h.bf16 %v3946_v3  ;;  %v3962_v61 = vld [vmem:[%s5090_s0 + $0xe0] sm:$0xff]   ;;  %v3964_v3 = vld [vmem:[%s5090_s0 + $0xe8] sm:$0xff]  }
  0x21   :  { %781 = vst [vmem:[#allocation7 + $0x88] sm:$0xf] %v779_v9  ;;  %v821_v18 = vsel %vm29_vm0, %v815_v11, %v4125_v1  ;;  %v843_v19 = vsel %vm29_vm0, %v837_v12, %v4125_v1  ;;  %v947_v20 = vunpack.c.l.bf16 %v3948_v8  ;;  %v969_v21 = vunpack.c.h.bf16 %v3948_v8 }
  0x22   :  { %803 = vst [vmem:[#allocation7 + $0x8c] sm:$0xf] %v801_v10  ;;  %v823_v22 = vpack.c.bf16 %v4106_v29, %v821_v18  ;;  %v845_v23 = vpack.c.bf16 %v4106_v29, %v843_v19  ;;  %v865_v24 = vsel %vm29_vm0, %v859_v14, %v4125_v1  ;;  %v887_v25 = vsel %vm29_vm0, %v881_v15, %v4125_v1 }
  0x23   :  { %v867_v27 = vpack.c.bf16 %v4106_v29, %v865_v24  ;;  %v889_v28 = vpack.c.bf16 %v4106_v29, %v887_v25  ;;  %v909_v30 = vsel %vm29_vm0, %v903_v16, %v4125_v1  ;;  %v931_v31 = vsel %vm29_vm0, %v925_v17, %v4125_v1 }
  0x24   :  { %825 = vst [vmem:[#allocation7 + $0x90] sm:$0xf] %v823_v22  ;;  %847 = vst [vmem:[#allocation7 + $0x94] sm:$0xf] %v845_v23  ;;  %v911_v34 = vpack.c.bf16 %v4106_v29, %v909_v30  ;;  %v933_v35 = vpack.c.bf16 %v4106_v29, %v931_v31  ;;  %v953_v36 = vsel %vm29_vm0, %v947_v20, %v4125_v1  ;;  %v991_v41 = vunpack.c.l.bf16 %v3950_v26 }
  0x25   :  { %v975_v37 = vsel %vm29_vm0, %v969_v21, %v4125_v1  ;;  %869 = vst [vmem:[#allocation7 + $0x98] sm:$0xf] %v867_v27  ;;  %891 = vst [vmem:[#allocation7 + $0x9c] sm:$0xf] %v889_v28  ;;  %v955_v39 = vpack.c.bf16 %v4106_v29, %v953_v36  ;;  %v1013_v42 = vunpack.c.h.bf16 %v3950_v26  ;;  %v1035_v43 = vunpack.c.l.bf16 %v3952_v32  ;;  %v3966_v21 = vld [vmem:[%s5090_s0 + $0xf0] sm:$0xff]   ;;  %v3968_v26 = vld [vmem:[%s5090_s0 + $0xf8] sm:$0xff]  }
  0x26   :  { %v977_v40 = vpack.c.bf16 %v4106_v29, %v975_v37  ;;  %913 = vst [vmem:[#allocation7 + $0xa0] sm:$0xf] %v911_v34  ;;  %935 = vst [vmem:[#allocation7 + $0xa4] sm:$0xf] %v933_v35  ;;  %v1057_v44 = vunpack.c.h.bf16 %v3952_v32  ;;  %v1079_v45 = vunpack.c.l.bf16 %v3954_v33  ;;  %v1101_v46 = vunpack.c.h.bf16 %v3954_v33  ;;  %v3970_v27 = vld [vmem:[%s5090_s0 + $0x100] sm:$0xff]   ;;  %v3972_v33 = vld [vmem:[%s5090_s0 + $0x108] sm:$0xff]  }
  0x27   :  { %957 = vst [vmem:[#allocation7 + $0xa8] sm:$0xf] %v955_v39  ;;  %v997_v47 = vsel %vm29_vm0, %v991_v41, %v4125_v1  ;;  %v1019_v48 = vsel %vm29_vm0, %v1013_v42, %v4125_v1  ;;  %v1123_v49 = vunpack.c.l.bf16 %v3956_v38  ;;  %v1145_v50 = vunpack.c.h.bf16 %v3956_v38  ;;  %v3214_v13 = vld [vmem:[#allocation7 + $0x84] sm:$0xf] }
  0x28   :  { %979 = vst [vmem:[#allocation7 + $0xac] sm:$0xf] %v977_v40  ;;  %v999_v51 = vpack.c.bf16 %v4106_v29, %v997_v47  ;;  %v1021_v52 = vpack.c.bf16 %v4106_v29, %v1019_v48  ;;  %v1041_v53 = vsel %vm29_vm0, %v1035_v43, %v4125_v1  ;;  %v1063_v54 = vsel %vm29_vm0, %v1057_v44, %v4125_v1 }
  0x29   :  { %v1043_v56 = vpack.c.bf16 %v4106_v29, %v1041_v53  ;;  %v1065_v57 = vpack.c.bf16 %v4106_v29, %v1063_v54  ;;  %v1085_v58 = vsel %vm29_vm0, %v1079_v45, %v4125_v1  ;;  %v1107_v59 = vsel %vm29_vm0, %v1101_v46, %v4125_v1 }
  0x2a   :  { %1001 = vst [vmem:[#allocation7 + $0xb0] sm:$0xf] %v999_v51  ;;  %1023 = vst [vmem:[#allocation7 + $0xb4] sm:$0xf] %v1021_v52  ;;  %v1087_v62 = vpack.c.bf16 %v4106_v29, %v1085_v58  ;;  %v1109_v63 = vpack.c.bf16 %v4106_v29, %v1107_v59  ;;  %v1129_v0 = vsel %vm29_vm0, %v1123_v49, %v4125_v1  ;;  %v1167_v6 = vunpack.c.l.bf16 %v3958_v55 }
  0x2b   :  { %v1151_v2 = vsel %vm29_vm0, %v1145_v50, %v4125_v1  ;;  %1045 = vst [vmem:[#allocation7 + $0xb8] sm:$0xf] %v1043_v56  ;;  %1067 = vst [vmem:[#allocation7 + $0xbc] sm:$0xf] %v1065_v57  ;;  %v1131_v4 = vpack.c.bf16 %v4106_v29, %v1129_v0  ;;  %v1189_v7 = vunpack.c.h.bf16 %v3958_v55  ;;  %v1211_v8 = vunpack.c.l.bf16 %v3960_v60  ;;  %v3974_v50 = vld [vmem:[%s5090_s0 + $0x110] sm:$0xff]   ;;  %v3976_v55 = vld [vmem:[%s5090_s0 + $0x118] sm:$0xff]  }
  0x2c   :  { %v1153_v5 = vpack.c.bf16 %v4106_v29, %v1151_v2  ;;  %1089 = vst [vmem:[#allocation7 + $0xc0] sm:$0xf] %v1087_v62  ;;  %1111 = vst [vmem:[#allocation7 + $0xc4] sm:$0xf] %v1109_v63  ;;  %v1233_v9 = vunpack.c.h.bf16 %v3960_v60  ;;  %v1255_v10 = vunpack.c.l.bf16 %v3962_v61  ;;  %v1277_v11 = vunpack.c.h.bf16 %v3962_v61  ;;  %v3978_v56 = vld [vmem:[%s5090_s0 + $0x120] sm:$0xff]   ;;  %v3980_v61 = vld [vmem:[%s5090_s0 + $0x128] sm:$0xff]  }
  0x2d   :  { %1133 = vst [vmem:[#allocation7 + $0xc8] sm:$0xf] %v1131_v4  ;;  %v1173_v12 = vsel %vm29_vm0, %v1167_v6, %v4125_v1  ;;  %v1195_v14 = vsel %vm29_vm0, %v1189_v7, %v4125_v1  ;;  %v1299_v15 = vunpack.c.l.bf16 %v3964_v3  ;;  %v1321_v16 = vunpack.c.h.bf16 %v3964_v3 }
  0x2e   :  { %1155 = vst [vmem:[#allocation7 + $0xcc] sm:$0xf] %v1153_v5  ;;  %v1175_v17 = vpack.c.bf16 %v4106_v29, %v1173_v12  ;;  %v1197_v18 = vpack.c.bf16 %v4106_v29, %v1195_v14  ;;  %v1217_v19 = vsel %vm29_vm0, %v1211_v8, %v4125_v1  ;;  %v1239_v20 = vsel %vm29_vm0, %v1233_v9, %v4125_v1 }
  0x2f   :  { %v1219_v22 = vpack.c.bf16 %v4106_v29, %v1217_v19  ;;  %v1241_v23 = vpack.c.bf16 %v4106_v29, %v1239_v20  ;;  %v1261_v24 = vsel %vm29_vm0, %v1255_v10, %v4125_v1  ;;  %v1283_v25 = vsel %vm29_vm0, %v1277_v11, %v4125_v1 }
  0x30   :  { %1177 = vst [vmem:[#allocation7 + $0xd0] sm:$0xf] %v1175_v17  ;;  %1199 = vst [vmem:[#allocation7 + $0xd4] sm:$0xf] %v1197_v18  ;;  %v1263_v28 = vpack.c.bf16 %v4106_v29, %v1261_v24  ;;  %v1285_v30 = vpack.c.bf16 %v4106_v29, %v1283_v25  ;;  %v1305_v31 = vsel %vm29_vm0, %v1299_v15, %v4125_v1  ;;  %v1343_v36 = vunpack.c.l.bf16 %v3966_v21 }
  0x31   :  { %v1327_v32 = vsel %vm29_vm0, %v1321_v16, %v4125_v1  ;;  %1221 = vst [vmem:[#allocation7 + $0xd8] sm:$0xf] %v1219_v22  ;;  %1243 = vst [vmem:[#allocation7 + $0xdc] sm:$0xf] %v1241_v23  ;;  %v1307_v34 = vpack.c.bf16 %v4106_v29, %v1305_v31  ;;  %v1365_v37 = vunpack.c.h.bf16 %v3966_v21  ;;  %v1387_v38 = vunpack.c.l.bf16 %v3968_v26  ;;  %v3982_v16 = vld [vmem:[%s5090_s0 + $0x130] sm:$0xff]   ;;  %v3984_v21 = vld [vmem:[%s5090_s0 + $0x138] sm:$0xff]  }
  0x32   :  { %v1329_v35 = vpack.c.bf16 %v4106_v29, %v1327_v32  ;;  %1265 = vst [vmem:[#allocation7 + $0xe0] sm:$0xf] %v1263_v28  ;;  %1287 = vst [vmem:[#allocation7 + $0xe4] sm:$0xf] %v1285_v30  ;;  %v1409_v39 = vunpack.c.h.bf16 %v3968_v26  ;;  %v1431_v40 = vunpack.c.l.bf16 %v3970_v27  ;;  %v1453_v41 = vunpack.c.h.bf16 %v3970_v27  ;;  %v3986_v22 = vld [vmem:[%s5090_s0 + $0x140] sm:$0xff]   ;;  %v3988_v27 = vld [vmem:[%s5090_s0 + $0x148] sm:$0xff]  }
  0x33   :  { %1309 = vst [vmem:[#allocation7 + $0xe8] sm:$0xf] %v1307_v34  ;;  %v1349_v42 = vsel %vm29_vm0, %v1343_v36, %v4125_v1  ;;  %v1371_v43 = vsel %vm29_vm0, %v1365_v37, %v4125_v1  ;;  %v1475_v44 = vunpack.c.l.bf16 %v3972_v33  ;;  %v1497_v45 = vunpack.c.h.bf16 %v3972_v33 }
  0x34   :  { %1331 = vst [vmem:[#allocation7 + $0xec] sm:$0xf] %v1329_v35  ;;  %v1351_v46 = vpack.c.bf16 %v4106_v29, %v1349_v42  ;;  %v1373_v47 = vpack.c.bf16 %v4106_v29, %v1371_v43  ;;  %v1393_v48 = vsel %vm29_vm0, %v1387_v38, %v4125_v1  ;;  %v1415_v49 = vsel %vm29_vm0, %v1409_v39, %v4125_v1 }
  0x35   :  { %v1395_v51 = vpack.c.bf16 %v4106_v29, %v1393_v48  ;;  %v1417_v52 = vpack.c.bf16 %v4106_v29, %v1415_v49  ;;  %v1437_v53 = vsel %vm29_vm0, %v1431_v40, %v4125_v1  ;;  %v1459_v54 = vsel %vm29_vm0, %v1453_v41, %v4125_v1 }
  0x36   :  { %1353 = vst [vmem:[#allocation7 + $0xf0] sm:$0xf] %v1351_v46  ;;  %1375 = vst [vmem:[#allocation7 + $0xf4] sm:$0xf] %v1373_v47  ;;  %v1439_v57 = vpack.c.bf16 %v4106_v29, %v1437_v53  ;;  %v1461_v58 = vpack.c.bf16 %v4106_v29, %v1459_v54  ;;  %v1481_v59 = vsel %vm29_vm0, %v1475_v44, %v4125_v1  ;;  %v1519_v0 = vunpack.c.l.bf16 %v3974_v50 }
  0x37   :  { %v1503_v60 = vsel %vm29_vm0, %v1497_v45, %v4125_v1  ;;  %1397 = vst [vmem:[#allocation7 + $0xf8] sm:$0xf] %v1395_v51  ;;  %1419 = vst [vmem:[#allocation7 + $0xfc] sm:$0xf] %v1417_v52  ;;  %v1483_v62 = vpack.c.bf16 %v4106_v29, %v1481_v59  ;;  %v1541_v2 = vunpack.c.h.bf16 %v3974_v50  ;;  %v1563_v3 = vunpack.c.l.bf16 %v3976_v55  ;;  %v3990_v45 = vld [vmem:[%s5090_s0 + $0x150] sm:$0xff]   ;;  %v3992_v50 = vld [vmem:[%s5090_s0 + $0x158] sm:$0xff]  }
  0x38   :  { %v1505_v63 = vpack.c.bf16 %v4106_v29, %v1503_v60  ;;  %1441 = vst [vmem:[#allocation7 + $0x100] sm:$0xf] %v1439_v57  ;;  %1463 = vst [vmem:[#allocation7 + $0x104] sm:$0xf] %v1461_v58  ;;  %v1585_v4 = vunpack.c.h.bf16 %v3976_v55  ;;  %v1607_v5 = vunpack.c.l.bf16 %v3978_v56  ;;  %v1629_v6 = vunpack.c.h.bf16 %v3978_v56  ;;  %v3994_v51 = vld [vmem:[%s5090_s0 + $0x160] sm:$0xff]   ;;  %v3996_v56 = vld [vmem:[%s5090_s0 + $0x168] sm:$0xff]  }
  0x39   :  { %1485 = vst [vmem:[#allocation7 + $0x108] sm:$0xf] %v1483_v62  ;;  %v1525_v7 = vsel %vm29_vm0, %v1519_v0, %v4125_v1  ;;  %v1547_v8 = vsel %vm29_vm0, %v1541_v2, %v4125_v1  ;;  %v1651_v9 = vunpack.c.l.bf16 %v3980_v61  ;;  %v1673_v10 = vunpack.c.h.bf16 %v3980_v61 }
  0x3a   :  { %1507 = vst [vmem:[#allocation7 + $0x10c] sm:$0xf] %v1505_v63  ;;  %v1527_v11 = vpack.c.bf16 %v4106_v29, %v1525_v7  ;;  %v1549_v12 = vpack.c.bf16 %v4106_v29, %v1547_v8  ;;  %v1569_v14 = vsel %vm29_vm0, %v1563_v3, %v4125_v1  ;;  %v1591_v15 = vsel %vm29_vm0, %v1585_v4, %v4125_v1 }
  0x3b   :  { %v1571_v17 = vpack.c.bf16 %v4106_v29, %v1569_v14  ;;  %v1593_v18 = vpack.c.bf16 %v4106_v29, %v1591_v15  ;;  %v1613_v19 = vsel %vm29_vm0, %v1607_v5, %v4125_v1  ;;  %v1635_v20 = vsel %vm29_vm0, %v1629_v6, %v4125_v1 }
  0x3c   :  { %1529 = vst [vmem:[#allocation7 + $0x110] sm:$0xf] %v1527_v11  ;;  %1551 = vst [vmem:[#allocation7 + $0x114] sm:$0xf] %v1549_v12  ;;  %v1615_v23 = vpack.c.bf16 %v4106_v29, %v1613_v19  ;;  %v1637_v24 = vpack.c.bf16 %v4106_v29, %v1635_v20  ;;  %v1657_v25 = vsel %vm29_vm0, %v1651_v9, %v4125_v1  ;;  %v1695_v31 = vunpack.c.l.bf16 %v3982_v16 }
  0x3d   :  { %v1679_v26 = vsel %vm29_vm0, %v1673_v10, %v4125_v1  ;;  %1573 = vst [vmem:[#allocation7 + $0x118] sm:$0xf] %v1571_v17  ;;  %1595 = vst [vmem:[#allocation7 + $0x11c] sm:$0xf] %v1593_v18  ;;  %v1659_v28 = vpack.c.bf16 %v4106_v29, %v1657_v25  ;;  %v1717_v32 = vunpack.c.h.bf16 %v3982_v16  ;;  %v1739_v33 = vunpack.c.l.bf16 %v3984_v21  ;;  %v3998_v10 = vld [vmem:[%s5090_s0 + $0x170] sm:$0xff]   ;;  %v4000_v16 = vld [vmem:[%s5090_s0 + $0x178] sm:$0xff]  }
  0x3e   :  { %v1681_v30 = vpack.c.bf16 %v4106_v29, %v1679_v26  ;;  %1617 = vst [vmem:[#allocation7 + $0x120] sm:$0xf] %v1615_v23  ;;  %1639 = vst [vmem:[#allocation7 + $0x124] sm:$0xf] %v1637_v24  ;;  %v1761_v34 = vunpack.c.h.bf16 %v3984_v21  ;;  %v1783_v35 = vunpack.c.l.bf16 %v3986_v22  ;;  %v1805_v36 = vunpack.c.h.bf16 %v3986_v22  ;;  %v4002_v17 = vld [vmem:[%s5090_s0 + $0x180] sm:$0xff]   ;;  %v4004_v22 = vld [vmem:[%s5090_s0 + $0x188] sm:$0xff]  }
  0x3f   :  { %1661 = vst [vmem:[#allocation7 + $0x128] sm:$0xf] %v1659_v28  ;;  %v1701_v37 = vsel %vm29_vm0, %v1695_v31, %v4125_v1  ;;  %v1723_v38 = vsel %vm29_vm0, %v1717_v32, %v4125_v1  ;;  %v1827_v39 = vunpack.c.l.bf16 %v3988_v27  ;;  %v1849_v40 = vunpack.c.h.bf16 %v3988_v27 }
  0x40   :  { %1683 = vst [vmem:[#allocation7 + $0x12c] sm:$0xf] %v1681_v30  ;;  %v1703_v41 = vpack.c.bf16 %v4106_v29, %v1701_v37  ;;  %v1725_v42 = vpack.c.bf16 %v4106_v29, %v1723_v38  ;;  %v1745_v43 = vsel %vm29_vm0, %v1739_v33, %v4125_v1  ;;  %v1767_v44 = vsel %vm29_vm0, %v1761_v34, %v4125_v1 }
  0x41   :  { %v1747_v46 = vpack.c.bf16 %v4106_v29, %v1745_v43  ;;  %v1769_v47 = vpack.c.bf16 %v4106_v29, %v1767_v44  ;;  %v1789_v48 = vsel %vm29_vm0, %v1783_v35, %v4125_v1  ;;  %v1811_v49 = vsel %vm29_vm0, %v1805_v36, %v4125_v1 }
  0x42   :  { %1705 = vst [vmem:[#allocation7 + $0x130] sm:$0xf] %v1703_v41  ;;  %1727 = vst [vmem:[#allocation7 + $0x134] sm:$0xf] %v1725_v42  ;;  %v1791_v52 = vpack.c.bf16 %v4106_v29, %v1789_v48  ;;  %v1813_v53 = vpack.c.bf16 %v4106_v29, %v1811_v49  ;;  %v1833_v54 = vsel %vm29_vm0, %v1827_v39, %v4125_v1  ;;  %v1871_v59 = vunpack.c.l.bf16 %v3990_v45 }
  0x43   :  { %v1855_v55 = vsel %vm29_vm0, %v1849_v40, %v4125_v1  ;;  %1749 = vst [vmem:[#allocation7 + $0x138] sm:$0xf] %v1747_v46  ;;  %1771 = vst [vmem:[#allocation7 + $0x13c] sm:$0xf] %v1769_v47  ;;  %v1835_v57 = vpack.c.bf16 %v4106_v29, %v1833_v54  ;;  %v1893_v60 = vunpack.c.h.bf16 %v3990_v45  ;;  %v1915_v61 = vunpack.c.l.bf16 %v3992_v50  ;;  %v4006_v40 = vld [vmem:[%s5090_s0 + $0x190] sm:$0xff]   ;;  %v4008_v45 = vld [vmem:[%s5090_s0 + $0x198] sm:$0xff]  }
  0x44   :  { %v1857_v58 = vpack.c.bf16 %v4106_v29, %v1855_v55  ;;  %1793 = vst [vmem:[#allocation7 + $0x140] sm:$0xf] %v1791_v52  ;;  %1815 = vst [vmem:[#allocation7 + $0x144] sm:$0xf] %v1813_v53  ;;  %v1937_v62 = vunpack.c.h.bf16 %v3992_v50  ;;  %v1959_v63 = vunpack.c.l.bf16 %v3994_v51  ;;  %v1981_v0 = vunpack.c.h.bf16 %v3994_v51  ;;  %v4010_v46 = vld [vmem:[%s5090_s0 + $0x1a0] sm:$0xff]   ;;  %v4012_v51 = vld [vmem:[%s5090_s0 + $0x1a8] sm:$0xff]  }
  0x45   :  { %1837 = vst [vmem:[#allocation7 + $0x148] sm:$0xf] %v1835_v57  ;;  %v1877_v2 = vsel %vm29_vm0, %v1871_v59, %v4125_v1  ;;  %v1899_v3 = vsel %vm29_vm0, %v1893_v60, %v4125_v1  ;;  %v2003_v4 = vunpack.c.l.bf16 %v3996_v56  ;;  %v2025_v5 = vunpack.c.h.bf16 %v3996_v56 }
  0x46   :  { %1859 = vst [vmem:[#allocation7 + $0x14c] sm:$0xf] %v1857_v58  ;;  %v1879_v6 = vpack.c.bf16 %v4106_v29, %v1877_v2  ;;  %v1901_v7 = vpack.c.bf16 %v4106_v29, %v1899_v3  ;;  %v1921_v8 = vsel %vm29_vm0, %v1915_v61, %v4125_v1  ;;  %v1943_v9 = vsel %vm29_vm0, %v1937_v62, %v4125_v1 }
  0x47   :  { %v1923_v11 = vpack.c.bf16 %v4106_v29, %v1921_v8  ;;  %v1945_v12 = vpack.c.bf16 %v4106_v29, %v1943_v9  ;;  %v1965_v14 = vsel %vm29_vm0, %v1959_v63, %v4125_v1  ;;  %v1987_v15 = vsel %vm29_vm0, %v1981_v0, %v4125_v1 }
  0x48   :  { %1881 = vst [vmem:[#allocation7 + $0x150] sm:$0xf] %v1879_v6  ;;  %1903 = vst [vmem:[#allocation7 + $0x154] sm:$0xf] %v1901_v7  ;;  %v1967_v18 = vpack.c.bf16 %v4106_v29, %v1965_v14  ;;  %v1989_v19 = vpack.c.bf16 %v4106_v29, %v1987_v15  ;;  %v2009_v20 = vsel %vm29_vm0, %v2003_v4, %v4125_v1  ;;  %v2047_v25 = vunpack.c.l.bf16 %v3998_v10 }
  0x49   :  { %v2031_v21 = vsel %vm29_vm0, %v2025_v5, %v4125_v1  ;;  %1925 = vst [vmem:[#allocation7 + $0x158] sm:$0xf] %v1923_v11  ;;  %1947 = vst [vmem:[#allocation7 + $0x15c] sm:$0xf] %v1945_v12  ;;  %v2011_v23 = vpack.c.bf16 %v4106_v29, %v2009_v20  ;;  %v2069_v26 = vunpack.c.h.bf16 %v3998_v10  ;;  %v2091_v27 = vunpack.c.l.bf16 %v4000_v16  ;;  %v4014_v5 = vld [vmem:[%s5090_s0 + $0x1b0] sm:$0xff]   ;;  %v4016_v10 = vld [vmem:[%s5090_s0 + $0x1b8] sm:$0xff]  }
  0x4a   :  { %v2033_v24 = vpack.c.bf16 %v4106_v29, %v2031_v21  ;;  %1969 = vst [vmem:[#allocation7 + $0x160] sm:$0xf] %v1967_v18  ;;  %1991 = vst [vmem:[#allocation7 + $0x164] sm:$0xf] %v1989_v19  ;;  %v2113_v28 = vunpack.c.h.bf16 %v4000_v16  ;;  %v2135_v30 = vunpack.c.l.bf16 %v4002_v17  ;;  %v2157_v31 = vunpack.c.h.bf16 %v4002_v17  ;;  %v4018_v11 = vld [vmem:[%s5090_s0 + $0x1c0] sm:$0xff]   ;;  %v4020_v17 = vld [vmem:[%s5090_s0 + $0x1c8] sm:$0xff]  }
  0x4b   :  { %2013 = vst [vmem:[#allocation7 + $0x168] sm:$0xf] %v2011_v23  ;;  %v2053_v32 = vsel %vm29_vm0, %v2047_v25, %v4125_v1  ;;  %v2075_v33 = vsel %vm29_vm0, %v2069_v26, %v4125_v1  ;;  %v2179_v34 = vunpack.c.l.bf16 %v4004_v22  ;;  %v2201_v35 = vunpack.c.h.bf16 %v4004_v22 }
  0x4c   :  { %2035 = vst [vmem:[#allocation7 + $0x16c] sm:$0xf] %v2033_v24  ;;  %v2055_v36 = vpack.c.bf16 %v4106_v29, %v2053_v32  ;;  %v2077_v37 = vpack.c.bf16 %v4106_v29, %v2075_v33  ;;  %v2097_v38 = vsel %vm29_vm0, %v2091_v27, %v4125_v1  ;;  %v2119_v39 = vsel %vm29_vm0, %v2113_v28, %v4125_v1 }
  0x4d   :  { %v2099_v41 = vpack.c.bf16 %v4106_v29, %v2097_v38  ;;  %v2121_v42 = vpack.c.bf16 %v4106_v29, %v2119_v39  ;;  %v2141_v43 = vsel %vm29_vm0, %v2135_v30, %v4125_v1  ;;  %v2163_v44 = vsel %vm29_vm0, %v2157_v31, %v4125_v1 }
  0x4e   :  { %2057 = vst [vmem:[#allocation7 + $0x170] sm:$0xf] %v2055_v36  ;;  %2079 = vst [vmem:[#allocation7 + $0x174] sm:$0xf] %v2077_v37  ;;  %v2143_v47 = vpack.c.bf16 %v4106_v29, %v2141_v43  ;;  %v2165_v48 = vpack.c.bf16 %v4106_v29, %v2163_v44  ;;  %v2185_v49 = vsel %vm29_vm0, %v2179_v34, %v4125_v1  ;;  %v2223_v54 = vunpack.c.l.bf16 %v4006_v40 }
  0x4f   :  { %v2207_v50 = vsel %vm29_vm0, %v2201_v35, %v4125_v1  ;;  %2101 = vst [vmem:[#allocation7 + $0x178] sm:$0xf] %v2099_v41  ;;  %2123 = vst [vmem:[#allocation7 + $0x17c] sm:$0xf] %v2121_v42  ;;  %v2187_v52 = vpack.c.bf16 %v4106_v29, %v2185_v49  ;;  %v2245_v55 = vunpack.c.h.bf16 %v4006_v40  ;;  %v2267_v56 = vunpack.c.l.bf16 %v4008_v45  ;;  %v4022_v35 = vld [vmem:[%s5090_s0 + $0x1d0] sm:$0xff]   ;;  %v4024_v40 = vld [vmem:[%s5090_s0 + $0x1d8] sm:$0xff]  }
  0x50   :  { %v2209_v53 = vpack.c.bf16 %v4106_v29, %v2207_v50  ;;  %2145 = vst [vmem:[#allocation7 + $0x180] sm:$0xf] %v2143_v47  ;;  %2167 = vst [vmem:[#allocation7 + $0x184] sm:$0xf] %v2165_v48  ;;  %v2289_v57 = vunpack.c.h.bf16 %v4008_v45  ;;  %v2311_v58 = vunpack.c.l.bf16 %v4010_v46  ;;  %v2333_v59 = vunpack.c.h.bf16 %v4010_v46  ;;  %v4026_v41 = vld [vmem:[%s5090_s0 + $0x1e0] sm:$0xff]   ;;  %v4028_v46 = vld [vmem:[%s5090_s0 + $0x1e8] sm:$0xff]  }
  0x51   :  { %2189 = vst [vmem:[#allocation7 + $0x188] sm:$0xf] %v2187_v52  ;;  %v2229_v60 = vsel %vm29_vm0, %v2223_v54, %v4125_v1  ;;  %v2251_v61 = vsel %vm29_vm0, %v2245_v55, %v4125_v1  ;;  %v2355_v62 = vunpack.c.l.bf16 %v4012_v51  ;;  %v2377_v63 = vunpack.c.h.bf16 %v4012_v51 }
  0x52   :  { %2211 = vst [vmem:[#allocation7 + $0x18c] sm:$0xf] %v2209_v53  ;;  %v2231_v0 = vpack.c.bf16 %v4106_v29, %v2229_v60  ;;  %v2253_v2 = vpack.c.bf16 %v4106_v29, %v2251_v61  ;;  %v2273_v3 = vsel %vm29_vm0, %v2267_v56, %v4125_v1  ;;  %v2295_v4 = vsel %vm29_vm0, %v2289_v57, %v4125_v1 }
  0x53   :  { %v2275_v6 = vpack.c.bf16 %v4106_v29, %v2273_v3  ;;  %v2297_v7 = vpack.c.bf16 %v4106_v29, %v2295_v4  ;;  %v2317_v8 = vsel %vm29_vm0, %v2311_v58, %v4125_v1  ;;  %v2339_v9 = vsel %vm29_vm0, %v2333_v59, %v4125_v1 }
  0x54   :  { %2233 = vst [vmem:[#allocation7 + $0x190] sm:$0xf] %v2231_v0  ;;  %2255 = vst [vmem:[#allocation7 + $0x194] sm:$0xf] %v2253_v2  ;;  %v2319_v12 = vpack.c.bf16 %v4106_v29, %v2317_v8  ;;  %v2341_v14 = vpack.c.bf16 %v4106_v29, %v2339_v9  ;;  %v2361_v15 = vsel %vm29_vm0, %v2355_v62, %v4125_v1  ;;  %v2399_v20 = vunpack.c.l.bf16 %v4014_v5 }
  0x55   :  { %v2383_v16 = vsel %vm29_vm0, %v2377_v63, %v4125_v1  ;;  %2277 = vst [vmem:[#allocation7 + $0x198] sm:$0xf] %v2275_v6  ;;  %2299 = vst [vmem:[#allocation7 + $0x19c] sm:$0xf] %v2297_v7  ;;  %v2363_v18 = vpack.c.bf16 %v4106_v29, %v2361_v15  ;;  %v2421_v21 = vunpack.c.h.bf16 %v4014_v5  ;;  %v2443_v22 = vunpack.c.l.bf16 %v4016_v10  ;;  %v4030_v63 = vld [vmem:[%s5090_s0 + $0x1f0] sm:$0xff]   ;;  %v4032_v5 = vld [vmem:[%s5090_s0 + $0x1f8] sm:$0xff]  }
  0x56   :  { %v2385_v19 = vpack.c.bf16 %v4106_v29, %v2383_v16  ;;  %2321 = vst [vmem:[#allocation7 + $0x1a0] sm:$0xf] %v2319_v12  ;;  %2343 = vst [vmem:[#allocation7 + $0x1a4] sm:$0xf] %v2341_v14  ;;  %v2465_v23 = vunpack.c.h.bf16 %v4016_v10  ;;  %v2487_v24 = vunpack.c.l.bf16 %v4018_v11  ;;  %v2509_v25 = vunpack.c.h.bf16 %v4018_v11  ;;  %v4034_v6 = vld [vmem:[%s5090_s0 + $0x200] sm:$0xff]   ;;  %v4036_v11 = vld [vmem:[%s5090_s0 + $0x208] sm:$0xff]  }
  0x57   :  { %2365 = vst [vmem:[#allocation7 + $0x1a8] sm:$0xf] %v2363_v18  ;;  %v2405_v26 = vsel %vm29_vm0, %v2399_v20, %v4125_v1  ;;  %v2427_v27 = vsel %vm29_vm0, %v2421_v21, %v4125_v1  ;;  %v2531_v28 = vunpack.c.l.bf16 %v4020_v17  ;;  %v2553_v30 = vunpack.c.h.bf16 %v4020_v17 }
  0x58   :  { %2387 = vst [vmem:[#allocation7 + $0x1ac] sm:$0xf] %v2385_v19  ;;  %v2407_v31 = vpack.c.bf16 %v4106_v29, %v2405_v26  ;;  %v2429_v32 = vpack.c.bf16 %v4106_v29, %v2427_v27  ;;  %v2449_v33 = vsel %vm29_vm0, %v2443_v22, %v4125_v1  ;;  %v2471_v34 = vsel %vm29_vm0, %v2465_v23, %v4125_v1 }
  0x59   :  { %v2451_v36 = vpack.c.bf16 %v4106_v29, %v2449_v33  ;;  %v2473_v37 = vpack.c.bf16 %v4106_v29, %v2471_v34  ;;  %v2493_v38 = vsel %vm29_vm0, %v2487_v24, %v4125_v1  ;;  %v2515_v39 = vsel %vm29_vm0, %v2509_v25, %v4125_v1 }
  0x5a   :  { %2409 = vst [vmem:[#allocation7 + $0x1b0] sm:$0xf] %v2407_v31  ;;  %2431 = vst [vmem:[#allocation7 + $0x1b4] sm:$0xf] %v2429_v32  ;;  %v2495_v42 = vpack.c.bf16 %v4106_v29, %v2493_v38  ;;  %v2517_v43 = vpack.c.bf16 %v4106_v29, %v2515_v39  ;;  %v2537_v44 = vsel %vm29_vm0, %v2531_v28, %v4125_v1  ;;  %v2575_v49 = vunpack.c.l.bf16 %v4022_v35 }
  0x5b   :  { %v2559_v45 = vsel %vm29_vm0, %v2553_v30, %v4125_v1  ;;  %2453 = vst [vmem:[#allocation7 + $0x1b8] sm:$0xf] %v2451_v36  ;;  %2475 = vst [vmem:[#allocation7 + $0x1bc] sm:$0xf] %v2473_v37  ;;  %v2539_v47 = vpack.c.bf16 %v4106_v29, %v2537_v44  ;;  %v2597_v50 = vunpack.c.h.bf16 %v4022_v35  ;;  %v2619_v51 = vunpack.c.l.bf16 %v4024_v40  ;;  %v4038_v30 = vld [vmem:[%s5090_s0 + $0x210] sm:$0xff]   ;;  %v4040_v35 = vld [vmem:[%s5090_s0 + $0x218] sm:$0xff]  }
  0x5c   :  { %v2561_v48 = vpack.c.bf16 %v4106_v29, %v2559_v45  ;;  %2497 = vst [vmem:[#allocation7 + $0x1c0] sm:$0xf] %v2495_v42  ;;  %2519 = vst [vmem:[#allocation7 + $0x1c4] sm:$0xf] %v2517_v43  ;;  %v2641_v52 = vunpack.c.h.bf16 %v4024_v40  ;;  %v2663_v53 = vunpack.c.l.bf16 %v4026_v41  ;;  %v2685_v54 = vunpack.c.h.bf16 %v4026_v41  ;;  %v4042_v36 = vld [vmem:[%s5090_s0 + $0x220] sm:$0xff]   ;;  %v4044_v41 = vld [vmem:[%s5090_s0 + $0x228] sm:$0xff]  }
  0x5d   :  { %2541 = vst [vmem:[#allocation7 + $0x1c8] sm:$0xf] %v2539_v47  ;;  %v2581_v55 = vsel %vm29_vm0, %v2575_v49, %v4125_v1  ;;  %v2603_v56 = vsel %vm29_vm0, %v2597_v50, %v4125_v1  ;;  %v2707_v57 = vunpack.c.l.bf16 %v4028_v46  ;;  %v2729_v58 = vunpack.c.h.bf16 %v4028_v46 }
  0x5e   :  { %2563 = vst [vmem:[#allocation7 + $0x1cc] sm:$0xf] %v2561_v48  ;;  %v2583_v59 = vpack.c.bf16 %v4106_v29, %v2581_v55  ;;  %v2605_v60 = vpack.c.bf16 %v4106_v29, %v2603_v56  ;;  %v2625_v61 = vsel %vm29_vm0, %v2619_v51, %v4125_v1  ;;  %v2647_v62 = vsel %vm29_vm0, %v2641_v52, %v4125_v1 }
  0x5f   :  { %v2627_v0 = vpack.c.bf16 %v4106_v29, %v2625_v61  ;;  %v2649_v2 = vpack.c.bf16 %v4106_v29, %v2647_v62  ;;  %v2669_v3 = vsel %vm29_vm0, %v2663_v53, %v4125_v1  ;;  %v2691_v4 = vsel %vm29_vm0, %v2685_v54, %v4125_v1 }
  0x60   :  { %2585 = vst [vmem:[#allocation7 + $0x1d0] sm:$0xf] %v2583_v59  ;;  %2607 = vst [vmem:[#allocation7 + $0x1d4] sm:$0xf] %v2605_v60  ;;  %v2671_v7 = vpack.c.bf16 %v4106_v29, %v2669_v3  ;;  %v2693_v8 = vpack.c.bf16 %v4106_v29, %v2691_v4  ;;  %v2713_v9 = vsel %vm29_vm0, %v2707_v57, %v4125_v1  ;;  %v2751_v15 = vunpack.c.l.bf16 %v4030_v63 }
  0x61   :  { %v2735_v10 = vsel %vm29_vm0, %v2729_v58, %v4125_v1  ;;  %2629 = vst [vmem:[#allocation7 + $0x1d8] sm:$0xf] %v2627_v0  ;;  %2651 = vst [vmem:[#allocation7 + $0x1dc] sm:$0xf] %v2649_v2  ;;  %v2715_v12 = vpack.c.bf16 %v4106_v29, %v2713_v9  ;;  %v2773_v16 = vunpack.c.h.bf16 %v4030_v63  ;;  %v2795_v17 = vunpack.c.l.bf16 %v4032_v5  ;;  %v4046_v58 = vld [vmem:[%s5090_s0 + $0x230] sm:$0xff]   ;;  %v4048_v63 = vld [vmem:[%s5090_s0 + $0x238] sm:$0xff]  }
  0x62   :  { %v2737_v14 = vpack.c.bf16 %v4106_v29, %v2735_v10  ;;  %2673 = vst [vmem:[#allocation7 + $0x1e0] sm:$0xf] %v2671_v7  ;;  %2695 = vst [vmem:[#allocation7 + $0x1e4] sm:$0xf] %v2693_v8  ;;  %v2817_v18 = vunpack.c.h.bf16 %v4032_v5  ;;  %v2839_v19 = vunpack.c.l.bf16 %v4034_v6  ;;  %v2861_v20 = vunpack.c.h.bf16 %v4034_v6  ;;  %v3181_v0 = vld [vmem:[#allocation7] sm:$0xf] }
  0x63   :  { %2717 = vst [vmem:[#allocation7 + $0x1e8] sm:$0xf] %v2715_v12  ;;  %v2757_v21 = vsel %vm29_vm0, %v2751_v15, %v4125_v1  ;;  %v2779_v22 = vsel %vm29_vm0, %v2773_v16, %v4125_v1  ;;  %v2883_v23 = vunpack.c.l.bf16 %v4036_v11  ;;  %v2905_v24 = vunpack.c.h.bf16 %v4036_v11  ;;  %v3197_v6 = vld [vmem:[#allocation7 + $0x40] sm:$0xf] }
  0x64   :  { %2739 = vst [vmem:[#allocation7 + $0x1ec] sm:$0xf] %v2737_v14  ;;  %v2759_v25 = vpack.c.bf16 %v4106_v29, %v2757_v21  ;;  %v2781_v26 = vpack.c.bf16 %v4106_v29, %v2779_v22  ;;  %v2801_v27 = vsel %vm29_vm0, %v2795_v17, %v4125_v1  ;;  %v2823_v28 = vsel %vm29_vm0, %v2817_v18, %v4125_v1  ;;  %v3213_v14 = vld [vmem:[#allocation7 + $0x80] sm:$0xf] }
  0x65   :  { %v2803_v31 = vpack.c.bf16 %v4106_v29, %v2801_v27  ;;  %v2825_v32 = vpack.c.bf16 %v4106_v29, %v2823_v28  ;;  %v2845_v33 = vsel %vm29_vm0, %v2839_v19, %v4125_v1  ;;  %v2867_v34 = vsel %vm29_vm0, %v2861_v20, %v4125_v1  ;;  %v3229_v18 = vld [vmem:[#allocation7 + $0xc0] sm:$0xf] }
  0x66   :  { %2761 = vst [vmem:[#allocation7 + $0x1f0] sm:$0xf] %v2759_v25  ;;  %2783 = vst [vmem:[#allocation7 + $0x1f4] sm:$0xf] %v2781_v26  ;;  %v2847_v37 = vpack.c.bf16 %v4106_v29, %v2845_v33  ;;  %v2869_v38 = vpack.c.bf16 %v4106_v29, %v2867_v34  ;;  %v2889_v39 = vsel %vm29_vm0, %v2883_v23, %v4125_v1  ;;  %v2927_v44 = vunpack.c.l.bf16 %v4038_v30  ;;  %v3245_v26 = vld [vmem:[#allocation7 + $0x100] sm:$0xf] }
  0x67   :  { %v2911_v40 = vsel %vm29_vm0, %v2905_v24, %v4125_v1  ;;  %2805 = vst [vmem:[#allocation7 + $0x1f8] sm:$0xf] %v2803_v31  ;;  %2827 = vst [vmem:[#allocation7 + $0x1fc] sm:$0xf] %v2825_v32  ;;  %v2891_v42 = vpack.c.bf16 %v4106_v29, %v2889_v39  ;;  %v2949_v45 = vunpack.c.h.bf16 %v4038_v30  ;;  %v2971_v46 = vunpack.c.l.bf16 %v4040_v35  ;;  %v3182_v31 = vld [vmem:[#allocation7 + $0x4] sm:$0xf] }
  0x68   :  { %v2913_v43 = vpack.c.bf16 %v4106_v29, %v2911_v40  ;;  %2849 = vst [vmem:[#allocation7 + $0x200] sm:$0xf] %v2847_v37  ;;  %2871 = vst [vmem:[#allocation7 + $0x204] sm:$0xf] %v2869_v38  ;;  %v2993_v47 = vunpack.c.h.bf16 %v4040_v35  ;;  %v3015_v48 = vunpack.c.l.bf16 %v4042_v36  ;;  %v3037_v49 = vunpack.c.h.bf16 %v4042_v36  ;;  %v3261_v32 = vld [vmem:[#allocation7 + $0x140] sm:$0xf] }
  0x69   :  { %2893 = vst [vmem:[#allocation7 + $0x208] sm:$0xf] %v2891_v42  ;;  %v2933_v50 = vsel %vm29_vm0, %v2927_v44, %v4125_v1  ;;  %v2955_v51 = vsel %vm29_vm0, %v2949_v45, %v4125_v1  ;;  %v3059_v52 = vunpack.c.l.bf16 %v4044_v41  ;;  %v3081_v53 = vunpack.c.h.bf16 %v4044_v41  ;;  %v3198_v34 = vld [vmem:[#allocation7 + $0x44] sm:$0xf]  ;;  %v3199_v37 = vld [vmem:[#allocation7 + $0x48] sm:$0xf] }
  0x6a   :  { %2915 = vst [vmem:[#allocation7 + $0x20c] sm:$0xf] %v2913_v43  ;;  %v2935_v54 = vpack.c.bf16 %v4106_v29, %v2933_v50  ;;  %v2957_v55 = vpack.c.bf16 %v4106_v29, %v2955_v51  ;;  %v2977_v56 = vsel %vm29_vm0, %v2971_v46, %v4125_v1  ;;  %v2999_v57 = vsel %vm29_vm0, %v2993_v47, %v4125_v1  ;;  %v3230_v35 = vld [vmem:[#allocation7 + $0xc4] sm:$0xf]  ;;  %v3215_v38 = vld [vmem:[#allocation7 + $0x88] sm:$0xf] }
  0x6b   :  { %v2979_v59 = vpack.c.bf16 %v4106_v29, %v2977_v56  ;;  %v3001_v60 = vpack.c.bf16 %v4106_v29, %v2999_v57  ;;  %v3021_v61 = vsel %vm29_vm0, %v3015_v48, %v4125_v1  ;;  %v3043_v62 = vsel %vm29_vm0, %v3037_v49, %v4125_v1  ;;  %v3246_v39 = vld [vmem:[#allocation7 + $0x104] sm:$0xf]  ;;  %v3277_v42 = vld [vmem:[#allocation7 + $0x180] sm:$0xf]  ;;  %v3231_v46 = vld [vmem:[#allocation7 + $0xc8] sm:$0xf] }
  0x6c   :  { %2937 = vst [vmem:[#allocation7 + $0x210] sm:$0xf] %v2935_v54  ;;  %2959 = vst [vmem:[#allocation7 + $0x214] sm:$0xf] %v2957_v55  ;;  %v3023_v2 = vpack.c.bf16 %v4106_v29, %v3021_v61  ;;  %v3045_v3 = vpack.c.bf16 %v4106_v29, %v3043_v62  ;;  %v3065_v4 = vsel %vm29_vm0, %v3059_v52, %v4125_v1  ;;  %v3103_v9 = vunpack.c.l.bf16 %v4046_v58  ;;  %v3262_v47 = vld [vmem:[#allocation7 + $0x144] sm:$0xf] }
  0x6d   :  { %v3087_v5 = vsel %vm29_vm0, %v3081_v53, %v4125_v1  ;;  %2981 = vst [vmem:[#allocation7 + $0x218] sm:$0xf] %v2979_v59  ;;  %3003 = vst [vmem:[#allocation7 + $0x21c] sm:$0xf] %v3001_v60  ;;  %v3067_v7 = vpack.c.bf16 %v4106_v29, %v3065_v4  ;;  %v3125_v10 = vunpack.c.h.bf16 %v4046_v58  ;;  %v3147_v11 = vunpack.c.l.bf16 %v4048_v63  ;;  %v3278_v48 = vld [vmem:[#allocation7 + $0x184] sm:$0xf] }
  0x6e   :  { %v3089_v8 = vpack.c.bf16 %v4106_v29, %v3087_v5  ;;  %3025 = vst [vmem:[#allocation7 + $0x220] sm:$0xf] %v3023_v2  ;;  %3047 = vst [vmem:[#allocation7 + $0x224] sm:$0xf] %v3045_v3  ;;  %v3169_v12 = vunpack.c.h.bf16 %v4048_v63  ;;  %v3328_v15 = vsel %vm3325_vm1, %v3181_v0, 4286644096  ;;  %v3109_v16 = vsel %vm29_vm0, %v3103_v9, %v4125_v1 }
  0x6f   :  { %3069 = vst [vmem:[#allocation7 + $0x228] sm:$0xf] %v3067_v7  ;;  %v3131_v17 = vsel %vm29_vm0, %v3125_v10, %v4125_v1  ;;  %v3331_v19 = vsel %vm3325_vm1, %v3197_v6, 4286644096  ;;  %v3111_v20 = vpack.c.bf16 %v4106_v29, %v3109_v16  ;;  %v3153_v22 = vsel %vm29_vm0, %v3147_v11, %v4125_v1  ;;  %v3184_v50 = vld [vmem:[#allocation7 + $0xc] sm:$0xf] }
  0x70   :  { %3091 = vst [vmem:[#allocation7 + $0x22c] sm:$0xf] %v3089_v8  ;;  %v3133_v21 = vpack.c.bf16 %v4106_v29, %v3131_v17  ;;  %v3175_v23 = vsel %vm29_vm0, %v3169_v12, %v4125_v1  ;;  %v3155_v24 = vpack.c.bf16 %v4106_v29, %v3153_v22  ;;  %v3333_v27 = vmax.bf16 %v3331_v19, %v3328_v15  ;;  %v3293_v51 = vld [vmem:[#allocation7 + $0x1c0] sm:$0xf]  ;;  %v3200_v55 = vld [vmem:[#allocation7 + $0x4c] sm:$0xf] }
  0x71   :  { %v3177_v25 = vpack.c.bf16 %v4106_v29, %v3175_v23  ;;  %v3335_v28 = vsel %vm3325_vm1, %v3213_v14, 4286644096  ;;  %3113 = vst [vmem:[#allocation7 + $0x230] sm:$0xf] %v3111_v20  ;;  %v3339_v30 = vsel %vm3325_vm1, %v3229_v18, 4286644096 }
  0x72   :  { %3135 = vst [vmem:[#allocation7 + $0x234] sm:$0xf] %v3133_v21  ;;  %3157 = vst [vmem:[#allocation7 + $0x238] sm:$0xf] %v3155_v24  ;;  %v3337_v33 = vmax.bf16 %v3335_v28, %v3333_v27  ;;  %v3343_v1 = vsel %vm3325_vm1, %v3245_v26, 4286644096 }
  0x73   :  { %3179 = vst [vmem:[#allocation7 + $0x23c] sm:$0xf] %v3177_v25  ;;  %v3183_v29 = vld [vmem:[#allocation7 + $0x8] sm:$0xf]  ;;  %v3347_v40 = vsel %vm3325_vm1, %v3261_v32, 4286644096 }
  0x74   :  { %v3341_v36 = vmax.bf16 %v3339_v30, %v3337_v33  ;;  %v3363_v41 = vsel %vm3325_vm1, %v3182_v31, 4286644096  ;;  %v3366_v44 = vsel %vm3325_vm1, %v3198_v34, 4286644096  ;;  %v3370_v45 = vsel %vm3325_vm1, %v3214_v13, 4286644096 }
  0x75   :  { %v3368_v49 = vmax.bf16 %v3366_v44, %v3363_v41  ;;  %v3309_v52 = vld [vmem:[#allocation7 + $0x200] sm:$0xf]  ;;  %v3374_v54 = vsel %vm3325_vm1, %v3230_v35, 4286644096  ;;  %v3216_v56 = vld [vmem:[#allocation7 + $0x8c] sm:$0xf] }
  0x76   :  { %v3345_v43 = vmax.bf16 %v3343_v1, %v3341_v36  ;;  %v3247_v57 = vld [vmem:[#allocation7 + $0x108] sm:$0xf]  ;;  %v3294_v58 = vld [vmem:[#allocation7 + $0x1c4] sm:$0xf]  ;;  %v3351_v59 = vsel %vm3325_vm1, %v3277_v42, 4286644096 }
  0x77   :  { %v3372_v60 = vmax.bf16 %v3370_v45, %v3368_v49  ;;  %v3378_v61 = vsel %vm3325_vm1, %v3246_v39, 4286644096  ;;  %v3398_v62 = vsel %vm3325_vm1, %v3183_v29, 4286644096  ;;  %v3401_v63 = vsel %vm3325_vm1, %v3199_v37, 4286644096 }
  0x78   :  { %v3349_v53 = vmax.bf16 %v3347_v40, %v3345_v43  ;;  %v3405_v0 = vsel %vm3325_vm1, %v3215_v38, 4286644096  ;;  %v3232_v2 = vld [vmem:[#allocation7 + $0xcc] sm:$0xf]  ;;  %v3263_v3 = vld [vmem:[#allocation7 + $0x148] sm:$0xf]  ;;  %v3403_v8 = vmax.bf16 %v3401_v63, %v3398_v62 }
  0x79   :  { %v3310_v4 = vld [vmem:[#allocation7 + $0x204] sm:$0xf]  ;;  %v3355_v5 = vsel %vm3325_vm1, %v3293_v51, 4286644096  ;;  %v3359_v6 = vsel %vm3325_vm1, %v3309_v52, 4286644096  ;;  %v3376_v7 = vmax.bf16 %v3374_v54, %v3372_v60 }
  0x7a   :  { %v3248_v9 = vld [vmem:[#allocation7 + $0x10c] sm:$0xf]  ;;  %v3353_v10 = vmax.bf16 %v3351_v59, %v3349_v53  ;;  %v3382_v11 = vsel %vm3325_vm1, %v3262_v47, 4286644096  ;;  %v3386_v12 = vsel %vm3325_vm1, %v3278_v48, 4286644096  ;;  %v3407_v20 = vmax.bf16 %v3405_v0, %v3403_v8 }
  0x7b   :  { %v3409_v14 = vsel %vm3325_vm1, %v3231_v46, 4286644096  ;;  %v3185_v15 = vld [vmem:[#allocation7 + $0x10] sm:$0xf]  ;;  %v3279_v17 = vld [vmem:[#allocation7 + $0x188] sm:$0xf]  ;;  %v3380_v18 = vmax.bf16 %v3378_v61, %v3376_v7 }
  0x7c   :  { %v3201_v16 = vld [vmem:[#allocation7 + $0x50] sm:$0xf]  ;;  %v3390_v19 = vsel %vm3325_vm1, %v3294_v58, 4286644096  ;;  %v3433_v21 = vsel %vm3325_vm1, %v3184_v50, 4286644096  ;;  %v3411_v30 = vmax.bf16 %v3409_v14, %v3407_v20  ;;  %v3357_v32 = vmax.bf16 %v3355_v5, %v3353_v10 }
  0x7d   :  { %v3413_v22 = vsel %vm3325_vm1, %v3247_v57, 4286644096  ;;  %v3436_v23 = vsel %vm3325_vm1, %v3200_v55, 4286644096  ;;  %v3440_v24 = vsel %vm3325_vm1, %v3216_v56, 4286644096  ;;  %v3384_v27 = vmax.bf16 %v3382_v11, %v3380_v18 }
  0x7e   :  { %v3217_v25 = vld [vmem:[#allocation7 + $0x90] sm:$0xf]  ;;  %v3394_v28 = vsel %vm3325_vm1, %v3310_v4, 4286644096  ;;  %v3438_v31 = vmax.bf16 %v3436_v23, %v3433_v21  ;;  %v3417_v33 = vsel %vm3325_vm1, %v3263_v3, 4286644096  ;;  %v3415_v37 = vmax.bf16 %v3413_v22, %v3411_v30 }
  0x7f   :  { %v3233_v26 = vld [vmem:[#allocation7 + $0xd0] sm:$0xf]  ;;  %v3421_v34 = vsel %vm3325_vm1, %v3279_v17, 4286644096  ;;  %v3444_v13 = vsel %vm3325_vm1, %v3232_v2, 4286644096  ;;  %v3388_v29 = vmax.bf16 %v3386_v12, %v3384_v27  ;;  %v3361_v52 = vmax.bf16 %v3359_v6, %v3357_v32 }
  0x80   :  { %v3249_v1 = vld [vmem:[#allocation7 + $0x110] sm:$0xf]  ;;  %v3264_v35 = vld [vmem:[#allocation7 + $0x14c] sm:$0xf]  ;;  %v3295_v36 = vld [vmem:[#allocation7 + $0x1c8] sm:$0xf]  ;;  %v3442_v38 = vmax.bf16 %v3440_v24, %v3438_v31  ;;  %v3419_v49 = vmax.bf16 %v3417_v33, %v3415_v37 }
  0x81   :  { %v3448_v39 = vsel %vm3325_vm1, %v3248_v9, 4286644096  ;;  %v3186_v40 = vld [vmem:[#allocation7 + $0x14] sm:$0xf]  ;;  %v3468_v41 = vsel %vm3325_vm1, %v3185_v15, 4286644096  ;;  %v3392_v48 = vmax.bf16 %v3390_v19, %v3388_v29 }
  0x82   :  { %v3471_v42 = vsel %vm3325_vm1, %v3201_v16, 4286644096  ;;  %v3475_v43 = vsel %vm3325_vm1, %v3217_v25, 4286644096  ;;  %v3202_v44 = vld [vmem:[#allocation7 + $0x54] sm:$0xf]  ;;  %v3446_v50 = vmax.bf16 %v3444_v13, %v3442_v38  ;;  %v3423_v60 = vmax.bf16 %v3421_v34, %v3419_v49 }
  0x83   :  { %v3265_v45 = vld [vmem:[#allocation7 + $0x150] sm:$0xf]  ;;  %v3280_v46 = vld [vmem:[#allocation7 + $0x18c] sm:$0xf]  ;;  %v3473_v51 = vmax.bf16 %v3471_v42, %v3468_v41  ;;  %v3425_v53 = vsel %vm3325_vm1, %v3295_v36, 4286644096  ;;  %v3396_v59 = vmax.bf16 %v3394_v28, %v3392_v48 }
  0x84   :  { %v3296_v47 = vld [vmem:[#allocation7 + $0x1cc] sm:$0xf]  ;;  %v3452_v54 = vsel %vm3325_vm1, %v3264_v35, 4286644096  ;;  %v3479_v55 = vsel %vm3325_vm1, %v3233_v26, 4286644096  ;;  %v3450_v61 = vmax.bf16 %v3448_v39, %v3446_v50  ;;  %v3427_v11 = vmax.bf16 %v3425_v53, %v3423_v60 }
  0x85   :  { %v3218_v56 = vld [vmem:[#allocation7 + $0x94] sm:$0xf]  ;;  %v3311_v58 = vld [vmem:[#allocation7 + $0x208] sm:$0xf]  ;;  %v3477_v62 = vmax.bf16 %v3475_v43, %v3473_v51  ;;  %v3456_v63 = vsel %vm3325_vm1, %v3280_v46, 4286644096  ;;  %v4090_v15 = vcombine.low %v3361_v52, %v3396_v59 }
  0x86   :  { %v3234_v57 = vld [vmem:[#allocation7 + $0xd4] sm:$0xf]  ;;  %v3460_v0 = vsel %vm3325_vm1, %v3296_v47, 4286644096  ;;  %v3483_v2 = vsel %vm3325_vm1, %v3249_v1, 4286644096  ;;  %v3454_v6 = vmax.bf16 %v3452_v54, %v3450_v61 }
  0x87   :  { %v3187_v3 = vld [vmem:[#allocation7 + $0x18] sm:$0xf]  ;;  %v3312_v5 = vld [vmem:[#allocation7 + $0x20c] sm:$0xf]  ;;  %v3481_v7 = vmax.bf16 %v3479_v55, %v3477_v62  ;;  %v3487_v8 = vsel %vm3325_vm1, %v3265_v45, 4286644096  ;;  %4054 = vst [vmem:[%s5092_s2] sm:$0xff] %v4090_v15  }
  0x88   :  { %v3203_v4 = vld [vmem:[#allocation7 + $0x58] sm:$0xf]  ;;  %v3503_v9 = vsel %vm3325_vm1, %v3186_v40, 4286644096  ;;  %v3281_v10 = vld [vmem:[#allocation7 + $0x190] sm:$0xf]  ;;  %v3458_v19 = vmax.bf16 %v3456_v63, %v3454_v6 }
  0x89   :  { %v3506_v12 = vsel %vm3325_vm1, %v3202_v44, 4286644096  ;;  %v3510_v14 = vsel %vm3325_vm1, %v3218_v56, 4286644096  ;;  %v3219_v16 = vld [vmem:[#allocation7 + $0x98] sm:$0xf]  ;;  %v3485_v20 = vmax.bf16 %v3483_v2, %v3481_v7 }
  0x8a   :  { %v3250_v17 = vld [vmem:[#allocation7 + $0x114] sm:$0xf]  ;;  %v3429_v18 = vsel %vm3325_vm1, %v3311_v58, 4286644096  ;;  %v3508_v21 = vmax.bf16 %v3506_v12, %v3503_v9  ;;  %v3235_v22 = vld [vmem:[#allocation7 + $0xd8] sm:$0xf]  ;;  %v3462_v27 = vmax.bf16 %v3460_v0, %v3458_v19 }
  0x8b   :  { %v3464_v23 = vsel %vm3325_vm1, %v3312_v5, 4286644096  ;;  %v3514_v24 = vsel %vm3325_vm1, %v3234_v57, 4286644096  ;;  %v3266_v25 = vld [vmem:[#allocation7 + $0x154] sm:$0xf]  ;;  %v3489_v28 = vmax.bf16 %v3487_v8, %v3485_v20  ;;  %v3431_v33 = vmax.bf16 %v3429_v18, %v3427_v11 }
  0x8c   :  { %v3297_v26 = vld [vmem:[#allocation7 + $0x1d0] sm:$0xf]  ;;  %v3491_v30 = vsel %vm3325_vm1, %v3281_v10, 4286644096  ;;  %v3512_v31 = vmax.bf16 %v3510_v14, %v3508_v21  ;;  %v3188_v32 = vld [vmem:[#allocation7 + $0x1c] sm:$0xf]  ;;  %v3466_v39 = vmax.bf16 %v3464_v23, %v3462_v27 }
  0x8d   :  { %v3518_v34 = vsel %vm3325_vm1, %v3250_v17, 4286644096  ;;  %v3538_v13 = vsel %vm3325_vm1, %v3187_v3, 4286644096  ;;  %v3541_v1 = vsel %vm3325_vm1, %v3203_v4, 4286644096  ;;  %v3493_v42 = vmax.bf16 %v3491_v30, %v3489_v28 }
  0x8e   :  { %v3204_v35 = vld [vmem:[#allocation7 + $0x5c] sm:$0xf]  ;;  %v3251_v29 = vld [vmem:[#allocation7 + $0x118] sm:$0xf]  ;;  %v3282_v37 = vld [vmem:[#allocation7 + $0x194] sm:$0xf]  ;;  %v3516_v40 = vmax.bf16 %v3514_v24, %v3512_v31  ;;  %v3543_v41 = vmax.bf16 %v3541_v1, %v3538_v13  ;;  %v4091_v56 = vcombine.low %v3431_v33, %v3466_v39 }
  0x8f   :  { %v3220_v36 = vld [vmem:[#allocation7 + $0x9c] sm:$0xf]  ;;  %v3298_v38 = vld [vmem:[#allocation7 + $0x1d4] sm:$0xf]  ;;  %v3522_v43 = vsel %vm3325_vm1, %v3266_v25, 4286644096 }
  0x90   :  { %v3545_v44 = vsel %vm3325_vm1, %v3219_v16, 4286644096  ;;  %v3549_v45 = vsel %vm3325_vm1, %v3235_v22, 4286644096  ;;  %v3236_v46 = vld [vmem:[#allocation7 + $0xdc] sm:$0xf]  ;;  %v3520_v50 = vmax.bf16 %v3518_v34, %v3516_v40 }
  0x91   :  { %v3267_v47 = vld [vmem:[#allocation7 + $0x158] sm:$0xf]  ;;  %v3495_v49 = vsel %vm3325_vm1, %v3297_v26, 4286644096  ;;  %v3547_v51 = vmax.bf16 %v3545_v44, %v3543_v41  ;;  %v3252_v52 = vld [vmem:[#allocation7 + $0x11c] sm:$0xf] }
  0x92   :  { %v3283_v48 = vld [vmem:[#allocation7 + $0x198] sm:$0xf]  ;;  %v3313_v53 = vld [vmem:[#allocation7 + $0x210] sm:$0xf]  ;;  %v3526_v54 = vsel %vm3325_vm1, %v3282_v37, 4286644096  ;;  %v3524_v61 = vmax.bf16 %v3522_v43, %v3520_v50  ;;  %v3497_v2 = vmax.bf16 %v3495_v49, %v3493_v42 }
  0x93   :  { %v3553_v55 = vsel %vm3325_vm1, %v3251_v29, 4286644096  ;;  %v3189_v57 = vld [vmem:[#allocation7 + $0x20] sm:$0xf]  ;;  %v3314_v60 = vld [vmem:[#allocation7 + $0x214] sm:$0xf]  ;;  %v3551_v63 = vmax.bf16 %v3549_v45, %v3547_v51 }
  0x94   :  { %v3205_v58 = vld [vmem:[#allocation7 + $0x60] sm:$0xf]  ;;  %v3530_v62 = vsel %vm3325_vm1, %v3298_v38, 4286644096  ;;  %v3573_v0 = vsel %vm3325_vm1, %v3188_v32, 4286644096  ;;  %v3528_v9 = vmax.bf16 %v3526_v54, %v3524_v61 }
  0x95   :  { %v3221_v59 = vld [vmem:[#allocation7 + $0xa0] sm:$0xf]  ;;  %v3557_v3 = vsel %vm3325_vm1, %v3267_v47, 4286644096  ;;  %v3576_v4 = vsel %vm3325_vm1, %v3204_v35, 4286644096  ;;  %v3555_v10 = vmax.bf16 %v3553_v55, %v3551_v63 }
  0x96   :  { %v3580_v5 = vsel %vm3325_vm1, %v3220_v36, 4286644096  ;;  %4092 = vst [vmem:[%s5092_s2 + $0x8] sm:$0xff] %v4091_v56   ;;  %v3237_v6 = vld [vmem:[#allocation7 + $0xe0] sm:$0xf]  ;;  %v3578_v11 = vmax.bf16 %v3576_v4, %v3573_v0  ;;  %v3532_v19 = vmax.bf16 %v3530_v62, %v3528_v9 }
  0x97   :  { %v3268_v7 = vld [vmem:[#allocation7 + $0x15c] sm:$0xf]  ;;  %v3499_v8 = vsel %vm3325_vm1, %v3313_v53, 4286644096  ;;  %v3534_v12 = vsel %vm3325_vm1, %v3314_v60, 4286644096  ;;  %v3559_v20 = vmax.bf16 %v3557_v3, %v3555_v10 }
  0x98   :  { %v3561_v14 = vsel %vm3325_vm1, %v3283_v48, 4286644096  ;;  %v3584_v15 = vsel %vm3325_vm1, %v3236_v46, 4286644096  ;;  %v3190_v16 = vld [vmem:[#allocation7 + $0x24] sm:$0xf]  ;;  %v3582_v21 = vmax.bf16 %v3580_v5, %v3578_v11  ;;  %v3501_v24 = vmax.bf16 %v3499_v8, %v3497_v2 }
  0x99   :  { %v3299_v17 = vld [vmem:[#allocation7 + $0x1d8] sm:$0xf]  ;;  %v3588_v22 = vsel %vm3325_vm1, %v3252_v52, 4286644096  ;;  %v3206_v23 = vld [vmem:[#allocation7 + $0x64] sm:$0xf]  ;;  %v3536_v33 = vmax.bf16 %v3534_v12, %v3532_v19  ;;  %v3563_v41 = vmax.bf16 %v3561_v14, %v3559_v20 }
  0x9a   :  { %v3315_v18 = vld [vmem:[#allocation7 + $0x218] sm:$0xf]  ;;  %v3608_v25 = vsel %vm3325_vm1, %v3189_v57, 4286644096  ;;  %v3611_v26 = vsel %vm3325_vm1, %v3205_v58, 4286644096  ;;  %v3586_v34 = vmax.bf16 %v3584_v15, %v3582_v21 }
  0x9b   :  { %v3615_v27 = vsel %vm3325_vm1, %v3221_v59, 4286644096  ;;  %v3222_v28 = vld [vmem:[#allocation7 + $0xa4] sm:$0xf]  ;;  %v3253_v30 = vld [vmem:[#allocation7 + $0x120] sm:$0xf]  ;;  %v3613_v13 = vmax.bf16 %v3611_v26, %v3608_v25  ;;  %v4093_v50 = vcombine.low %v3501_v24, %v3536_v33 }
  0x9c   :  { %v3284_v31 = vld [vmem:[#allocation7 + $0x19c] sm:$0xf]  ;;  %v3238_v1 = vld [vmem:[#allocation7 + $0xe4] sm:$0xf]  ;;  %v3565_v35 = vsel %vm3325_vm1, %v3299_v17, 4286644096  ;;  %v3590_v43 = vmax.bf16 %v3588_v22, %v3586_v34 }
  0x9d   :  { %v3300_v32 = vld [vmem:[#allocation7 + $0x1dc] sm:$0xf]  ;;  %v3592_v36 = vsel %vm3325_vm1, %v3268_v7, 4286644096  ;;  %v3619_v29 = vsel %vm3325_vm1, %v3237_v6, 4286644096  ;;  %v3617_v44 = vmax.bf16 %v3615_v27, %v3613_v13  ;;  %v3567_v2 = vmax.bf16 %v3565_v35, %v3563_v41 }
  0x9e   :  { %v3191_v37 = vld [vmem:[#allocation7 + $0x28] sm:$0xf]  ;;  %v3254_v38 = vld [vmem:[#allocation7 + $0x124] sm:$0xf]  ;;  %v3269_v39 = vld [vmem:[#allocation7 + $0x160] sm:$0xf]  ;;  %v3594_v52 = vmax.bf16 %v3592_v36, %v3590_v43 }
  0x9f   :  { %v3316_v40 = vld [vmem:[#allocation7 + $0x21c] sm:$0xf]  ;;  %v3569_v42 = vsel %vm3325_vm1, %v3315_v18, 4286644096  ;;  %v3207_v45 = vld [vmem:[#allocation7 + $0x68] sm:$0xf]  ;;  %v3621_v54 = vmax.bf16 %v3619_v29, %v3617_v44 }
  0xa0   :  { %v3223_v46 = vld [vmem:[#allocation7 + $0xa8] sm:$0xf]  ;;  %v3596_v47 = vsel %vm3325_vm1, %v3284_v31, 4286644096  ;;  %v3623_v48 = vsel %vm3325_vm1, %v3253_v30, 4286644096  ;;  %v3571_v27 = vmax.bf16 %v3569_v42, %v3567_v2 }
  0xa1   :  { %v3643_v49 = vsel %vm3325_vm1, %v3190_v16, 4286644096  ;;  %v3285_v51 = vld [vmem:[#allocation7 + $0x1a0] sm:$0xf]  ;;  %v3600_v53 = vsel %vm3325_vm1, %v3300_v32, 4286644096  ;;  %v3598_v3 = vmax.bf16 %v3596_v47, %v3594_v52  ;;  %v3625_v4 = vmax.bf16 %v3623_v48, %v3621_v54 }
  0xa2   :  { %v3646_v55 = vsel %vm3325_vm1, %v3206_v23, 4286644096  ;;  %v3239_v56 = vld [vmem:[#allocation7 + $0xe8] sm:$0xf]  ;;  %v3270_v57 = vld [vmem:[#allocation7 + $0x164] sm:$0xf] }
  0xa3   :  { %v3604_v58 = vsel %vm3325_vm1, %v3316_v40, 4286644096  ;;  %v3627_v59 = vsel %vm3325_vm1, %v3269_v39, 4286644096  ;;  %v3648_v60 = vmax.bf16 %v3646_v55, %v3643_v49  ;;  %v3650_v61 = vsel %vm3325_vm1, %v3222_v28, 4286644096 }
  0xa4   :  { %4094 = vst [vmem:[%s5092_s2 + $0x10] sm:$0xff] %v4093_v50   ;;  %v3255_v62 = vld [vmem:[#allocation7 + $0x128] sm:$0xf]  ;;  %v3301_v63 = vld [vmem:[#allocation7 + $0x1e0] sm:$0xf]  ;;  %v3602_v15 = vmax.bf16 %v3600_v53, %v3598_v3  ;;  %v3629_v16 = vmax.bf16 %v3627_v59, %v3625_v4 }
  0xa5   :  { %v3317_v0 = vld [vmem:[#allocation7 + $0x220] sm:$0xf]  ;;  %v3654_v5 = vsel %vm3325_vm1, %v3238_v1, 4286644096  ;;  %v3192_v6 = vld [vmem:[#allocation7 + $0x2c] sm:$0xf]  ;;  %v3652_v10 = vmax.bf16 %v3650_v61, %v3648_v60 }
  0xa6   :  { %v3208_v7 = vld [vmem:[#allocation7 + $0x6c] sm:$0xf]  ;;  %v3631_v9 = vsel %vm3325_vm1, %v3285_v51, 4286644096  ;;  %v3658_v11 = vsel %vm3325_vm1, %v3254_v38, 4286644096  ;;  %v3606_v29 = vmax.bf16 %v3604_v58, %v3602_v15 }
  0xa7   :  { %v3224_v8 = vld [vmem:[#allocation7 + $0xac] sm:$0xf]  ;;  %v3678_v12 = vsel %vm3325_vm1, %v3191_v37, 4286644096  ;;  %v3286_v14 = vld [vmem:[#allocation7 + $0x1a4] sm:$0xf]  ;;  %v3656_v23 = vmax.bf16 %v3654_v5, %v3652_v10  ;;  %v3633_v28 = vmax.bf16 %v3631_v9, %v3629_v16 }
  0xa8   :  { %v3681_v17 = vsel %vm3325_vm1, %v3207_v45, 4286644096  ;;  %v3685_v18 = vsel %vm3325_vm1, %v3223_v46, 4286644096  ;;  %v3240_v19 = vld [vmem:[#allocation7 + $0xec] sm:$0xf]  ;;  %v4095_v60 = vcombine.low %v3571_v27, %v3606_v29 }
  0xa9   :  { %v3271_v20 = vld [vmem:[#allocation7 + $0x168] sm:$0xf]  ;;  %v3635_v21 = vsel %vm3325_vm1, %v3301_v63, 4286644096  ;;  %v3639_v22 = vsel %vm3325_vm1, %v3317_v0, 4286644096  ;;  %v3683_v24 = vmax.bf16 %v3681_v17, %v3678_v12  ;;  %v3660_v13 = vmax.bf16 %v3658_v11, %v3656_v23 }
  0xaa   :  { %v3287_v25 = vld [vmem:[#allocation7 + $0x1a8] sm:$0xf]  ;;  %v3302_v26 = vld [vmem:[#allocation7 + $0x1e4] sm:$0xf]  ;;  %v3662_v30 = vsel %vm3325_vm1, %v3270_v57, 4286644096  ;;  %v3637_v47 = vmax.bf16 %v3635_v21, %v3633_v28 }
  0xab   :  { %v3689_v31 = vsel %vm3325_vm1, %v3239_v56, 4286644096  ;;  %v3193_v32 = vld [vmem:[#allocation7 + $0x30] sm:$0xf]  ;;  %v3318_v34 = vld [vmem:[#allocation7 + $0x224] sm:$0xf]  ;;  %v3687_v35 = vmax.bf16 %v3685_v18, %v3683_v24  ;;  %v3664_v43 = vmax.bf16 %v3662_v30, %v3660_v13 }
  0xac   :  { %v3209_v33 = vld [vmem:[#allocation7 + $0x70] sm:$0xf]  ;;  %v3666_v1 = vsel %vm3325_vm1, %v3286_v14, 4286644096  ;;  %v3693_v36 = vsel %vm3325_vm1, %v3255_v62, 4286644096 }
  0xad   :  { %v3713_v37 = vsel %vm3325_vm1, %v3192_v6, 4286644096  ;;  %v3716_v38 = vsel %vm3325_vm1, %v3208_v7, 4286644096  ;;  %v3720_v39 = vsel %vm3325_vm1, %v3224_v8, 4286644096  ;;  %v3691_v45 = vmax.bf16 %v3689_v31, %v3687_v35 }
  0xae   :  { %v3225_v40 = vld [vmem:[#allocation7 + $0xb0] sm:$0xf]  ;;  %v3256_v42 = vld [vmem:[#allocation7 + $0x12c] sm:$0xf]  ;;  %v3670_v44 = vsel %vm3325_vm1, %v3302_v26, 4286644096  ;;  %v3718_v46 = vmax.bf16 %v3716_v38, %v3713_v37  ;;  %v3668_v53 = vmax.bf16 %v3666_v1, %v3664_v43  ;;  %v3641_v6 = vmax.bf16 %v3639_v22, %v3637_v47 }
  0xaf   :  { %v3241_v41 = vld [vmem:[#allocation7 + $0xf0] sm:$0xf]  ;;  %v3674_v48 = vsel %vm3325_vm1, %v3318_v34, 4286644096  ;;  %v3697_v49 = vsel %vm3325_vm1, %v3271_v20, 4286644096  ;;  %v3695_v54 = vmax.bf16 %v3693_v36, %v3691_v45 }
  0xb0   :  { %v3724_v50 = vsel %vm3325_vm1, %v3240_v19, 4286644096  ;;  %v3257_v51 = vld [vmem:[#allocation7 + $0x130] sm:$0xf]  ;;  %v3272_v52 = vld [vmem:[#allocation7 + $0x16c] sm:$0xf]  ;;  %v3722_v56 = vmax.bf16 %v3720_v39, %v3718_v46  ;;  %v3672_v2 = vmax.bf16 %v3670_v44, %v3668_v53 }
  0xb1   :  { %v3701_v55 = vsel %vm3325_vm1, %v3287_v25, 4286644096  ;;  %v3728_v57 = vsel %vm3325_vm1, %v3256_v42, 4286644096  ;;  %v3748_v58 = vsel %vm3325_vm1, %v3193_v32, 4286644096  ;;  %v3699_v3 = vmax.bf16 %v3697_v49, %v3695_v54 }
  0xb2   :  { %v3751_v59 = vsel %vm3325_vm1, %v3209_v33, 4286644096  ;;  %v3194_v61 = vld [vmem:[#allocation7 + $0x34] sm:$0xf]  ;;  %v3273_v62 = vld [vmem:[#allocation7 + $0x170] sm:$0xf]  ;;  %v3726_v4 = vmax.bf16 %v3724_v50, %v3722_v56  ;;  %v3676_v14 = vmax.bf16 %v3674_v48, %v3672_v2 }
  0xb3   :  { %v3288_v63 = vld [vmem:[#allocation7 + $0x1ac] sm:$0xf]  ;;  %v3303_v0 = vld [vmem:[#allocation7 + $0x1e8] sm:$0xf]  ;;  %v3753_v5 = vmax.bf16 %v3751_v59, %v3748_v58  ;;  %v3732_v7 = vsel %vm3325_vm1, %v3272_v52, 4286644096  ;;  %v3703_v23 = vmax.bf16 %v3701_v55, %v3699_v3 }
  0xb4   :  { %v3755_v8 = vsel %vm3325_vm1, %v3225_v40, 4286644096  ;;  %v3759_v9 = vsel %vm3325_vm1, %v3241_v41, 4286644096  ;;  %4096 = vst [vmem:[%s5092_s2 + $0x18] sm:$0xff] %v4095_v60   ;;  %v3730_v15 = vmax.bf16 %v3728_v57, %v3726_v4  ;;  %v4097_v32 = vcombine.low %v3641_v6, %v3676_v14 }
  0xb5   :  { %v3210_v10 = vld [vmem:[#allocation7 + $0x74] sm:$0xf]  ;;  %v3304_v12 = vld [vmem:[#allocation7 + $0x1ec] sm:$0xf]  ;;  %v3757_v16 = vmax.bf16 %v3755_v8, %v3753_v5  ;;  %v3705_v17 = vsel %vm3325_vm1, %v3303_v0, 4286644096 }
  0xb6   :  { %v3226_v11 = vld [vmem:[#allocation7 + $0xb4] sm:$0xf]  ;;  %v3736_v18 = vsel %vm3325_vm1, %v3288_v63, 4286644096  ;;  %v3763_v19 = vsel %vm3325_vm1, %v3257_v51, 4286644096  ;;  %v3734_v24 = vmax.bf16 %v3732_v7, %v3730_v15  ;;  %v3707_v46 = vmax.bf16 %v3705_v17, %v3703_v23 }
  0xb7   :  { %v3195_v20 = vld [vmem:[#allocation7 + $0x38] sm:$0xf]  ;;  %v3242_v21 = vld [vmem:[#allocation7 + $0xf4] sm:$0xf]  ;;  %v3289_v22 = vld [vmem:[#allocation7 + $0x1b0] sm:$0xf]  ;;  %v3761_v25 = vmax.bf16 %v3759_v9, %v3757_v16 }
  0xb8   :  { %v3767_v26 = vsel %vm3325_vm1, %v3273_v62, 4286644096  ;;  %v3211_v27 = vld [vmem:[#allocation7 + $0x78] sm:$0xf]  ;;  %v3783_v28 = vsel %vm3325_vm1, %v3194_v61, 4286644096  ;;  %v3738_v1 = vmax.bf16 %v3736_v18, %v3734_v24 }
  0xb9   :  { %v3786_v30 = vsel %vm3325_vm1, %v3210_v10, 4286644096  ;;  %v3790_v31 = vsel %vm3325_vm1, %v3226_v11, 4286644096  ;;  %v3227_v33 = vld [vmem:[#allocation7 + $0xb8] sm:$0xf]  ;;  %v3765_v36 = vmax.bf16 %v3763_v19, %v3761_v25 }
  0xba   :  { %v3258_v34 = vld [vmem:[#allocation7 + $0x134] sm:$0xf]  ;;  %v3319_v13 = vld [vmem:[#allocation7 + $0x228] sm:$0xf]  ;;  %v3740_v35 = vsel %vm3325_vm1, %v3304_v12, 4286644096  ;;  %v3788_v29 = vmax.bf16 %v3786_v30, %v3783_v28 }
  0xbb   :  { %v3243_v37 = vld [vmem:[#allocation7 + $0xf8] sm:$0xf]  ;;  %v3320_v38 = vld [vmem:[#allocation7 + $0x22c] sm:$0xf]  ;;  %v3771_v39 = vsel %vm3325_vm1, %v3289_v22, 4286644096  ;;  %v3769_v47 = vmax.bf16 %v3767_v26, %v3765_v36  ;;  %v3742_v52 = vmax.bf16 %v3740_v35, %v3738_v1 }
  0xbc   :  { %v3794_v40 = vsel %vm3325_vm1, %v3242_v21, 4286644096  ;;  %4098 = vst [vmem:[%s5092_s2 + $0x20] sm:$0xff] %v4097_v32   ;;  %v3196_v41 = vld [vmem:[#allocation7 + $0x3c] sm:$0xf]  ;;  %v3792_v48 = vmax.bf16 %v3790_v31, %v3788_v29 }
  0xbd   :  { %v3259_v42 = vld [vmem:[#allocation7 + $0x138] sm:$0xf]  ;;  %v3274_v43 = vld [vmem:[#allocation7 + $0x174] sm:$0xf]  ;;  %v3305_v45 = vld [vmem:[#allocation7 + $0x1f0] sm:$0xf]  ;;  %v3773_v57 = vmax.bf16 %v3771_v39, %v3769_v47 }
  0xbe   :  { %v3290_v44 = vld [vmem:[#allocation7 + $0x1b4] sm:$0xf]  ;;  %v3212_v49 = vld [vmem:[#allocation7 + $0x7c] sm:$0xf]  ;;  %v3709_v51 = vsel %vm3325_vm1, %v3319_v13, 4286644096  ;;  %v3796_v58 = vmax.bf16 %v3794_v40, %v3792_v48 }
  0xbf   :  { %v3228_v50 = vld [vmem:[#allocation7 + $0xbc] sm:$0xf]  ;;  %v3798_v53 = vsel %vm3325_vm1, %v3258_v34, 4286644096  ;;  %v3818_v54 = vsel %vm3325_vm1, %v3195_v20, 4286644096  ;;  %v3711_v3 = vmax.bf16 %v3709_v51, %v3707_v46 }
  0xc0   :  { %v3306_v55 = vld [vmem:[#allocation7 + $0x1f4] sm:$0xf]  ;;  %v3744_v56 = vsel %vm3325_vm1, %v3320_v38, 4286644096  ;;  %v3821_v59 = vsel %vm3325_vm1, %v3211_v27, 4286644096  ;;  %v3800_v4 = vmax.bf16 %v3798_v53, %v3796_v58 }
  0xc1   :  { %v3244_v60 = vld [vmem:[#allocation7 + $0xfc] sm:$0xf]  ;;  %v3775_v61 = vsel %vm3325_vm1, %v3305_v45, 4286644096  ;;  %v3802_v62 = vsel %vm3325_vm1, %v3274_v43, 4286644096  ;;  %v3823_v63 = vmax.bf16 %v3821_v59, %v3818_v54  ;;  %v3746_v9 = vmax.bf16 %v3744_v56, %v3742_v52 }
  0xc2   :  { %v3825_v0 = vsel %vm3325_vm1, %v3227_v33, 4286644096  ;;  %v3321_v2 = vld [vmem:[#allocation7 + $0x230] sm:$0xf]  ;;  %v3806_v5 = vsel %vm3325_vm1, %v3290_v44, 4286644096  ;;  %v3777_v15 = vmax.bf16 %v3775_v61, %v3773_v57  ;;  %v3804_v16 = vmax.bf16 %v3802_v62, %v3800_v4 }
  0xc3   :  { %v3829_v6 = vsel %vm3325_vm1, %v3243_v37, 4286644096  ;;  %v3260_v7 = vld [vmem:[#allocation7 + $0x13c] sm:$0xf]  ;;  %v3275_v8 = vld [vmem:[#allocation7 + $0x178] sm:$0xf]  ;;  %v3827_v10 = vmax.bf16 %v3825_v0, %v3823_v63  ;;  %v4099_v33 = vcombine.low %v3711_v3, %v3746_v9 }
  0xc4   :  { %v3833_v11 = vsel %vm3325_vm1, %v3259_v42, 4286644096  ;;  %v3853_v12 = vsel %vm3325_vm1, %v3196_v41, 4286644096  ;;  %v3322_v14 = vld [vmem:[#allocation7 + $0x234] sm:$0xf]  ;;  %v3808_v24 = vmax.bf16 %v3806_v5, %v3804_v16 }
  0xc5   :  { %v3856_v17 = vsel %vm3325_vm1, %v3212_v49, 4286644096  ;;  %v3860_v18 = vsel %vm3325_vm1, %v3228_v50, 4286644096  ;;  %v3291_v19 = vld [vmem:[#allocation7 + $0x1b8] sm:$0xf]  ;;  %v3831_v22 = vmax.bf16 %v3829_v6, %v3827_v10 }
  0xc6   :  { %v3779_v20 = vsel %vm3325_vm1, %v3321_v2, 4286644096  ;;  %v3810_v21 = vsel %vm3325_vm1, %v3306_v55, 4286644096  ;;  %v3858_v23 = vmax.bf16 %v3856_v17, %v3853_v12  ;;  %v3837_v25 = vsel %vm3325_vm1, %v3275_v8, 4286644096 }
  0xc7   :  { %v3864_v26 = vsel %vm3325_vm1, %v3244_v60, 4286644096  ;;  %v3276_v27 = vld [vmem:[#allocation7 + $0x17c] sm:$0xf]  ;;  %v3307_v28 = vld [vmem:[#allocation7 + $0x1f8] sm:$0xf]  ;;  %v3835_v31 = vmax.bf16 %v3833_v11, %v3831_v22  ;;  %v3781_v34 = vmax.bf16 %v3779_v20, %v3777_v15  ;;  %v3812_v13 = vmax.bf16 %v3810_v21, %v3808_v24 }
  0xc8   :  { %v3814_v30 = vsel %vm3325_vm1, %v3322_v14, 4286644096  ;;  %v3862_v32 = vmax.bf16 %v3860_v18, %v3858_v23  ;;  %v3841_v1 = vsel %vm3325_vm1, %v3291_v19, 4286644096  ;;  %v3868_v35 = vsel %vm3325_vm1, %v3260_v7, 4286644096 }
  0xc9   :  { %v3292_v36 = vld [vmem:[#allocation7 + $0x1bc] sm:$0xf]  ;;  %v3839_v29 = vmax.bf16 %v3837_v25, %v3835_v31  ;;  %4100 = vst [vmem:[%s5092_s2 + $0x28] sm:$0xff] %v4099_v33   ;;  %v3816_v38 = vmax.bf16 %v3814_v30, %v3812_v13  ;;  %v3845_v39 = vsel %vm3325_vm1, %v3307_v28, 4286644096 }
  0xca   :  { %v3866_v37 = vmax.bf16 %v3864_v26, %v3862_v32  ;;  %v3872_v40 = vsel %vm3325_vm1, %v3276_v27, 4286644096  ;;  %v3308_v41 = vld [vmem:[#allocation7 + $0x1fc] sm:$0xf]  ;;  %v3323_v42 = vld [vmem:[#allocation7 + $0x238] sm:$0xf] }
  0xcb   :  { %v3843_v43 = vmax.bf16 %v3841_v1, %v3839_v29  ;;  %v3876_v45 = vsel %vm3325_vm1, %v3292_v36, 4286644096  ;;  %v4101_v46 = vcombine.low %v3781_v34, %v3816_v38  ;;  %v3324_v47 = vld [vmem:[#allocation7 + $0x23c] sm:$0xf]  ;;  %v3849_v50 = vsel %vm3325_vm1, %v3323_v42, 4286644096 }
  0xcc   :  { %v3870_v44 = vmax.bf16 %v3868_v35, %v3866_v37  ;;  %v3880_v51 = vsel %vm3325_vm1, %v3308_v41, 4286644096  ;;  %v3884_v53 = vsel %vm3325_vm1, %v3324_v47, 4286644096 }
  0xcd   :  { %v3847_v48 = vmax.bf16 %v3845_v39, %v3843_v43  ;;  %4102 = vst [vmem:[%s5092_s2 + $0x30] sm:$0xff] %v4101_v46  }
  0xce   :  { %v3874_v49 = vmax.bf16 %v3872_v40, %v3870_v44 }
  0xcf   :  { %v3851_v54 = vmax.bf16 %v3849_v50, %v3847_v48 }
  0xd0   :  { %v3878_v52 = vmax.bf16 %v3876_v45, %v3874_v49 }
  0xd2   :  { %v3882_v55 = vmax.bf16 %v3880_v51, %v3878_v52 }
  0xd4   :  { %v3886_v56 = vmax.bf16 %v3884_v53, %v3882_v55 }
  0xd6   :  { %v4103_v57 = vcombine.low %v3851_v54, %v3886_v56 }
  0xd8   :  { %4104 = vst [vmem:[%s5092_s2 + $0x38] sm:$0xff] %v4103_v57  }

// kernel: _lambda_.25
= control target key start
LH: loop header
LB: loop body
LE: loop exit
PB: predicated region body
PF: predicated region fallthrough
CT: control target
= control target key end

     0   :  { %s1136_s0 = inlined_call_operand.vmem [shape: bf16[128,128], index: 0, kind: input, shape index: {}]   ;;  %s1137_s1 = inlined_call_operand.vmem [shape: f32[2,128], index: 1, kind: input, shape index: {}]   ;;  %s1138_s2 = inlined_call_operand.vmem [shape: bf16[128,72], index: 2, kind: input, shape index: {}]   ;;  %s1139_s3 = inlined_call_operand.<no memory space> [shape: bf16[], index: 3, kind: input, shape index: {}]   ;;  %s1140_s4 = inlined_call_operand.vmem [shape: bf16[128,128], index: 4, kind: output, shape index: {}]  }
   0x1   :  { %v9_v0 = vstv %s1139_s3 }
   0x2   :  { %v972_v1 = vunpack.i.l.bf16 %v9_v0 }
   0x3   :  { %v423_v2 = vld [vmem:[%s1136_s0] sm:$0xff]  ;;  %v424_v3 = vld [vmem:[%s1136_s0 + $0x8] sm:$0xff]  ;;  %v32_v4 = vlaneseq  ;;  %v425_v11 = vld [vmem:[%s1136_s0 + $0x10] sm:$0xff]  ;;  %v943_v18 = vmov 0.0  }
   0x4   :  { %886 = vmatprep.subr.bf16.mxu0 %v423_v2  ;;  %918 = vmatprep.subr.bf16.mxu1 %v423_v2  ;;  %v29_v5 = vld [vmem:[%s1138_s2] sm:$0xff]   ;;  %v769_v10 = vld [vmem:[%s1138_s2 + $0x8] sm:$0xff]   ;;  %v771_v25 = vld [vmem:[%s1138_s2 + $0x10] sm:$0xff]  }
   0x5   :  { %887 = vmatpush3.bf16.msra.mxu0 %v423_v2  ;;  %926 = vmatpush3.bf16.msra.mxu1 %v423_v2  ;;  %v984_v6 = vand.u32 127, %v32_v4  ;;  %v30_v7 = vunpack.c.l.bf16 %v29_v5  ;;  %v51_v8 = vunpack.c.h.bf16 %v29_v5  ;;  %v775_v9 = vld [vmem:[%s1138_s2 + $0x20] sm:$0xff]   ;;  %v777_v13 = vld [vmem:[%s1138_s2 + $0x28] sm:$0xff]   ;;  %v73_v17 = vunpack.c.l.bf16 %v769_v10  ;;  %v779_v26 = vld [vmem:[%s1138_s2 + $0x30] sm:$0xff]  }
   0x6   :  { %888 = vmatprep.subr.bf16.mxu0 %v424_v3  ;;  %919 = vmatprep.subr.bf16.mxu1 %v424_v3  ;;  %v205_v12 = vunpack.c.l.bf16 %v775_v9  ;;  %v227_v16 = vunpack.c.h.bf16 %v775_v9  ;;  %v95_v21 = vunpack.c.h.bf16 %v769_v10  ;;  %v249_v24 = vunpack.c.l.bf16 %v777_v13  ;;  %v426_v27 = vld [vmem:[%s1136_s0 + $0x18] sm:$0xff]  ;;  %v427_v46 = vld [vmem:[%s1136_s0 + $0x20] sm:$0xff]  ;;  %v428_v63 = vld [vmem:[%s1136_s0 + $0x28] sm:$0xff] }
   0x7   :  { %vm35_vm0 = vcmp.lt.s32.totalorder %v984_v6, 72  ;;  %v773_v32 = vld [vmem:[%s1138_s2 + $0x18] sm:$0xff]   ;;  %v271_v36 = vunpack.c.h.bf16 %v777_v13  ;;  %v117_v38 = vunpack.c.l.bf16 %v771_v25  ;;  %v139_v39 = vunpack.c.h.bf16 %v771_v25 }
   0x8   :  { %v36_v14 = vsel %vm35_vm0, %v30_v7, %v972_v1  ;;  %v57_v15 = vsel %vm35_vm0, %v51_v8, %v972_v1  ;;  %v211_v22 = vsel %vm35_vm0, %v205_v12, %v972_v1  ;;  %v233_v23 = vsel %vm35_vm0, %v227_v16, %v972_v1  ;;  %v781_v45 = vld [vmem:[%s1138_s2 + $0x38] sm:$0xff]   ;;  %v429_v8 = vld [vmem:[%s1136_s0 + $0x30] sm:$0xff]  ;;  %v611_v16 = vld [vmem:[%s1137_s1] sm:$0x3] }
   0x9   :  { %889 = vmatpush3.bf16.msra.mxu0 %v424_v3  ;;  %927 = vmatpush3.bf16.msra.mxu1 %v424_v3  ;;  %v37_v19 = vpack.c.bf16 %v943_v18, %v36_v14  ;;  %v59_v20 = vpack.c.bf16 %v943_v18, %v57_v15  ;;  %v213_v28 = vpack.c.bf16 %v943_v18, %v211_v22  ;;  %v293_v40 = vunpack.c.l.bf16 %v779_v26 }
   0xa   :  { %890 = vmatprep.subr.bf16.mxu0 %v425_v11  ;;  %920 = vmatprep.subr.bf16.mxu1 %v425_v11  ;;  %v235_v29 = vpack.c.bf16 %v943_v18, %v233_v23  ;;  %v79_v30 = vsel %vm35_vm0, %v73_v17, %v972_v1  ;;  %v101_v31 = vsel %vm35_vm0, %v95_v21, %v972_v1  ;;  %v315_v42 = vunpack.c.h.bf16 %v779_v26 }
   0xb   :  { %39 = vst [vmem:[#allocation8] sm:$0xf] %v37_v19  ;;  %61 = vst [vmem:[#allocation8 + $0x4] sm:$0xf] %v59_v20  ;;  %v81_v33 = vpack.c.bf16 %v943_v18, %v79_v30  ;;  %v103_v34 = vpack.c.bf16 %v943_v18, %v101_v31  ;;  %v255_v35 = vsel %vm35_vm0, %v249_v24, %v972_v1  ;;  %v161_v43 = vunpack.c.l.bf16 %v773_v32 }
   0xc   :  { %215 = vst [vmem:[#allocation8 + $0x20] sm:$0xf] %v213_v28  ;;  %237 = vst [vmem:[#allocation8 + $0x24] sm:$0xf] %v235_v29  ;;  %v257_v37 = vpack.c.bf16 %v943_v18, %v255_v35  ;;  %v277_v41 = vsel %vm35_vm0, %v271_v36, %v972_v1  ;;  %v183_v44 = vunpack.c.h.bf16 %v773_v32  ;;  %v123_v48 = vsel %vm35_vm0, %v117_v38, %v972_v1 }
   0xd   :  { %891 = vmatpush3.bf16.msra.mxu0 %v425_v11  ;;  %928 = vmatpush3.bf16.msra.mxu1 %v425_v11  ;;  %83 = vst [vmem:[#allocation8 + $0x8] sm:$0xf] %v81_v33  ;;  %105 = vst [vmem:[#allocation8 + $0xc] sm:$0xf] %v103_v34  ;;  %v279_v47 = vpack.c.bf16 %v943_v18, %v277_v41  ;;  %v145_v49 = vsel %vm35_vm0, %v139_v39, %v972_v1  ;;  %v337_v58 = vunpack.c.l.bf16 %v781_v45 }
   0xe   :  { %892 = vmatprep.subr.bf16.mxu0 %v426_v27  ;;  %921 = vmatprep.subr.bf16.mxu1 %v426_v27  ;;  %259 = vst [vmem:[#allocation8 + $0x28] sm:$0xf] %v257_v37  ;;  %v299_v50 = vsel %vm35_vm0, %v293_v40, %v972_v1  ;;  %v125_v51 = vpack.c.bf16 %v943_v18, %v123_v48  ;;  %v359_v62 = vunpack.c.h.bf16 %v781_v45  ;;  %v629_v14 = vshrl.u32 %v32_v4, 7 }
   0xf   :  { %v147_v52 = vpack.c.bf16 %v943_v18, %v145_v49  ;;  %v301_v53 = vpack.c.bf16 %v943_v18, %v299_v50  ;;  %v321_v54 = vsel %vm35_vm0, %v315_v42, %v972_v1  ;;  %281 = vst [vmem:[#allocation8 + $0x2c] sm:$0xf] %v279_v47  ;;  %v167_v56 = vsel %vm35_vm0, %v161_v43, %v972_v1 }
  0x10   :  { %v323_v55 = vpack.c.bf16 %v943_v18, %v321_v54  ;;  %v189_v57 = vsel %vm35_vm0, %v183_v44, %v972_v1  ;;  %127 = vst [vmem:[#allocation8 + $0x10] sm:$0xf] %v125_v51  ;;  %v169_v60 = vpack.c.bf16 %v943_v18, %v167_v56  ;;  %v343_v0 = vsel %vm35_vm0, %v337_v58, %v972_v1 }
  0x11   :  { %893 = vmatpush3.bf16.msra.mxu0 %v426_v27  ;;  %929 = vmatpush3.bf16.msra.mxu1 %v426_v27  ;;  %149 = vst [vmem:[#allocation8 + $0x14] sm:$0xf] %v147_v52  ;;  %303 = vst [vmem:[#allocation8 + $0x30] sm:$0xf] %v301_v53  ;;  %v191_v61 = vpack.c.bf16 %v943_v18, %v189_v57  ;;  %v345_v3 = vpack.c.bf16 %v943_v18, %v343_v0  ;;  %v630_v15 = vsub.s32 0, %v629_v14 }
  0x12   :  { %894 = vmatprep.subr.bf16.mxu0 %v427_v46  ;;  %922 = vmatprep.subr.bf16.mxu1 %v427_v46  ;;  %v935_v59 = vld [vmem:[#allocation8] sm:$0xff]   ;;  %325 = vst [vmem:[#allocation8 + $0x34] sm:$0xf] %v323_v55  ;;  %171 = vst [vmem:[#allocation8 + $0x18] sm:$0xf] %v169_v60  ;;  %v365_v5 = vsel %vm35_vm0, %v359_v62, %v972_v1  ;;  %v430_v1 = vld [vmem:[%s1136_s0 + $0x38] sm:$0xff] }
  0x13   :  { %902 = vmatprep.mubr.bf16.mxu0 %v935_v59  ;;  %v936_v2 = vld [vmem:[#allocation8 + $0x20] sm:$0xff]   ;;  %193 = vst [vmem:[#allocation8 + $0x1c] sm:$0xf] %v191_v61  ;;  %v367_v7 = vpack.c.bf16 %v943_v18, %v365_v5  ;;  %347 = vst [vmem:[#allocation8 + $0x38] sm:$0xf] %v345_v3  ;;  %v650_v17 = vsub.s32 1, %v629_v14  ;;  %v631_v18 = vrot.slane %v611_v16, %v630_v15 }
  0x14   :  { %910 = vmatprep.mubr.bf16.mxu1 %v936_v2  ;;  %v937_v6 = vld [vmem:[#allocation8 + $0x8] sm:$0xff]  }
  0x15   :  { %895 = vmatpush3.bf16.msra.mxu0 %v427_v46  ;;  %930 = vmatpush3.bf16.msra.mxu1 %v427_v46  ;;  %369 = vst [vmem:[#allocation8 + $0x3c] sm:$0xf] %v367_v7  ;;  %v1094_v19 = vrot.slane %v611_v16, %v650_v17 }
  0x16   :  { %896 = vmatprep.subr.bf16.mxu0 %v428_v63  ;;  %923 = vmatprep.subr.bf16.mxu1 %v428_v63  ;;  %v938_v9 = vld [vmem:[#allocation8 + $0x28] sm:$0xff]  }
  0x18   :  { %v939_v10 = vld [vmem:[#allocation8 + $0x10] sm:$0xff]  }
  0x19   :  { %897 = vmatpush3.bf16.msra.mxu0 %v428_v63  ;;  %931 = vmatpush3.bf16.msra.mxu1 %v428_v63  ;;  %v940_v11 = vld [vmem:[#allocation8 + $0x30] sm:$0xff]  }
  0x1a   :  { %898 = vmatprep.subr.bf16.mxu0 %v429_v8  ;;  %924 = vmatprep.subr.bf16.mxu1 %v429_v8  ;;  %v941_v12 = vld [vmem:[#allocation8 + $0x18] sm:$0xff]  }
  0x1c   :  { %v942_v13 = vld [vmem:[#allocation8 + $0x38] sm:$0xff]  }
  0x1d   :  { %899 = vmatpush3.bf16.msra.mxu0 %v429_v8  ;;  %932 = vmatpush3.bf16.msra.mxu1 %v429_v8 }
  0x1e   :  { %900 = vmatprep.subr.bf16.mxu0 %v430_v1  ;;  %925 = vmatprep.subr.bf16.mxu1 %v430_v1 }
  0x21   :  { %901 = vmatpush3.bf16.msra.mxu0 %v430_v1  ;;  %933 = vmatpush3.bf16.msra.mxu1 %v430_v1 }
  0x24   :  { %903 = vmatmul.mubr.bf16.vlgmr.msra.gmra.mrb[0].mxu0 %v937_v6  ;;  %911 = vmatmul.mubr.bf16.vlgmr.msra.gmra.mrb[0].mxu1 %v938_v9 }
  0x25   :  { %906 = vmatprep.mubr.bf16.mxu0 %v939_v10  ;;  %914 = vmatprep.mubr.bf16.mxu1 %v940_v11 }
  0x2c   :  { %907 = vmatmul.mubr.bf16.gmra.mrb[4].mxu0 %v941_v12  ;;  %915 = vmatmul.mubr.bf16.gmra.mrb[4].mxu1 %v942_v13 }
  0xf7   :  { %v904_v20 = vpop.f32.mrb[0].mxu0  ;;  %v912_v21 = vpop.f32.mrb[0].mxu1 }
  0xf8   :  { %v634_v22 = vmul.f32 %v904_v20, %v631_v18  ;;  %v642_v23 = vmul.f32 %v912_v21, %v631_v18  ;;  %v513_v24 = vpop.f32.mrb[1].mxu0  ;;  %v545_v25 = vpop.f32.mrb[1].mxu1 }
  0xf9   :  { %v632_v26 = vmul.f32 %v631_v18, %v513_v24  ;;  %v640_v27 = vmul.f32 %v631_v18, %v545_v25  ;;  %v905_v28 = vpop.f32.mrb[2].mxu0  ;;  %v913_v29 = vpop.f32.mrb[2].mxu1 }
  0xfa   :  { %v654_v4 = vadd.f32 %v1094_v19, %v634_v22  ;;  %v662_v30 = vadd.f32 %v1094_v19, %v642_v23  ;;  %v635_v31 = vmul.f32 %v905_v28, %v631_v18  ;;  %v643_v32 = vmul.f32 %v913_v29, %v631_v18  ;;  %v516_v33 = vpop.f32.mrb[3].mxu0  ;;  %v548_v34 = vpop.f32.mrb[3].mxu1 }
  0xfb   :  { %v652_v35 = vadd.f32 %v1094_v19, %v632_v26  ;;  %v660_v36 = vadd.f32 %v1094_v19, %v640_v27  ;;  %v633_v37 = vmul.f32 %v631_v18, %v516_v33  ;;  %v641_v38 = vmul.f32 %v631_v18, %v548_v34 }
  0xfc   :  { %v655_v39 = vadd.f32 %v1094_v19, %v635_v31  ;;  %v663_v40 = vadd.f32 %v1094_v19, %v643_v32  ;;  %v670_v43 = vmax.f32 %v654_v4, 0.0  ;;  %v678_v44 = vmax.f32 %v662_v30, 0.0 }
  0xfd   :  { %v653_v41 = vadd.f32 %v1094_v19, %v633_v37  ;;  %v661_v42 = vadd.f32 %v1094_v19, %v641_v38  ;;  %v668_v47 = vmax.f32 %v652_v35, 0.0  ;;  %v676_v48 = vmax.f32 %v660_v36, 0.0 }
  0xfe   :  { %v671_v45 = vmax.f32 %v655_v39, 0.0  ;;  %v679_v46 = vmax.f32 %v663_v40, 0.0 }
  0xff   :  { %v669_v49 = vmax.f32 %v653_v41, 0.0  ;;  %v677_v50 = vmax.f32 %v661_v42, 0.0  ;;  %v908_v51 = vpop.f32.mrb[4].mxu0  ;;  %v916_v52 = vpop.f32.mrb[4].mxu1 }
 0x100   :  { %v831_v53 = vpack.c.bf16 %v671_v45, %v670_v43  ;;  %v851_v54 = vpack.c.bf16 %v679_v46, %v678_v44  ;;  %v638_v55 = vmul.f32 %v908_v51, %v631_v18  ;;  %v646_v56 = vmul.f32 %v916_v52, %v631_v18  ;;  %v529_v57 = vpop.f32.mrb[5].mxu0  ;;  %v561_v58 = vpop.f32.mrb[5].mxu1 }
 0x101   :  { %v826_v59 = vpack.c.bf16 %v669_v49, %v668_v47  ;;  %v846_v60 = vpack.c.bf16 %v677_v50, %v676_v48  ;;  %v636_v61 = vmul.f32 %v631_v18, %v529_v57  ;;  %v644_v62 = vmul.f32 %v631_v18, %v561_v58  ;;  %v909_v63 = vpop.f32.mrb[6].mxu0  ;;  %v917_v0 = vpop.f32.mrb[6].mxu1 }
 0x102   :  { %863 = vst [vmem:[%s1140_s4 + $0x8] sm:$0xff] %v831_v53   ;;  %867 = vst [vmem:[%s1140_s4 + $0x28] sm:$0xff] %v851_v54   ;;  %v658_v2 = vadd.f32 %v1094_v19, %v638_v55  ;;  %v666_v3 = vadd.f32 %v1094_v19, %v646_v56  ;;  %v639_v5 = vmul.f32 %v909_v63, %v631_v18  ;;  %v532_v8 = vpop.f32.mrb[7].mxu0  ;;  %v564_v1 = vpop.f32.mrb[7].mxu1 }
 0x103   :  { %v647_v7 = vmul.f32 %v917_v0, %v631_v18  ;;  %827 = vst [vmem:[%s1140_s4] sm:$0xff] %v826_v59   ;;  %866 = vst [vmem:[%s1140_s4 + $0x20] sm:$0xff] %v846_v60   ;;  %v656_v6 = vadd.f32 %v1094_v19, %v636_v61  ;;  %v664_v9 = vadd.f32 %v1094_v19, %v644_v62 }
 0x104   :  { %v637_v10 = vmul.f32 %v631_v18, %v532_v8  ;;  %v645_v11 = vmul.f32 %v631_v18, %v564_v1  ;;  %v659_v12 = vadd.f32 %v1094_v19, %v639_v5  ;;  %v674_v16 = vmax.f32 %v658_v2, 0.0 }
 0x105   :  { %v667_v13 = vadd.f32 %v1094_v19, %v647_v7  ;;  %v682_v17 = vmax.f32 %v666_v3, 0.0  ;;  %v672_v22 = vmax.f32 %v656_v6, 0.0  ;;  %v680_v23 = vmax.f32 %v664_v9, 0.0 }
 0x106   :  { %v657_v14 = vadd.f32 %v1094_v19, %v637_v10  ;;  %v665_v15 = vadd.f32 %v1094_v19, %v645_v11  ;;  %v675_v20 = vmax.f32 %v659_v12, 0.0 }
 0x107   :  { %v683_v21 = vmax.f32 %v667_v13, 0.0 }
 0x108   :  { %v673_v24 = vmax.f32 %v657_v14, 0.0  ;;  %v681_v25 = vmax.f32 %v665_v15, 0.0  ;;  %v841_v26 = vpack.c.bf16 %v675_v20, %v674_v16 }
 0x109   :  { %v861_v27 = vpack.c.bf16 %v683_v21, %v682_v17 }
 0x10a   :  { %v836_v28 = vpack.c.bf16 %v673_v24, %v672_v22  ;;  %v856_v18 = vpack.c.bf16 %v681_v25, %v680_v23  ;;  %865 = vst [vmem:[%s1140_s4 + $0x18] sm:$0xff] %v841_v26  }
 0x10b   :  { %869 = vst [vmem:[%s1140_s4 + $0x38] sm:$0xff] %v861_v27  }
 0x10c   :  { %864 = vst [vmem:[%s1140_s4 + $0x10] sm:$0xff] %v836_v28   ;;  %868 = vst [vmem:[%s1140_s4 + $0x30] sm:$0xff] %v856_v18  }

// kernel: _lambda_.24
= control target key start
LH: loop header
LB: loop body
LE: loop exit
PB: predicated region body
PF: predicated region fallthrough
CT: control target
= control target key end

     0   :  { %s1789_s0 = inlined_call_operand.vmem [shape: bf16[128,128], index: 0, kind: input, shape index: {}]   ;;  %s1790_s1 = inlined_call_operand.vmem [shape: f32[2,128], index: 1, kind: input, shape index: {}]   ;;  %s1791_s2 = inlined_call_operand.vmem [shape: bf16[128,128], index: 2, kind: input, shape index: {}]   ;;  %s1792_s3 = inlined_call_operand.vmem [shape: bf16[128,72], index: 3, kind: input, shape index: {}]   ;;  %s1793_s4 = inlined_call_operand.<no memory space> [shape: bf16[], index: 4, kind: input, shape index: {}]   ;;  %s1794_s5 = inlined_call_operand.vmem [shape: pred[128], index: 5, kind: input, shape index: {}]   ;;  %s1795_s6 = inlined_call_operand.vmem [shape: bf16[128,128], index: 6, kind: output, shape index: {}]  }
   0x1   :  { %v11_v0 = vstv %s1793_s4 }
   0x2   :  { %v1578_v1 = vunpack.i.l.bf16 %v11_v0 }
   0x3   :  { %v692_v2 = vld [vmem:[%s1789_s0] sm:$0xff]  ;;  %v693_v3 = vld [vmem:[%s1789_s0 + $0x8] sm:$0xff]  ;;  %v43_v4 = vlaneseq  ;;  %v694_v12 = vld [vmem:[%s1789_s0 + $0x10] sm:$0xff]  ;;  %v1539_v21 = vmov 0.0  }
   0x4   :  { %1474 = vmatprep.subr.bf16.mxu0 %v692_v2  ;;  %1506 = vmatprep.subr.bf16.mxu1 %v692_v2  ;;  %v40_v5 = vld [vmem:[%s1792_s3] sm:$0xff]   ;;  %v1240_v10 = vld [vmem:[%s1792_s3 + $0x8] sm:$0xff]   ;;  %v1242_v16 = vld [vmem:[%s1792_s3 + $0x10] sm:$0xff]  }
   0x5   :  { %1475 = vmatpush3.bf16.msra.mxu0 %v692_v2  ;;  %1514 = vmatpush3.bf16.msra.mxu1 %v692_v2  ;;  %v1590_v6 = vand.u32 127, %v43_v4  ;;  %v41_v7 = vunpack.c.l.bf16 %v40_v5  ;;  %v62_v8 = vunpack.c.h.bf16 %v40_v5  ;;  %v1246_v9 = vld [vmem:[%s1792_s3 + $0x20] sm:$0xff]   ;;  %v1248_v11 = vld [vmem:[%s1792_s3 + $0x28] sm:$0xff]   ;;  %v84_v15 = vunpack.c.l.bf16 %v1240_v10  ;;  %v1250_v30 = vld [vmem:[%s1792_s3 + $0x30] sm:$0xff]  }
   0x6   :  { %1476 = vmatprep.subr.bf16.mxu0 %v693_v3  ;;  %1507 = vmatprep.subr.bf16.mxu1 %v693_v3  ;;  %v216_v13 = vunpack.c.l.bf16 %v1246_v9  ;;  %v238_v14 = vunpack.c.h.bf16 %v1246_v9  ;;  %v106_v19 = vunpack.c.h.bf16 %v1240_v10  ;;  %v260_v20 = vunpack.c.l.bf16 %v1248_v11  ;;  %v695_v31 = vld [vmem:[%s1789_s0 + $0x18] sm:$0xff]  ;;  %v696_v50 = vld [vmem:[%s1789_s0 + $0x20] sm:$0xff]  ;;  %v697_v2 = vld [vmem:[%s1789_s0 + $0x28] sm:$0xff] }
   0x7   :  { %vm46_vm0 = vcmp.lt.s32.totalorder %v1590_v6, 72  ;;  %v282_v25 = vunpack.c.h.bf16 %v1248_v11  ;;  %v128_v29 = vunpack.c.l.bf16 %v1242_v16  ;;  %v1244_v36 = vld [vmem:[%s1792_s3 + $0x18] sm:$0xff]   ;;  %v150_v44 = vunpack.c.h.bf16 %v1242_v16  ;;  %v698_v6 = vld [vmem:[%s1789_s0 + $0x30] sm:$0xff] }
   0x8   :  { %v47_v17 = vsel %vm46_vm0, %v41_v7, %v1578_v1  ;;  %v68_v18 = vsel %vm46_vm0, %v62_v8, %v1578_v1  ;;  %v222_v24 = vsel %vm46_vm0, %v216_v13, %v1578_v1  ;;  %v244_v27 = vsel %vm46_vm0, %v238_v14, %v1578_v1  ;;  %v1252_v37 = vld [vmem:[%s1792_s3 + $0x38] sm:$0xff]  }
   0x9   :  { %1477 = vmatpush3.bf16.msra.mxu0 %v693_v3  ;;  %1515 = vmatpush3.bf16.msra.mxu1 %v693_v3  ;;  %v48_v22 = vpack.c.bf16 %v1539_v21, %v47_v17  ;;  %v70_v23 = vpack.c.bf16 %v1539_v21, %v68_v18  ;;  %v224_v26 = vpack.c.bf16 %v1539_v21, %v222_v24  ;;  %v304_v45 = vunpack.c.l.bf16 %v1250_v30  ;;  %v699_v8 = vld [vmem:[%s1789_s0 + $0x38] sm:$0xff] }
   0xa   :  { %1478 = vmatprep.subr.bf16.mxu0 %v694_v12  ;;  %1508 = vmatprep.subr.bf16.mxu1 %v694_v12  ;;  %v90_v28 = vsel %vm46_vm0, %v84_v15, %v1578_v1  ;;  %v246_v32 = vpack.c.bf16 %v1539_v21, %v244_v27  ;;  %v112_v34 = vsel %vm46_vm0, %v106_v19, %v1578_v1  ;;  %v326_v46 = vunpack.c.h.bf16 %v1250_v30 }
   0xb   :  { %50 = vst [vmem:[#allocation8] sm:$0xf] %v48_v22  ;;  %72 = vst [vmem:[#allocation8 + $0x4] sm:$0xf] %v70_v23  ;;  %v92_v33 = vpack.c.bf16 %v1539_v21, %v90_v28  ;;  %v266_v35 = vsel %vm46_vm0, %v260_v20, %v1578_v1  ;;  %v114_v38 = vpack.c.bf16 %v1539_v21, %v112_v34  ;;  %v172_v47 = vunpack.c.l.bf16 %v1244_v36  ;;  %v1532_v34 = vld [vmem:[%s1791_s2 + $0x8] sm:$0xff]  }
   0xc   :  { %226 = vst [vmem:[#allocation8 + $0x20] sm:$0xf] %v224_v26  ;;  %v268_v39 = vpack.c.bf16 %v1539_v21, %v266_v35  ;;  %v288_v40 = vsel %vm46_vm0, %v282_v25, %v1578_v1  ;;  %v134_v41 = vsel %vm46_vm0, %v128_v29, %v1578_v1  ;;  %248 = vst [vmem:[#allocation8 + $0x24] sm:$0xf] %v246_v32  ;;  %v194_v48 = vunpack.c.h.bf16 %v1244_v36 }
   0xd   :  { %1479 = vmatpush3.bf16.msra.mxu0 %v694_v12  ;;  %1516 = vmatpush3.bf16.msra.mxu1 %v694_v12  ;;  %94 = vst [vmem:[#allocation8 + $0x8] sm:$0xf] %v92_v33  ;;  %v290_v42 = vpack.c.bf16 %v1539_v21, %v288_v40  ;;  %v136_v43 = vpack.c.bf16 %v1539_v21, %v134_v41  ;;  %116 = vst [vmem:[#allocation8 + $0xc] sm:$0xf] %v114_v38  ;;  %v348_v49 = vunpack.c.l.bf16 %v1252_v37  ;;  %v1531_v33 = vld [vmem:[%s1791_s2] sm:$0xff]  }
   0xe   :  { %1480 = vmatprep.subr.bf16.mxu0 %v695_v31  ;;  %1509 = vmatprep.subr.bf16.mxu1 %v695_v31  ;;  %270 = vst [vmem:[#allocation8 + $0x28] sm:$0xf] %v268_v39  ;;  %v156_v51 = vsel %vm46_vm0, %v150_v44, %v1578_v1  ;;  %v310_v52 = vsel %vm46_vm0, %v304_v45, %v1578_v1  ;;  %v370_v53 = vunpack.c.h.bf16 %v1252_v37  ;;  %v898_v35 = vshrl.u32 %v43_v4, 7  ;;  %v1533_v37 = vld [vmem:[%s1791_s2 + $0x10] sm:$0xff]   ;;  %v1534_v39 = vld [vmem:[%s1791_s2 + $0x18] sm:$0xff]   ;;  %v1535_v41 = vld [vmem:[%s1791_s2 + $0x20] sm:$0xff]  }
   0xf   :  { %292 = vst [vmem:[#allocation8 + $0x2c] sm:$0xf] %v290_v42  ;;  %138 = vst [vmem:[#allocation8 + $0x10] sm:$0xf] %v136_v43  ;;  %v158_v54 = vpack.c.bf16 %v1539_v21, %v156_v51  ;;  %v312_v55 = vpack.c.bf16 %v1539_v21, %v310_v52  ;;  %v332_v56 = vsel %vm46_vm0, %v326_v46, %v1578_v1  ;;  %v1536_v4 = vld [vmem:[%s1791_s2 + $0x28] sm:$0xff]  }
  0x10   :  { %v178_v57 = vsel %vm46_vm0, %v172_v47, %v1578_v1  ;;  %v334_v58 = vpack.c.bf16 %v1539_v21, %v332_v56  ;;  %v200_v60 = vsel %vm46_vm0, %v194_v48, %v1578_v1  ;;  %v354_v63 = vsel %vm46_vm0, %v348_v49, %v1578_v1  ;;  %v1538_v48 = vld [vmem:[%s1791_s2 + $0x38] sm:$0xff]   ;;  %v880_v49 = vld [vmem:[%s1790_s1] sm:$0x3] }
  0x11   :  { %1481 = vmatpush3.bf16.msra.mxu0 %v695_v31  ;;  %1517 = vmatpush3.bf16.msra.mxu1 %v695_v31  ;;  %v180_v59 = vpack.c.bf16 %v1539_v21, %v178_v57  ;;  %160 = vst [vmem:[#allocation8 + $0x14] sm:$0xf] %v158_v54  ;;  %314 = vst [vmem:[#allocation8 + $0x30] sm:$0xf] %v312_v55  ;;  %v202_v62 = vpack.c.bf16 %v1539_v21, %v200_v60  ;;  %v1103_v31 = vld [vmem:[%s1794_s5] ss:$0 sm:$0xff] }
  0x12   :  { %1482 = vmatprep.subr.bf16.mxu0 %v696_v50  ;;  %1510 = vmatprep.subr.bf16.mxu1 %v696_v50  ;;  %v1523_v61 = vld [vmem:[#allocation8] sm:$0xff]   ;;  %v376_v0 = vsel %vm46_vm0, %v370_v53, %v1578_v1  ;;  %336 = vst [vmem:[#allocation8 + $0x34] sm:$0xf] %v334_v58  ;;  %v356_v3 = vpack.c.bf16 %v1539_v21, %v354_v63  ;;  %v1104_v32 = vand.u32 255, %v1103_v31  ;;  %v899_v42 = vsub.s32 0, %v898_v35 }
  0x13   :  { %182 = vst [vmem:[#allocation8 + $0x18] sm:$0xf] %v180_v59  ;;  %v378_v5 = vpack.c.bf16 %v1539_v21, %v376_v0  ;;  %1490 = vmatprep.mubr.bf16.mxu0 %v1523_v61  ;;  %v1524_v7 = vld [vmem:[#allocation8 + $0x20] sm:$0xff]   ;;  %204 = vst [vmem:[#allocation8 + $0x1c] sm:$0xf] %v202_v62  ;;  %v1108_v38 = vpack.c.bf16 %v1578_v1, %v1578_v1  ;;  %v919_v43 = vsub.s32 1, %v898_v35 }
  0x14   :  { %358 = vst [vmem:[#allocation8 + $0x38] sm:$0xf] %v356_v3  ;;  %1498 = vmatprep.mubr.bf16.mxu1 %v1524_v7  ;;  %v1525_v9 = vld [vmem:[#allocation8 + $0x8] sm:$0xff]   ;;  %v1109_v36 = vcvt.s32.f32 %v1104_v32  ;;  %v1537_v1 = vld [vmem:[%s1791_s2 + $0x30] sm:$0xff]   ;;  %v900_v53 = vrot.slane %v880_v49, %v899_v42 }
  0x15   :  { %1483 = vmatpush3.bf16.msra.mxu0 %v696_v50  ;;  %1518 = vmatpush3.bf16.msra.mxu1 %v696_v50  ;;  %380 = vst [vmem:[#allocation8 + $0x3c] sm:$0xf] %v378_v5  ;;  %v920_v55 = vrot.slane %v880_v49, %v919_v43 }
  0x16   :  { %1484 = vmatprep.subr.bf16.mxu0 %v697_v2  ;;  %1511 = vmatprep.subr.bf16.mxu1 %v697_v2  ;;  %v1526_v10 = vld [vmem:[#allocation8 + $0x28] sm:$0xff]   ;;  %v1111_v40 = vpack.c.bf16 %v1109_v36, %v1109_v36 }
  0x18   :  { %v1527_v11 = vld [vmem:[#allocation8 + $0x10] sm:$0xff]   ;;  %vm1112_vm1 = vcmp.ne.s16.totalorder %v1111_v40, 0 }
  0x19   :  { %1485 = vmatpush3.bf16.msra.mxu0 %v697_v2  ;;  %1519 = vmatpush3.bf16.msra.mxu1 %v697_v2  ;;  %v1528_v12 = vld [vmem:[#allocation8 + $0x30] sm:$0xff]   ;;  %v1723_v44 = vsel %vm1112_vm1, %v1531_v33, %v1108_v38  ;;  %v1725_v45 = vsel %vm1112_vm1, %v1532_v34, %v1108_v38  ;;  %v1727_v46 = vsel %vm1112_vm1, %v1533_v37, %v1108_v38 }
  0x1a   :  { %1486 = vmatprep.subr.bf16.mxu0 %v698_v6  ;;  %1512 = vmatprep.subr.bf16.mxu1 %v698_v6  ;;  %v1529_v13 = vld [vmem:[#allocation8 + $0x18] sm:$0xff]   ;;  %v1729_v47 = vsel %vm1112_vm1, %v1534_v39, %v1108_v38  ;;  %v1737_v50 = vsel %vm1112_vm1, %v1535_v41, %v1108_v38  ;;  %v1739_v51 = vsel %vm1112_vm1, %v1536_v4, %v1108_v38  ;;  %v1374_v56 = vunpack.c.l.bf16 %v1723_v44 }
  0x1b   :  { %v1741_v52 = vsel %vm1112_vm1, %v1537_v1, %v1108_v38  ;;  %v1743_v54 = vsel %vm1112_vm1, %v1538_v48, %v1108_v38  ;;  %v1375_v57 = vunpack.c.h.bf16 %v1723_v44  ;;  %v1386_v32 = vunpack.c.l.bf16 %v1729_v47 }
  0x1c   :  { %v1530_v14 = vld [vmem:[#allocation8 + $0x38] sm:$0xff]   ;;  %v1387_v33 = vunpack.c.h.bf16 %v1729_v47  ;;  %v1390_v34 = vunpack.c.l.bf16 %v1737_v50  ;;  %v1391_v35 = vunpack.c.h.bf16 %v1737_v50  ;;  %v1394_v36 = vunpack.c.l.bf16 %v1739_v51 }
  0x1d   :  { %1487 = vmatpush3.bf16.msra.mxu0 %v698_v6  ;;  %1520 = vmatpush3.bf16.msra.mxu1 %v698_v6  ;;  %v1395_v37 = vunpack.c.h.bf16 %v1739_v51  ;;  %v1398_v38 = vunpack.c.l.bf16 %v1741_v52  ;;  %v1399_v39 = vunpack.c.h.bf16 %v1741_v52  ;;  %v1402_v40 = vunpack.c.l.bf16 %v1743_v54 }
  0x1e   :  { %1488 = vmatprep.subr.bf16.mxu0 %v699_v8  ;;  %1513 = vmatprep.subr.bf16.mxu1 %v699_v8  ;;  %v1403_v41 = vunpack.c.h.bf16 %v1743_v54 }
  0x21   :  { %1489 = vmatpush3.bf16.msra.mxu0 %v699_v8  ;;  %1521 = vmatpush3.bf16.msra.mxu1 %v699_v8 }
  0x24   :  { %1491 = vmatmul.mubr.bf16.vlgmr.msra.gmra.mrb[0].mxu0 %v1525_v9  ;;  %1499 = vmatmul.mubr.bf16.vlgmr.msra.gmra.mrb[0].mxu1 %v1526_v10 }
  0x25   :  { %1494 = vmatprep.mubr.bf16.mxu0 %v1527_v11  ;;  %1502 = vmatprep.mubr.bf16.mxu1 %v1528_v12 }
  0x2c   :  { %1495 = vmatmul.mubr.bf16.gmra.mrb[4].mxu0 %v1529_v13  ;;  %1503 = vmatmul.mubr.bf16.gmra.mrb[4].mxu1 %v1530_v14 }
  0xf7   :  { %v1492_v15 = vpop.f32.mrb[0].mxu0  ;;  %v1500_v16 = vpop.f32.mrb[0].mxu1 }
  0xf8   :  { %v782_v17 = vpop.f32.mrb[1].mxu0  ;;  %v814_v18 = vpop.f32.mrb[1].mxu1  ;;  %v903_v60 = vmul.f32 %v1492_v15, %v900_v53  ;;  %v911_v7 = vmul.f32 %v1500_v16, %v900_v53 }
  0xf9   :  { %v1493_v19 = vpop.f32.mrb[2].mxu0  ;;  %v1501_v20 = vpop.f32.mrb[2].mxu1  ;;  %v901_v58 = vmul.f32 %v900_v53, %v782_v17  ;;  %v909_v3 = vmul.f32 %v900_v53, %v814_v18 }
  0xfa   :  { %v785_v21 = vpop.f32.mrb[3].mxu0  ;;  %v817_v22 = vpop.f32.mrb[3].mxu1  ;;  %v904_v61 = vmul.f32 %v1493_v19, %v900_v53  ;;  %v912_v6 = vmul.f32 %v1501_v20, %v900_v53  ;;  %v923_v14 = vadd.f32 %v920_v55, %v903_v60 }
  0xfb   :  { %v902_v59 = vmul.f32 %v900_v53, %v785_v21  ;;  %v910_v5 = vmul.f32 %v900_v53, %v817_v22  ;;  %v921_v12 = vadd.f32 %v920_v55, %v901_v58 }
  0xfc   :  { %v924_v31 = vadd.f32 %v920_v55, %v904_v61  ;;  %v971_v43 = vmul.f32 0.5, %v923_v14 }
  0xfd   :  { %v922_v13 = vadd.f32 %v920_v55, %v902_v59  ;;  %v969_v42 = vmul.f32 0.5, %v921_v12 }
  0xfe   :  { %v972_v1 = vmul.f32 0.5, %v924_v31 }
  0xff   :  { %v1496_v23 = vpop.f32.mrb[4].mxu0  ;;  %v1504_v24 = vpop.f32.mrb[4].mxu1  ;;  %v970_v4 = vmul.f32 0.5, %v922_v13  ;;  %v985_v60 = vadd.f32 %v1374_v56, %v969_v42 }
 0x100   :  { %v798_v25 = vpop.f32.mrb[5].mxu0  ;;  %v830_v26 = vpop.f32.mrb[5].mxu1  ;;  %v907_v0 = vmul.f32 %v1496_v23, %v900_v53  ;;  %v915_v10 = vmul.f32 %v1504_v24, %v900_v53  ;;  %v931_v23 = vadd.f32 %v920_v55, %v911_v7  ;;  %v1379_v24 = vunpack.c.h.bf16 %v1725_v45 }
 0x101   :  { %v1497_v27 = vpop.f32.mrb[6].mxu0  ;;  %v1505_v28 = vpop.f32.mrb[6].mxu1  ;;  %v905_v62 = vmul.f32 %v900_v53, %v798_v25  ;;  %v913_v8 = vmul.f32 %v900_v53, %v830_v26  ;;  %v929_v25 = vadd.f32 %v920_v55, %v909_v3  ;;  %v1378_v26 = vunpack.c.l.bf16 %v1725_v45 }
 0x102   :  { %v801_v29 = vpop.f32.mrb[7].mxu0  ;;  %v833_v30 = vpop.f32.mrb[7].mxu1  ;;  %v908_v2 = vmul.f32 %v1497_v27, %v900_v53  ;;  %v916_v11 = vmul.f32 %v1505_v28, %v900_v53  ;;  %v927_v15 = vadd.f32 %v920_v55, %v907_v0  ;;  %v932_v27 = vadd.f32 %v920_v55, %v912_v6 }
 0x103   :  { %v906_v63 = vmul.f32 %v900_v53, %v801_v29  ;;  %v914_v9 = vmul.f32 %v900_v53, %v833_v30  ;;  %v925_v17 = vadd.f32 %v920_v55, %v905_v62  ;;  %v930_v29 = vadd.f32 %v920_v55, %v910_v5 }
 0x104   :  { %v928_v19 = vadd.f32 %v920_v55, %v908_v2  ;;  %v933_v18 = vadd.f32 %v920_v55, %v913_v8  ;;  %v935_v16 = vadd.f32 %v920_v55, %v915_v10  ;;  %v936_v20 = vadd.f32 %v920_v55, %v916_v11 }
 0x105   :  { %v926_v21 = vadd.f32 %v920_v55, %v906_v63  ;;  %v934_v22 = vadd.f32 %v920_v55, %v914_v9  ;;  %v1382_v28 = vunpack.c.l.bf16 %v1727_v46  ;;  %v1383_v30 = vunpack.c.h.bf16 %v1727_v46 }
 0x106   :  { %v973_v45 = vmul.f32 0.5, %v925_v17  ;;  %v975_v47 = vmul.f32 0.5, %v927_v15  ;;  %v976_v48 = vmul.f32 0.5, %v928_v19  ;;  %v977_v49 = vmul.f32 0.5, %v929_v25 }
 0x107   :  { %v974_v46 = vmul.f32 0.5, %v926_v21  ;;  %v978_v50 = vmul.f32 0.5, %v930_v29  ;;  %v979_v53 = vmul.f32 0.5, %v931_v23  ;;  %v980_v51 = vmul.f32 0.5, %v932_v27 }
 0x108   :  { %v981_v55 = vmul.f32 0.5, %v933_v18  ;;  %v982_v58 = vmul.f32 0.5, %v934_v22  ;;  %v983_v59 = vmul.f32 0.5, %v935_v16  ;;  %v984_v52 = vmul.f32 0.5, %v936_v20 }
 0x109   :  { %v986_v54 = vadd.f32 %v1375_v57, %v970_v4  ;;  %v987_v61 = vadd.f32 %v1378_v26, %v971_v43  ;;  %v988_v62 = vadd.f32 %v1379_v24, %v972_v1  ;;  %v989_v63 = vadd.f32 %v1382_v28, %v973_v45 }
 0x10a   :  { %v990_v0 = vadd.f32 %v1383_v30, %v974_v46  ;;  %v991_v2 = vadd.f32 %v1386_v32, %v975_v47  ;;  %v992_v3 = vadd.f32 %v1387_v33, %v976_v48  ;;  %v993_v5 = vadd.f32 %v1390_v34, %v977_v49 }
 0x10b   :  { %v994_v7 = vadd.f32 %v1391_v35, %v978_v50  ;;  %v995_v6 = vadd.f32 %v1394_v36, %v979_v53  ;;  %v996_v8 = vadd.f32 %v1395_v37, %v980_v51  ;;  %v997_v9 = vadd.f32 %v1398_v38, %v981_v55 }
 0x10c   :  { %v998_v10 = vadd.f32 %v1399_v39, %v982_v58  ;;  %v999_v11 = vadd.f32 %v1402_v40, %v983_v59  ;;  %v1000_v12 = vadd.f32 %v1403_v41, %v984_v52  ;;  %v1001_v13 = vmax.f32 %v985_v60, 0.0 }
 0x10d   :  { %v1002_v14 = vmax.f32 %v986_v54, 0.0  ;;  %v1003_v56 = vmax.f32 %v987_v61, 0.0  ;;  %v1004_v31 = vmax.f32 %v988_v62, 0.0  ;;  %v1005_v44 = vmax.f32 %v989_v63, 0.0 }
 0x10e   :  { %v1006_v57 = vmax.f32 %v990_v0, 0.0  ;;  %v1007_v17 = vmax.f32 %v991_v2, 0.0  ;;  %v1008_v21 = vmax.f32 %v992_v3, 0.0  ;;  %v1009_v15 = vmax.f32 %v993_v5, 0.0 }
 0x10f   :  { %v1010_v19 = vmax.f32 %v994_v7, 0.0  ;;  %v1011_v25 = vmax.f32 %v995_v6, 0.0  ;;  %v1012_v29 = vmax.f32 %v996_v8, 0.0  ;;  %v1013_v23 = vmax.f32 %v997_v9, 0.0 }
 0x110   :  { %v1014_v27 = vmax.f32 %v998_v10, 0.0  ;;  %v1015_v18 = vmax.f32 %v999_v11, 0.0  ;;  %v1016_v22 = vmax.f32 %v1000_v12, 0.0  ;;  %v1407_v16 = vpack.c.bf16 %v1002_v14, %v1001_v13 }
 0x111   :  { %v1412_v20 = vpack.c.bf16 %v1004_v31, %v1003_v56  ;;  %v1417_v26 = vpack.c.bf16 %v1006_v57, %v1005_v44  ;;  %v1422_v24 = vpack.c.bf16 %v1008_v21, %v1007_v17  ;;  %v1427_v28 = vpack.c.bf16 %v1010_v19, %v1009_v15 }
 0x112   :  { %v1432_v30 = vpack.c.bf16 %v1012_v29, %v1011_v25  ;;  %1408 = vst [vmem:[%s1795_s6] sm:$0xff] %v1407_v16   ;;  %v1437_v32 = vpack.c.bf16 %v1014_v27, %v1013_v23  ;;  %v1442_v33 = vpack.c.bf16 %v1016_v22, %v1015_v18 }
 0x113   :  { %1451 = vst [vmem:[%s1795_s6 + $0x8] sm:$0xff] %v1412_v20   ;;  %1452 = vst [vmem:[%s1795_s6 + $0x10] sm:$0xff] %v1417_v26  }
 0x114   :  { %1453 = vst [vmem:[%s1795_s6 + $0x18] sm:$0xff] %v1422_v24   ;;  %1454 = vst [vmem:[%s1795_s6 + $0x20] sm:$0xff] %v1427_v28  }
 0x115   :  { %1455 = vst [vmem:[%s1795_s6 + $0x28] sm:$0xff] %v1432_v30   ;;  %1456 = vst [vmem:[%s1795_s6 + $0x30] sm:$0xff] %v1437_v32  }
 0x116   :  { %1457 = vst [vmem:[%s1795_s6 + $0x38] sm:$0xff] %v1442_v33  }

// kernel: _lambda_.31
= control target key start
LH: loop header
LB: loop body
LE: loop exit
PB: predicated region body
PF: predicated region fallthrough
CT: control target
= control target key end

     0   :  { %s388_s0 = inlined_call_operand.vmem [shape: bf16[128,128], index: 0, kind: input, shape index: {}]   ;;  %s389_s1 = inlined_call_operand.vmem [shape: f32[2,128], index: 1, kind: input, shape index: {}]   ;;  %s390_s2 = inlined_call_operand.vmem [shape: bf16[32,72], index: 2, kind: input, shape index: {}]   ;;  %s391_s3 = inlined_call_operand.<no memory space> [shape: bf16[], index: 3, kind: input, shape index: {}]   ;;  %s392_s4 = inlined_call_operand.vmem [shape: bf16[32,128], index: 4, kind: output, shape index: {}]  }
   0x1   :  { %v9_v0 = vstv %s391_s3 }
   0x2   :  { %v10_v1 = vunpack.i.l.bf16 %v9_v0 }
   0x3   :  { %v123_v2 = vld [vmem:[%s388_s0] sm:$0xff]  ;;  %v124_v3 = vld [vmem:[%s388_s0 + $0x8] sm:$0xff]  ;;  %v32_v4 = vlaneseq  ;;  %v125_v10 = vld [vmem:[%s388_s0 + $0x10] sm:$0xff]  ;;  %v316_v15 = vmov 0.0  }
   0x4   :  { %293 = vmatprep.subr.bf16.mxu0 %v123_v2  ;;  %v29_v5 = vld [vmem:[%s390_s2] sm:$0xff]   ;;  %v260_v9 = vld [vmem:[%s390_s2 + $0x8] sm:$0xff]   ;;  %v126_v22 = vld [vmem:[%s388_s0 + $0x18] sm:$0xff] }
   0x5   :  { %294 = vmatpush3.bf16.msra.mxu0 %v123_v2  ;;  %v354_v6 = vand.u32 127, %v32_v4  ;;  %v30_v7 = vunpack.c.l.bf16 %v29_v5  ;;  %v51_v8 = vunpack.c.h.bf16 %v29_v5  ;;  %v73_v11 = vunpack.c.l.bf16 %v260_v9  ;;  %v127_v23 = vld [vmem:[%s388_s0 + $0x20] sm:$0xff]  ;;  %v128_v25 = vld [vmem:[%s388_s0 + $0x28] sm:$0xff]  ;;  %v129_v26 = vld [vmem:[%s388_s0 + $0x30] sm:$0xff] }
   0x6   :  { %295 = vmatprep.subr.bf16.mxu0 %v124_v3  ;;  %v95_v12 = vunpack.c.h.bf16 %v260_v9  ;;  %v130_v27 = vld [vmem:[%s388_s0 + $0x38] sm:$0xff]  ;;  %v209_v29 = vshrl.u32 %v32_v4, 7  ;;  %v203_v31 = vld [vmem:[%s389_s1] sm:$0x3] }
   0x7   :  { %vm35_vm0 = vcmp.lt.s32.totalorder %v354_v6, 72  ;;  %vm226_vm1 = vcmp.lt.s32.totalorder %v354_v6, 16 }
   0x8   :  { %v36_v13 = vsel %vm35_vm0, %v30_v7, %v10_v1  ;;  %v57_v14 = vsel %vm35_vm0, %v51_v8, %v10_v1  ;;  %v79_v18 = vsel %vm35_vm0, %v73_v11, %v10_v1  ;;  %v101_v19 = vsel %vm35_vm0, %v95_v12, %v10_v1 }
   0x9   :  { %296 = vmatpush3.bf16.msra.mxu0 %v124_v3  ;;  %v37_v16 = vpack.c.bf16 %v316_v15, %v36_v13  ;;  %v59_v17 = vpack.c.bf16 %v316_v15, %v57_v14  ;;  %v81_v20 = vpack.c.bf16 %v316_v15, %v79_v18  ;;  %v103_v21 = vpack.c.bf16 %v316_v15, %v101_v19 }
   0xa   :  { %297 = vmatprep.subr.bf16.mxu0 %v125_v10  ;;  %v210_v30 = vsub.s32 0, %v209_v29  ;;  %v218_v32 = vsub.s32 1, %v209_v29 }
   0xb   :  { %39 = vst [vmem:[#allocation8] sm:$0xf] %v37_v16  ;;  %61 = vst [vmem:[#allocation8 + $0x4] sm:$0xf] %v59_v17 }
   0xc   :  { %83 = vst [vmem:[#allocation8 + $0x8] sm:$0xf] %v81_v20  ;;  %105 = vst [vmem:[#allocation8 + $0xc] sm:$0xf] %v103_v21  ;;  %v211_v33 = vrot.slane %v203_v31, %v210_v30  ;;  %v219_v34 = vrot.slane %v203_v31, %v218_v32 }
   0xd   :  { %298 = vmatpush3.bf16.msra.mxu0 %v125_v10 }
   0xe   :  { %299 = vmatprep.subr.bf16.mxu0 %v126_v22 }
  0x11   :  { %300 = vmatpush3.bf16.msra.mxu0 %v126_v22 }
  0x12   :  { %301 = vmatprep.subr.bf16.mxu0 %v127_v23  ;;  %v314_v24 = vld [vmem:[#allocation8] sm:$0xff]  }
  0x13   :  { %309 = vmatprep.mubr.bf16.mxu0 %v314_v24  ;;  %v315_v28 = vld [vmem:[#allocation8 + $0x8] sm:$0xff]  }
  0x15   :  { %302 = vmatpush3.bf16.msra.mxu0 %v127_v23 }
  0x16   :  { %303 = vmatprep.subr.bf16.mxu0 %v128_v25 }
  0x19   :  { %304 = vmatpush3.bf16.msra.mxu0 %v128_v25 }
  0x1a   :  { %305 = vmatprep.subr.bf16.mxu0 %v129_v26 }
  0x1d   :  { %306 = vmatpush3.bf16.msra.mxu0 %v129_v26 }
  0x1e   :  { %307 = vmatprep.subr.bf16.mxu0 %v130_v27 }
  0x21   :  { %308 = vmatpush3.bf16.msra.mxu0 %v130_v27 }
  0x24   :  { %310 = vmatmul.mubr.bf16.vlgmr.msra.gmra.mrb[0].mxu0 %v315_v28 }
  0xf7   :  { %v311_v35 = vpop.f32.mrb[0].mxu0 }
  0xf8   :  { %v214_v36 = vmul.f32 %v311_v35, %v211_v33  ;;  %v177_v37 = vpop.f32.mrb[1].mxu0 }
  0xf9   :  { %v212_v38 = vmul.f32 %v211_v33, %v177_v37  ;;  %v312_v39 = vpop.f32.mrb[2].mxu0 }
  0xfa   :  { %v222_v40 = vadd.f32 %v219_v34, %v214_v36  ;;  %v215_v41 = vmul.f32 %v312_v39, %v211_v33  ;;  %v180_v42 = vpop.f32.mrb[3].mxu0 }
  0xfb   :  { %v220_v43 = vadd.f32 %v219_v34, %v212_v38  ;;  %v213_v44 = vmul.f32 %v211_v33, %v180_v42 }
  0xfc   :  { %v229_v45 = vmax.f32 %v222_v40, 0.0  ;;  %v223_v46 = vadd.f32 %v219_v34, %v215_v41 }
  0xfd   :  { %v227_v47 = vmax.f32 %v220_v43, 0.0  ;;  %v221_v48 = vadd.f32 %v219_v34, %v213_v44 }
  0xfe   :  { %v230_v49 = vmax.f32 %v223_v46, 0.0  ;;  %v233_v51 = vsel %vm226_vm1, %v229_v45, %v222_v40 }
  0xff   :  { %v228_v50 = vmax.f32 %v221_v48, 0.0  ;;  %v231_v53 = vsel %vm226_vm1, %v227_v47, %v220_v43 }
 0x100   :  { %v234_v52 = vsel %vm226_vm1, %v230_v49, %v223_v46 }
 0x101   :  { %v280_v54 = vpack.c.bf16 %v234_v52, %v233_v51  ;;  %v232_v55 = vsel %vm226_vm1, %v228_v50, %v221_v48 }
 0x102   :  { %v275_v56 = vpack.c.bf16 %v232_v55, %v231_v53 }
 0x103   :  { %282 = vst [vmem:[%s392_s4 + $0x8] sm:$0xff] %v280_v54  }
 0x104   :  { %276 = vst [vmem:[%s392_s4] sm:$0xff] %v275_v56  }

// kernel: _lambda_.27
= control target key start
LH: loop header
LB: loop body
LE: loop exit
PB: predicated region body
PF: predicated region fallthrough
CT: control target
= control target key end

     0   :  { %s703_s0 = inlined_call_operand.vmem [shape: bf16[256,128], index: 0, kind: input, shape index: {}]   ;;  %s704_s1 = inlined_call_operand.vmem [shape: f32[2,128], index: 1, kind: input, shape index: {}]   ;;  %s705_s2 = inlined_call_operand.vmem [shape: bf16[32,144], index: 2, kind: input, shape index: {}]   ;;  %s706_s3 = inlined_call_operand.<no memory space> [shape: bf16[], index: 3, kind: input, shape index: {}]   ;;  %s707_s4 = inlined_call_operand.vmem [shape: bf16[32,16], index: 4, kind: input, shape index: {}]   ;;  %s708_s5 = inlined_call_operand.vmem [shape: bf16[32,128], index: 5, kind: output, shape index: {}]  }
   0x1   :  { %v10_v0 = vstv %s706_s3 }
   0x2   :  { %v602_v1 = vunpack.i.l.bf16 %v10_v0 }
   0x3   :  { %v277_v2 = vld [vmem:[%s703_s0 + $0x40] sm:$0xff]  ;;  %v278_v4 = vld [vmem:[%s703_s0 + $0x48] sm:$0xff]  ;;  %v52_v5 = vlaneseq  ;;  %v279_v8 = vld [vmem:[%s703_s0 + $0x50] sm:$0xff]  ;;  %v568_v24 = vmov 0.0  }
   0x4   :  { %v269_v3 = vld [vmem:[%s703_s0] sm:$0xff]  ;;  %517 = vmatprep.subr.bf16.mxu0 %v277_v2  ;;  %545 = vmatprep.subr.bf16.mxu1 %v277_v2  ;;  %v270_v7 = vld [vmem:[%s703_s0 + $0x8] sm:$0xff]  ;;  %v465_v15 = vld [vmem:[%s705_s2 + $0x10] sm:$0xf] }
   0x5   :  { %518 = vmatpush3.bf16.msra.mxu0 %v269_v3  ;;  %553 = vmatpush3.bf16.msra.mxu1 %v269_v3  ;;  %v614_v6 = vand.u32 127, %v52_v5  ;;  %v28_v10 = vld [vmem:[%s705_s2] sm:$0xf]  ;;  %v462_v11 = vld [vmem:[%s705_s2 + $0x4] ss:$8 sps:$4 sm:$0xff]   ;;  %v271_v16 = vld [vmem:[%s703_s0 + $0x10] sm:$0xff] }
   0x6   :  { %519 = vmatprep.subr.bf16.mxu0 %v278_v4  ;;  %546 = vmatprep.subr.bf16.mxu1 %v278_v4  ;;  %38 = vst [vmem:[#allocation13] sm:$0xf] %v28_v10  ;;  %v50_v12 = vunpack.c.l.bf16 %v462_v11  ;;  %v463_v13 = vld [vmem:[%s705_s2 + $0x8] sm:$0xf]  ;;  %v85_v14 = vunpack.c.h.bf16 %v462_v11  ;;  %108 = vst [vmem:[#allocation13 + $0x10] sm:$0xf] %v465_v15 }
   0x7   :  { %v54_v9 = vadd.s32 128, %v614_v6  ;;  %73 = vst [vmem:[#allocation13 + $0x8] sm:$0xf] %v463_v13  ;;  %v466_v17 = vld [vmem:[%s705_s2 + $0x14] ss:$8 sps:$4 sm:$0xff]   ;;  %v281_v32 = vld [vmem:[%s703_s0 + $0x60] sm:$0xff] }
   0x8   :  { %v467_v18 = vld [vmem:[%s705_s2 + $0x18] sm:$0xf]  ;;  %v120_v22 = vunpack.c.l.bf16 %v466_v17  ;;  %v155_v23 = vunpack.c.h.bf16 %v466_v17  ;;  %v273_v33 = vld [vmem:[%s703_s0 + $0x20] sm:$0xff]  ;;  %v282_v34 = vld [vmem:[%s703_s0 + $0x68] sm:$0xff]  ;;  %vm434_vm1 = vcmp.lt.s32.totalorder %v614_v6, 16  ;;  %v371_v58 = vshrl.u32 %v52_v5, 7 }
   0x9   :  { %520 = vmatpush3.bf16.msra.mxu0 %v270_v7  ;;  %554 = vmatpush3.bf16.msra.mxu1 %v270_v7  ;;  %vm55_vm0 = vcmp.lt.s32.totalorder %v54_v9, 144  ;;  %v280_v19 = vld [vmem:[%s703_s0 + $0x58] sm:$0xff]  ;;  %143 = vst [vmem:[#allocation13 + $0x18] sm:$0xf] %v467_v18  ;;  %v274_v35 = vld [vmem:[%s703_s0 + $0x28] sm:$0xff]  ;;  %v283_v37 = vld [vmem:[%s703_s0 + $0x70] sm:$0xff] }
   0xa   :  { %521 = vmatprep.subr.bf16.mxu0 %v279_v8  ;;  %547 = vmatprep.subr.bf16.mxu1 %v279_v8  ;;  %v56_v20 = vsel %vm55_vm0, %v50_v12, %v602_v1  ;;  %v91_v21 = vsel %vm55_vm0, %v85_v14, %v602_v1  ;;  %v126_v27 = vsel %vm55_vm0, %v120_v22, %v602_v1  ;;  %v272_v29 = vld [vmem:[%s703_s0 + $0x18] sm:$0xff]  ;;  %v275_v39 = vld [vmem:[%s703_s0 + $0x30] sm:$0xff]  ;;  %v430_v56 = vld [vmem:[%s707_s4] sm:$0xff]   ;;  %v372_v0 = vsub.s32 0, %v371_v58 }
   0xb   :  { %v58_v25 = vpack.c.bf16 %v568_v24, %v56_v20  ;;  %v93_v26 = vpack.c.bf16 %v568_v24, %v91_v21  ;;  %v161_v28 = vsel %vm55_vm0, %v155_v23, %v602_v1  ;;  %v128_v30 = vpack.c.bf16 %v568_v24, %v126_v27  ;;  %v284_v40 = vld [vmem:[%s703_s0 + $0x78] sm:$0xff]  ;;  %v477_v57 = vld [vmem:[%s707_s4 + $0x8] sm:$0xff]   ;;  %v365_v63 = vld [vmem:[%s704_s1] sm:$0x3] }
   0xc   :  { %v163_v31 = vpack.c.bf16 %v568_v24, %v161_v28  ;;  %v276_v41 = vld [vmem:[%s703_s0 + $0x38] sm:$0xff]  ;;  %v431_v59 = vunpack.c.l.bf16 %v430_v56  ;;  %v438_v60 = vunpack.c.h.bf16 %v430_v56  ;;  %v445_v61 = vunpack.c.l.bf16 %v477_v57 }
   0xd   :  { %522 = vmatpush3.bf16.msra.mxu0 %v271_v16  ;;  %555 = vmatpush3.bf16.msra.mxu1 %v271_v16  ;;  %60 = vst [vmem:[#allocation13 + $0x4] sm:$0xf] %v58_v25  ;;  %95 = vst [vmem:[#allocation13 + $0xc] sm:$0xf] %v93_v26  ;;  %v452_v62 = vunpack.c.h.bf16 %v477_v57  ;;  %v380_v2 = vsub.s32 1, %v371_v58  ;;  %v373_v9 = vrot.slane %v365_v63, %v372_v0 }
   0xe   :  { %523 = vmatprep.subr.bf16.mxu0 %v280_v19  ;;  %548 = vmatprep.subr.bf16.mxu1 %v280_v19  ;;  %130 = vst [vmem:[#allocation13 + $0x14] sm:$0xf] %v128_v30  ;;  %165 = vst [vmem:[#allocation13 + $0x1c] sm:$0xf] %v163_v31  ;;  %v562_v42 = vld [vmem:[#allocation13] ss:$8 sps:$4 sm:$0xff]   ;;  %v435_v3 = vsel %vm434_vm1, %v431_v59, %v602_v1  ;;  %v442_v4 = vsel %vm434_vm1, %v438_v60, %v602_v1 }
   0xf   :  { %v449_v6 = vsel %vm434_vm1, %v445_v61, %v602_v1  ;;  %v456_v7 = vsel %vm434_vm1, %v452_v62, %v602_v1  ;;  %v490_v8 = vpack.c.bf16 %v442_v4, %v435_v3  ;;  %v381_v10 = vrot.slane %v365_v63, %v380_v2 }
  0x10   :  { %v565_v43 = vld [vmem:[#allocation13 + $0x10] ss:$8 sps:$4 sm:$0xff]   ;;  %v495_v5 = vpack.c.bf16 %v456_v7, %v449_v6 }
  0x11   :  { %524 = vmatpush3.bf16.msra.mxu0 %v272_v29  ;;  %556 = vmatpush3.bf16.msra.mxu1 %v272_v29  ;;  %v499_v15 = vunpack.c.l.bf16 %v490_v8  ;;  %v500_v16 = vunpack.c.h.bf16 %v490_v8 }
  0x12   :  { %525 = vmatprep.subr.bf16.mxu0 %v281_v32  ;;  %549 = vmatprep.subr.bf16.mxu1 %v281_v32  ;;  %v503_v17 = vunpack.c.l.bf16 %v495_v5  ;;  %v504_v22 = vunpack.c.h.bf16 %v495_v5 }
  0x14   :  { %v564_v36 = vld [vmem:[#allocation13 + $0x4] ss:$8 sps:$4 sm:$0xff]  }
  0x15   :  { %526 = vmatpush3.bf16.msra.mxu0 %v273_v33  ;;  %557 = vmatpush3.bf16.msra.mxu1 %v273_v33  ;;  %v567_v38 = vld [vmem:[#allocation13 + $0x14] ss:$8 sps:$4 sm:$0xff]  }
  0x16   :  { %527 = vmatprep.subr.bf16.mxu0 %v282_v34  ;;  %550 = vmatprep.subr.bf16.mxu1 %v282_v34 }
  0x17   :  { %337 = vmatprep.mubr.bf16.mxu0 %v564_v36  ;;  %345 = vmatprep.mubr.bf16.mxu1 %v567_v38 }
  0x19   :  { %528 = vmatpush3.bf16.msra.mxu0 %v274_v35  ;;  %558 = vmatpush3.bf16.msra.mxu1 %v274_v35 }
  0x1a   :  { %529 = vmatprep.subr.bf16.mxu0 %v283_v37  ;;  %551 = vmatprep.subr.bf16.mxu1 %v283_v37 }
  0x1d   :  { %530 = vmatpush3.bf16.msra.mxu0 %v275_v39  ;;  %559 = vmatpush3.bf16.msra.mxu1 %v275_v39 }
  0x1e   :  { %531 = vmatprep.subr.bf16.mxu0 %v284_v40  ;;  %552 = vmatprep.subr.bf16.mxu1 %v284_v40 }
  0x21   :  { %532 = vmatpush3.bf16.msra.mxu0 %v276_v41  ;;  %560 = vmatpush3.bf16.msra.mxu1 %v276_v41 }
  0x24   :  { %338 = vmatmul.mubr.bf16.vlgmr.msra.gmra.mrb[0].mxu0 %v562_v42  ;;  %346 = vmatmul.mubr.bf16.vlgmr.msra.gmra.mrb[0].mxu1 %v565_v43 }
  0xf7   :  { %v533_v44 = vpop.f32.mrb[0].mxu0  ;;  %v539_v45 = vpop.f32.mrb[0].mxu1 }
  0xf8   :  { %v534_v46 = vpop.f32.mrb[1].mxu0  ;;  %v540_v47 = vpop.f32.mrb[1].mxu1 }
  0xf9   :  { %v535_v48 = vadd.f32 %v534_v46, %v533_v44  ;;  %v541_v49 = vadd.f32 %v540_v47, %v539_v45  ;;  %v536_v50 = vpop.f32.mrb[2].mxu0  ;;  %v542_v51 = vpop.f32.mrb[2].mxu1 }
  0xfa   :  { %v537_v52 = vpop.f32.mrb[3].mxu0  ;;  %v543_v53 = vpop.f32.mrb[3].mxu1 }
  0xfb   :  { %v538_v54 = vadd.f32 %v537_v52, %v536_v50  ;;  %v544_v55 = vadd.f32 %v543_v53, %v542_v51  ;;  %v374_v11 = vmul.f32 %v535_v48, %v373_v9  ;;  %v376_v13 = vmul.f32 %v541_v49, %v373_v9 }
  0xfd   :  { %v375_v12 = vmul.f32 %v538_v54, %v373_v9  ;;  %v377_v14 = vmul.f32 %v544_v55, %v373_v9  ;;  %v382_v18 = vadd.f32 %v381_v10, %v374_v11  ;;  %v384_v20 = vadd.f32 %v381_v10, %v376_v13 }
  0xff   :  { %v383_v19 = vadd.f32 %v381_v10, %v375_v12  ;;  %v385_v21 = vadd.f32 %v381_v10, %v377_v14  ;;  %v394_v23 = vmul.f32 0.6, %v382_v18  ;;  %v396_v25 = vmul.f32 0.6, %v384_v20 }
 0x101   :  { %v395_v24 = vmul.f32 0.6, %v383_v19  ;;  %v397_v1 = vmul.f32 0.6, %v385_v21  ;;  %v398_v26 = vadd.f32 %v499_v15, %v394_v23  ;;  %v400_v28 = vadd.f32 %v503_v17, %v396_v25 }
 0x103   :  { %v399_v27 = vadd.f32 %v500_v16, %v395_v24  ;;  %v401_v29 = vadd.f32 %v504_v22, %v397_v1  ;;  %v402_v30 = vmax.f32 %v398_v26, 0.0  ;;  %v404_v32 = vmax.f32 %v400_v28, 0.0 }
 0x105   :  { %v403_v31 = vmax.f32 %v399_v27, 0.0  ;;  %v405_v33 = vmax.f32 %v401_v29, 0.0 }
 0x107   :  { %v508_v34 = vpack.c.bf16 %v403_v31, %v402_v30  ;;  %v513_v35 = vpack.c.bf16 %v405_v33, %v404_v32 }
 0x109   :  { %509 = vst [vmem:[%s708_s5] sm:$0xff] %v508_v34   ;;  %516 = vst [vmem:[%s708_s5 + $0x8] sm:$0xff] %v513_v35  }

// kernel: _lambda_.30
= control target key start
LH: loop header
LB: loop body
LE: loop exit
PB: predicated region body
PF: predicated region fallthrough
CT: control target
= control target key end

     0   :  { %s324_s0 = inlined_call_operand.vmem [shape: bf16[256,128], index: 0, kind: input, shape index: {}]   ;;  %s325_s1 = inlined_call_operand.vmem [shape: f32[2,128], index: 1, kind: input, shape index: {}]   ;;  %s326_s2 = inlined_call_operand.vmem [shape: bf16[8,144], index: 2, kind: input, shape index: {}]   ;;  %s327_s3 = inlined_call_operand.<no memory space> [shape: bf16[], index: 3, kind: input, shape index: {}]   ;;  %s328_s4 = inlined_call_operand.vmem [shape: bf16[16,128], index: 4, kind: output, shape index: {}]  }
   0x1   :  { %v9_v0 = vstv %s327_s3 }
   0x2   :  { %v10_v1 = vunpack.i.l.bf16 %v9_v0 }
   0x3   :  { %v89_v2 = vld [vmem:[%s324_s0 + $0x40] sm:$0xff]  ;;  %v90_v4 = vld [vmem:[%s324_s0 + $0x48] sm:$0xff]  ;;  %v53_v5 = vlaneseq  ;;  %v91_v9 = vld [vmem:[%s324_s0 + $0x50] sm:$0xff]  ;;  %v231_v17 = vmov 0.0  }
   0x4   :  { %v81_v3 = vld [vmem:[%s324_s0] sm:$0xff]  ;;  %v201_v6 = vpack.c.bf16 %v10_v1, %v10_v1  ;;  %208 = vmatprep.subr.bf16.mxu0 %v89_v2  ;;  %v82_v8 = vld [vmem:[%s324_s0 + $0x8] sm:$0xff]  ;;  %v83_v14 = vld [vmem:[%s324_s0 + $0x10] sm:$0xff] }
   0x5   :  { %209 = vmatpush3.bf16.msra.mxu0 %v81_v3  ;;  %v269_v7 = vand.u32 127, %v53_v5  ;;  %v29_v11 = vld [vmem:[%s326_s2] sm:$0xf]  ;;  %v191_v12 = vld [vmem:[%s326_s2 + $0x4] sm:$0xf]  ;;  %v92_v15 = vld [vmem:[%s324_s0 + $0x58] sm:$0xff] }
   0x6   :  { %210 = vmatprep.subr.bf16.mxu0 %v90_v4  ;;  %39 = vst [vmem:[#allocation8] sm:$0xf] %v29_v11  ;;  %v51_v13 = vunpack.c.l.bf16 %v191_v12  ;;  %v84_v19 = vld [vmem:[%s324_s0 + $0x18] sm:$0xff]  ;;  %v93_v20 = vld [vmem:[%s324_s0 + $0x60] sm:$0xff]  ;;  %v94_v22 = vld [vmem:[%s324_s0 + $0x68] sm:$0xff]  ;;  %v159_v31 = vshrl.u32 %v53_v5, 7 }
   0x7   :  { %v55_v10 = vadd.s32 128, %v269_v7  ;;  %v85_v21 = vld [vmem:[%s324_s0 + $0x20] sm:$0xff]  ;;  %v86_v24 = vld [vmem:[%s324_s0 + $0x28] sm:$0xff]  ;;  %v95_v26 = vld [vmem:[%s324_s0 + $0x70] sm:$0xff]  ;;  %vm172_vm1 = vcmp.lt.s32.totalorder %v269_v7, 32 }
   0x8   :  { %v87_v27 = vld [vmem:[%s324_s0 + $0x30] sm:$0xff]  ;;  %v96_v28 = vld [vmem:[%s324_s0 + $0x78] sm:$0xff]  ;;  %v160_v32 = vsub.s32 0, %v159_v31  ;;  %v155_v33 = vld [vmem:[%s325_s1] sm:$0x3]  ;;  %v166_v34 = vsub.s32 1, %v159_v31 }
   0x9   :  { %211 = vmatpush3.bf16.msra.mxu0 %v82_v8  ;;  %vm56_vm0 = vcmp.lt.s32.totalorder %v55_v10, 144  ;;  %v88_v29 = vld [vmem:[%s324_s0 + $0x38] sm:$0xff] }
   0xa   :  { %212 = vmatprep.subr.bf16.mxu0 %v91_v9  ;;  %v57_v16 = vsel %vm56_vm0, %v51_v13, %v10_v1  ;;  %v161_v36 = vrot.slane %v155_v33, %v160_v32  ;;  %v167_v39 = vrot.slane %v155_v33, %v166_v34 }
   0xb   :  { %v59_v18 = vpack.c.bf16 %v231_v17, %v57_v16 }
   0xd   :  { %213 = vmatpush3.bf16.msra.mxu0 %v83_v14  ;;  %61 = vst [vmem:[#allocation8 + $0x4] sm:$0xf] %v59_v18 }
   0xe   :  { %214 = vmatprep.subr.bf16.mxu0 %v92_v15 }
  0x11   :  { %215 = vmatpush3.bf16.msra.mxu0 %v84_v19 }
  0x12   :  { %216 = vmatprep.subr.bf16.mxu0 %v93_v20 }
  0x14   :  { %v79_v23 = vld [vmem:[#allocation8] sm:$0xff] }
  0x15   :  { %217 = vmatpush3.bf16.msra.mxu0 %v85_v21  ;;  %v193_v25 = vcombine.high %v79_v23, %v201_v6  ;;  %v192_v30 = vcombine.low %v79_v23, %v201_v6 }
  0x16   :  { %218 = vmatprep.subr.bf16.mxu0 %v94_v22 }
  0x17   :  { %139 = vmatprep.mubr.bf16.mxu0 %v193_v25 }
  0x19   :  { %219 = vmatpush3.bf16.msra.mxu0 %v86_v24 }
  0x1a   :  { %220 = vmatprep.subr.bf16.mxu0 %v95_v26 }
  0x1d   :  { %221 = vmatpush3.bf16.msra.mxu0 %v87_v27 }
  0x1e   :  { %222 = vmatprep.subr.bf16.mxu0 %v96_v28 }
  0x21   :  { %223 = vmatpush3.bf16.msra.mxu0 %v88_v29 }
  0x24   :  { %140 = vmatmul.mubr.bf16.vlgmr.msra.gmra.mrb[0].mxu0 %v192_v30 }
  0xf7   :  { %v224_v35 = vpop.f32.mrb[0].mxu0 }
  0xf8   :  { %v225_v37 = vpop.f32.mrb[1].mxu0 }
  0xf9   :  { %v226_v38 = vadd.f32 %v225_v37, %v224_v35  ;;  %v227_v40 = vpop.f32.mrb[2].mxu0 }
  0xfa   :  { %v228_v41 = vpop.f32.mrb[3].mxu0 }
  0xfb   :  { %v162_v42 = vmul.f32 %v226_v38, %v161_v36  ;;  %v229_v43 = vadd.f32 %v228_v41, %v227_v40 }
  0xfd   :  { %v168_v44 = vadd.f32 %v167_v39, %v162_v42  ;;  %v163_v45 = vmul.f32 %v229_v43, %v161_v36 }
  0xff   :  { %v173_v46 = vmax.f32 %v168_v44, 0.0  ;;  %v169_v47 = vadd.f32 %v167_v39, %v163_v45 }
 0x101   :  { %v174_v48 = vmax.f32 %v169_v47, 0.0  ;;  %v175_v49 = vsel %vm172_vm1, %v173_v46, %v168_v44 }
 0x103   :  { %v176_v50 = vsel %vm172_vm1, %v174_v48, %v169_v47 }
 0x104   :  { %v206_v51 = vpack.c.bf16 %v176_v50, %v175_v49 }
 0x106   :  { %207 = vst [vmem:[%s328_s4] sm:$0xff] %v206_v51  }

// kernel: _lambda_.29
= control target key start
LH: loop header
LB: loop body
LE: loop exit
PB: predicated region body
PF: predicated region fallthrough
CT: control target
= control target key end

     0   :  { %s545_s0 = inlined_call_operand.vmem [shape: bf16[384,128], index: 0, kind: input, shape index: {}]   ;;  %s546_s1 = inlined_call_operand.vmem [shape: f32[2,128], index: 1, kind: input, shape index: {}]   ;;  %s547_s2 = inlined_call_operand.vmem [shape: bf16[8,288], index: 2, kind: input, shape index: {}]   ;;  %s548_s3 = inlined_call_operand.<no memory space> [shape: bf16[], index: 3, kind: input, shape index: {}]   ;;  %s549_s4 = inlined_call_operand.vmem [shape: bf16[8,32], index: 4, kind: input, shape index: {}]   ;;  %s550_s5 = inlined_call_operand.vmem [shape: bf16[16,128], index: 5, kind: output, shape index: {}]  }
   0x1   :  { %v10_v0 = vstv %s548_s3 }
   0x2   :  { %v444_v1 = vunpack.i.l.bf16 %v10_v0 }
   0x3   :  { %v149_v2 = vld [vmem:[%s545_s0 + $0x40] sm:$0xff]  ;;  %v83_v5 = vlaneseq  ;;  %v409_v7 = vmov 0.0   ;;  %v150_v8 = vld [vmem:[%s545_s0 + $0x48] sm:$0xff]  ;;  %v151_v12 = vld [vmem:[%s545_s0 + $0x50] sm:$0xff]  ;;  %vm410_vm0 = vmmov 0  }
   0x4   :  { %v141_v3 = vld [vmem:[%s545_s0] sm:$0xff]  ;;  %v336_v6 = vpack.c.bf16 %v444_v1, %v444_v1  ;;  %352 = vmatprep.subr.bf16.mxu0 %v149_v2  ;;  %383 = vmatprep.subr.bf16.mxu1 %v409_v7  ;;  %v142_v10 = vld [vmem:[%s545_s0 + $0x8] sm:$0xff]  ;;  %v143_v14 = vld [vmem:[%s545_s0 + $0x10] sm:$0xff] }
   0x5   :  { %v157_v4 = vld [vmem:[%s545_s0 + $0x80] sm:$0xff]  ;;  %353 = vmatpush3.bf16.msra.mxu0 %v141_v3  ;;  %v461_v9 = vand.u32 127, %v83_v5  ;;  %v158_v11 = vld [vmem:[%s545_s0 + $0x88] sm:$0xff]  ;;  %399 = vmatprep.mubr.msk.bf16.mxu1 %vm410_vm0, %v409_v7  ;;  %v159_v15 = vld [vmem:[%s545_s0 + $0x90] sm:$0xff]  ;;  %v274_v52 = vshrl.u32 %v83_v5, 7 }
   0x6   :  { %384 = vmatpush3.bf16.msra.mxu1 %v157_v4  ;;  %337 = vst [vmem:[#allocation13 + $0x10] sm:$0xff] %v336_v6   ;;  %354 = vmatprep.subr.bf16.mxu0 %v150_v8  ;;  %v152_v16 = vld [vmem:[%s545_s0 + $0x58] sm:$0xff]  ;;  %v37_v17 = vld [vmem:[%s547_s2] sm:$0xff]   ;;  %v320_v18 = vld [vmem:[%s547_s2 + $0x8] sm:$0xf] }
   0x7   :  { %385 = vmatprep.subr.bf16.mxu1 %v409_v7  ;;  %v85_v13 = vadd.s32 256, %v461_v9  ;;  %47 = vst [vmem:[#allocation13] sm:$0xff] %v37_v17   ;;  %v81_v19 = vunpack.c.l.bf16 %v320_v18  ;;  %v144_v20 = vld [vmem:[%s545_s0 + $0x18] sm:$0xff]  ;;  %v153_v23 = vld [vmem:[%s545_s0 + $0x60] sm:$0xff]  ;;  %v154_v27 = vld [vmem:[%s545_s0 + $0x68] sm:$0xff]  ;;  %vm313_vm2 = vcmp.lt.s32.totalorder %v461_v9, 32 }
   0x8   :  { %v160_v21 = vld [vmem:[%s545_s0 + $0x98] sm:$0xff]  ;;  %v145_v25 = vld [vmem:[%s545_s0 + $0x20] sm:$0xff]  ;;  %v146_v28 = vld [vmem:[%s545_s0 + $0x28] sm:$0xff]  ;;  %v275_v55 = vsub.s32 0, %v274_v52  ;;  %v281_v56 = vsub.s32 1, %v274_v52 }
   0x9   :  { %355 = vmatpush3.bf16.msra.mxu0 %v142_v10  ;;  %vm86_vm1 = vcmp.lt.s32.totalorder %v85_v13, 288  ;;  %v161_v26 = vld [vmem:[%s545_s0 + $0xa0] sm:$0xff]  ;;  %v162_v29 = vld [vmem:[%s545_s0 + $0xa8] sm:$0xff]  ;;  %v155_v30 = vld [vmem:[%s545_s0 + $0x70] sm:$0xff] }
   0xa   :  { %386 = vmatpush3.bf16.msra.mxu1 %v158_v11  ;;  %356 = vmatprep.subr.bf16.mxu0 %v151_v12  ;;  %v87_v22 = vsel %vm86_vm1, %v81_v19, %v444_v1  ;;  %v147_v32 = vld [vmem:[%s545_s0 + $0x30] sm:$0xff]  ;;  %v156_v34 = vld [vmem:[%s545_s0 + $0x78] sm:$0xff]  ;;  %v309_v51 = vld [vmem:[%s549_s4] sm:$0xf] }
   0xb   :  { %387 = vmatprep.subr.bf16.mxu1 %v409_v7  ;;  %v331_v24 = vpack.c.bf16 %v444_v1, %v87_v22  ;;  %v163_v33 = vld [vmem:[%s545_s0 + $0xb0] sm:$0xff]  ;;  %v148_v35 = vld [vmem:[%s545_s0 + $0x38] sm:$0xff]  ;;  %v310_v53 = vunpack.c.l.bf16 %v309_v51  ;;  %v270_v54 = vld [vmem:[%s546_s1] sm:$0x3] }
   0xc   :  { %v164_v36 = vld [vmem:[%s545_s0 + $0xb8] sm:$0xff]  ;;  %v276_v59 = vrot.slane %v270_v54, %v275_v55  ;;  %v282_v60 = vrot.slane %v270_v54, %v281_v56 }
   0xd   :  { %357 = vmatpush3.bf16.msra.mxu0 %v143_v14  ;;  %332 = vst [vmem:[#allocation13 + $0x8] sm:$0xff] %v331_v24   ;;  %v314_v57 = vsel %vm313_vm2, %v310_v53, %v444_v1 }
   0xe   :  { %388 = vmatpush3.bf16.msra.mxu1 %v159_v15  ;;  %358 = vmatprep.subr.bf16.mxu0 %v152_v16  ;;  %v407_v31 = vld [vmem:[#allocation13 + $0x4] ss:$12 sps:$4 sm:$0xff]   ;;  %v341_v58 = vpack.c.bf16 %v444_v1, %v314_v57 }
   0xf   :  { %389 = vmatprep.subr.bf16.mxu1 %v409_v7  ;;  %213 = vmatprep.mubr.bf16.mxu0 %v407_v31 }
  0x10   :  { %v345_v2 = vunpack.c.l.bf16 %v341_v58  ;;  %v346_v3 = vunpack.c.h.bf16 %v341_v58 }
  0x11   :  { %359 = vmatpush3.bf16.msra.mxu0 %v144_v20 }
  0x12   :  { %390 = vmatpush3.bf16.msra.mxu1 %v160_v21  ;;  %360 = vmatprep.subr.bf16.mxu0 %v153_v23 }
  0x13   :  { %391 = vmatprep.subr.bf16.mxu1 %v409_v7 }
  0x14   :  { %v405_v37 = vld [vmem:[#allocation13] ss:$12 sps:$4 sm:$0xff]   ;;  %v408_v38 = vld [vmem:[#allocation13 + $0x8] ss:$12 sps:$4 sm:$0xff]  }
  0x15   :  { %361 = vmatpush3.bf16.msra.mxu0 %v145_v25 }
  0x16   :  { %392 = vmatpush3.bf16.msra.mxu1 %v161_v26  ;;  %362 = vmatprep.subr.bf16.mxu0 %v154_v27 }
  0x17   :  { %393 = vmatprep.subr.bf16.mxu1 %v409_v7 }
  0x19   :  { %363 = vmatpush3.bf16.msra.mxu0 %v146_v28 }
  0x1a   :  { %394 = vmatpush3.bf16.msra.mxu1 %v162_v29  ;;  %364 = vmatprep.subr.bf16.mxu0 %v155_v30 }
  0x1b   :  { %395 = vmatprep.subr.bf16.mxu1 %v409_v7 }
  0x1d   :  { %365 = vmatpush3.bf16.msra.mxu0 %v147_v32 }
  0x1e   :  { %396 = vmatpush3.bf16.msra.mxu1 %v163_v33  ;;  %366 = vmatprep.subr.bf16.mxu0 %v156_v34 }
  0x1f   :  { %397 = vmatprep.subr.bf16.mxu1 %v409_v7 }
  0x21   :  { %367 = vmatpush3.bf16.msra.mxu0 %v148_v35 }
  0x22   :  { %398 = vmatpush3.bf16.msra.mxu1 %v164_v36 }
  0x24   :  { %214 = vmatmul.mubr.bf16.vlgmr.msra.gmra.mrb[0].mxu0 %v405_v37 }
  0x25   :  { %400 = vmatmul.mubr.bf16.vlgmr.msra.gmra.mrb[0].mxu1 %v408_v38 }
  0xf7   :  { %v368_v39 = vpop.f32.mrb[0].mxu0 }
  0xf8   :  { %v256_v40 = vpop.f32.mrb[0].mxu1  ;;  %v369_v41 = vpop.f32.mrb[1].mxu0 }
  0xf9   :  { %v401_v42 = vpop.f32.mrb[1].mxu1  ;;  %v370_v43 = vadd.f32 %v369_v41, %v368_v39  ;;  %v371_v44 = vpop.f32.mrb[2].mxu0 }
  0xfa   :  { %v259_v45 = vpop.f32.mrb[2].mxu1  ;;  %v372_v46 = vpop.f32.mrb[3].mxu0 }
  0xfb   :  { %v402_v47 = vpop.f32.mrb[3].mxu1  ;;  %v257_v48 = vadd.f32 %v370_v43, %v256_v40  ;;  %v373_v49 = vadd.f32 %v372_v46, %v371_v44 }
  0xfd   :  { %v260_v50 = vadd.f32 %v373_v49, %v259_v45  ;;  %v277_v61 = vmul.f32 %v276_v59, %v257_v48 }
  0xff   :  { %v278_v62 = vmul.f32 %v276_v59, %v260_v50  ;;  %v283_v63 = vadd.f32 %v282_v60, %v277_v61 }
 0x101   :  { %v284_v0 = vadd.f32 %v282_v60, %v278_v62  ;;  %v289_v4 = vmul.f32 0.7, %v283_v63 }
 0x103   :  { %v290_v5 = vmul.f32 0.7, %v284_v0  ;;  %v291_v6 = vadd.f32 %v345_v2, %v289_v4 }
 0x105   :  { %v292_v7 = vadd.f32 %v346_v3, %v290_v5  ;;  %v293_v8 = vmax.f32 %v291_v6, 0.0 }
 0x107   :  { %v294_v9 = vmax.f32 %v292_v7, 0.0 }
 0x109   :  { %v350_v10 = vpack.c.bf16 %v294_v9, %v293_v8 }
 0x10b   :  { %351 = vst [vmem:[%s550_s5] sm:$0xff] %v350_v10  }

// kernel: _lambda_.28
= control target key start
LH: loop header
LB: loop body
LE: loop exit
PB: predicated region body
PF: predicated region fallthrough
CT: control target
= control target key end

     0   :  { %s495_s0 = inlined_call_operand.vmem [shape: bf16[384,128], index: 0, kind: input, shape index: {}]   ;;  %s496_s1 = inlined_call_operand.vmem [shape: f32[2,128], index: 1, kind: input, shape index: {}]   ;;  %s497_s2 = inlined_call_operand.vmem [shape: bf16[2,288], index: 2, kind: input, shape index: {}]   ;;  %s498_s3 = inlined_call_operand.<no memory space> [shape: bf16[], index: 3, kind: input, shape index: {}]   ;;  %s499_s4 = inlined_call_operand.vmem [shape: bf16[16,128], index: 4, kind: output, shape index: {}]  }
   0x1   :  { %v9_v0 = vstv %s498_s3 }
   0x2   :  { %v10_v1 = vunpack.i.l.bf16 %v9_v0 }
   0x3   :  { %v114_v2 = vld [vmem:[%s495_s0 + $0x40] sm:$0xff]  ;;  %v26_v5 = vlaneseq  ;;  %v352_v7 = vmov 0.0   ;;  %v115_v8 = vld [vmem:[%s495_s0 + $0x48] sm:$0xff]  ;;  %v116_v13 = vld [vmem:[%s495_s0 + $0x50] sm:$0xff]  ;;  %vm353_vm0 = vmmov 0  }
   0x4   :  { %v106_v3 = vld [vmem:[%s495_s0] sm:$0xff]  ;;  %v288_v6 = vpack.c.bf16 %v10_v1, %v10_v1  ;;  %295 = vmatprep.subr.bf16.mxu0 %v114_v2  ;;  %326 = vmatprep.subr.bf16.mxu1 %v352_v7  ;;  %v107_v10 = vld [vmem:[%s495_s0 + $0x8] sm:$0xff]  ;;  %v108_v15 = vld [vmem:[%s495_s0 + $0x10] sm:$0xff] }
   0x5   :  { %v122_v4 = vld [vmem:[%s495_s0 + $0x80] sm:$0xff]  ;;  %296 = vmatpush3.bf16.msra.mxu0 %v106_v3  ;;  %v395_v9 = vand.u32 127, %v26_v5  ;;  %v123_v11 = vld [vmem:[%s495_s0 + $0x88] sm:$0xff]  ;;  %v404_v12 = vshrl.u32 %v26_v5, 7  ;;  %342 = vmatprep.mubr.msk.bf16.mxu1 %vm353_vm0, %v352_v7  ;;  %v124_v16 = vld [vmem:[%s495_s0 + $0x90] sm:$0xff] }
   0x6   :  { %327 = vmatpush3.bf16.msra.mxu1 %v122_v4  ;;  %289 = vst [vmem:[#allocation8 + $0x10] sm:$0xff] %v288_v6   ;;  %297 = vmatprep.subr.bf16.mxu0 %v115_v8  ;;  %v117_v17 = vld [vmem:[%s495_s0 + $0x58] sm:$0xff]  ;;  %v23_v18 = vld [vmem:[%s497_s2] sm:$0x1]  ;;  %v271_v19 = vld [vmem:[%s497_s2 + $0x1] sm:$0x1] }
   0x7   :  { %328 = vmatprep.subr.bf16.mxu1 %v352_v7  ;;  %v74_v14 = vadd.s32 256, %v395_v9  ;;  %vm29_vm1 = vcmp.lt.s32.totalorder %v404_v12, 2  ;;  %v272_v20 = vld [vmem:[%s497_s2 + $0x2] sm:$0x1]  ;;  %v24_v21 = vunpack.c.l.bf16 %v23_v18  ;;  %v44_v22 = vunpack.c.l.bf16 %v271_v19  ;;  %v109_v24 = vld [vmem:[%s495_s0 + $0x18] sm:$0xff]  ;;  %v119_v36 = vld [vmem:[%s495_s0 + $0x68] sm:$0xff] }
   0x8   :  { %v65_v23 = vunpack.c.l.bf16 %v272_v20  ;;  %v125_v25 = vld [vmem:[%s495_s0 + $0x98] sm:$0xff]  ;;  %v118_v29 = vld [vmem:[%s495_s0 + $0x60] sm:$0xff]  ;;  %v111_v37 = vld [vmem:[%s495_s0 + $0x28] sm:$0xff]  ;;  %v240_v48 = vsub.s32 0, %v404_v12  ;;  %v246_v52 = vsub.s32 1, %v404_v12  ;;  %vm252_vm3 = vcmp.lt.s32.totalorder %v395_v9, 64 }
   0x9   :  { %298 = vmatpush3.bf16.msra.mxu0 %v107_v10  ;;  %vm75_vm2 = vcmp.lt.s32.totalorder %v74_v14, 288  ;;  %v30_v26 = vsel %vm29_vm1, %v24_v21, %v10_v1  ;;  %v50_v27 = vsel %vm29_vm1, %v44_v22, %v10_v1  ;;  %v110_v34 = vld [vmem:[%s495_s0 + $0x20] sm:$0xff]  ;;  %v127_v38 = vld [vmem:[%s495_s0 + $0xa8] sm:$0xff]  ;;  %v120_v39 = vld [vmem:[%s495_s0 + $0x70] sm:$0xff] }
   0xa   :  { %329 = vmatpush3.bf16.msra.mxu1 %v123_v11  ;;  %299 = vmatprep.subr.bf16.mxu0 %v116_v13  ;;  %v71_v28 = vsel %vm29_vm1, %v65_v23, %v10_v1  ;;  %v36_v30 = vpack.c.bf16 %v352_v7, %v30_v26  ;;  %v57_v31 = vpack.c.bf16 %v352_v7, %v50_v27  ;;  %v126_v35 = vld [vmem:[%s495_s0 + $0xa0] sm:$0xff]  ;;  %v112_v41 = vld [vmem:[%s495_s0 + $0x30] sm:$0xff]  ;;  %v121_v43 = vld [vmem:[%s495_s0 + $0x78] sm:$0xff] }
   0xb   :  { %330 = vmatprep.subr.bf16.mxu1 %v352_v7  ;;  %v76_v32 = vsel %vm75_vm2, %v71_v28, %v10_v1  ;;  %v128_v42 = vld [vmem:[%s495_s0 + $0xb0] sm:$0xff]  ;;  %v113_v44 = vld [vmem:[%s495_s0 + $0x38] sm:$0xff]  ;;  %v235_v49 = vld [vmem:[%s496_s1] sm:$0x3] }
   0xc   :  { %v283_v33 = vpack.c.bf16 %v10_v1, %v76_v32  ;;  %38 = vst [vmem:[#allocation8] sm:$0xf] %v36_v30  ;;  %59 = vst [vmem:[#allocation8 + $0x4] sm:$0xf] %v57_v31  ;;  %v129_v45 = vld [vmem:[%s495_s0 + $0xb8] sm:$0xff]  ;;  %v241_v56 = vrot.slane %v235_v49, %v240_v48  ;;  %v247_v62 = vrot.slane %v235_v49, %v246_v52 }
   0xd   :  { %300 = vmatpush3.bf16.msra.mxu0 %v108_v15 }
   0xe   :  { %331 = vmatpush3.bf16.msra.mxu1 %v124_v16  ;;  %301 = vmatprep.subr.bf16.mxu0 %v117_v17  ;;  %284 = vst [vmem:[#allocation8 + $0x8] sm:$0xff] %v283_v33  }
   0xf   :  { %332 = vmatprep.subr.bf16.mxu1 %v352_v7 }
  0x11   :  { %302 = vmatpush3.bf16.msra.mxu0 %v109_v24 }
  0x12   :  { %333 = vmatpush3.bf16.msra.mxu1 %v125_v25  ;;  %303 = vmatprep.subr.bf16.mxu0 %v118_v29 }
  0x13   :  { %334 = vmatprep.subr.bf16.mxu1 %v352_v7  ;;  %v350_v40 = vld [vmem:[#allocation8 + $0x4] ss:$12 sps:$4 sm:$0xff]  }
  0x14   :  { %178 = vmatprep.mubr.bf16.mxu0 %v350_v40 }
  0x15   :  { %304 = vmatpush3.bf16.msra.mxu0 %v110_v34  ;;  %v348_v46 = vld [vmem:[#allocation8] ss:$12 sps:$4 sm:$0xff]   ;;  %v351_v47 = vld [vmem:[#allocation8 + $0x8] ss:$12 sps:$4 sm:$0xff]  }
  0x16   :  { %335 = vmatpush3.bf16.msra.mxu1 %v126_v35  ;;  %305 = vmatprep.subr.bf16.mxu0 %v119_v36 }
  0x17   :  { %336 = vmatprep.subr.bf16.mxu1 %v352_v7 }
  0x19   :  { %306 = vmatpush3.bf16.msra.mxu0 %v111_v37 }
  0x1a   :  { %337 = vmatpush3.bf16.msra.mxu1 %v127_v38  ;;  %307 = vmatprep.subr.bf16.mxu0 %v120_v39 }
  0x1b   :  { %338 = vmatprep.subr.bf16.mxu1 %v352_v7 }
  0x1d   :  { %308 = vmatpush3.bf16.msra.mxu0 %v112_v41 }
  0x1e   :  { %339 = vmatpush3.bf16.msra.mxu1 %v128_v42  ;;  %309 = vmatprep.subr.bf16.mxu0 %v121_v43 }
  0x1f   :  { %340 = vmatprep.subr.bf16.mxu1 %v352_v7 }
  0x21   :  { %310 = vmatpush3.bf16.msra.mxu0 %v113_v44 }
  0x22   :  { %341 = vmatpush3.bf16.msra.mxu1 %v129_v45 }
  0x24   :  { %179 = vmatmul.mubr.bf16.vlgmr.msra.gmra.mrb[0].mxu0 %v348_v46 }
  0x25   :  { %343 = vmatmul.mubr.bf16.vlgmr.msra.gmra.mrb[0].mxu1 %v351_v47 }
  0xf7   :  { %v311_v50 = vpop.f32.mrb[0].mxu0 }
  0xf8   :  { %v221_v51 = vpop.f32.mrb[0].mxu1  ;;  %v312_v53 = vpop.f32.mrb[1].mxu0 }
  0xf9   :  { %v344_v54 = vpop.f32.mrb[1].mxu1  ;;  %v313_v55 = vadd.f32 %v312_v53, %v311_v50  ;;  %v314_v57 = vpop.f32.mrb[2].mxu0 }
  0xfa   :  { %v224_v58 = vpop.f32.mrb[2].mxu1  ;;  %v315_v59 = vpop.f32.mrb[3].mxu0 }
  0xfb   :  { %v345_v60 = vpop.f32.mrb[3].mxu1  ;;  %v222_v61 = vadd.f32 %v313_v55, %v221_v51  ;;  %v316_v63 = vadd.f32 %v315_v59, %v314_v57 }
  0xfd   :  { %v242_v0 = vmul.f32 %v241_v56, %v222_v61  ;;  %v225_v1 = vadd.f32 %v316_v63, %v224_v58 }
  0xff   :  { %v248_v2 = vadd.f32 %v247_v62, %v242_v0  ;;  %v243_v3 = vmul.f32 %v241_v56, %v225_v1 }
 0x101   :  { %v253_v4 = vmax.f32 %v248_v2, 0.0  ;;  %v249_v5 = vadd.f32 %v247_v62, %v243_v3 }
 0x103   :  { %v254_v6 = vmax.f32 %v249_v5, 0.0  ;;  %v255_v7 = vsel %vm252_vm3, %v253_v4, %v248_v2 }
 0x105   :  { %v256_v8 = vsel %vm252_vm3, %v254_v6, %v249_v5 }
 0x106   :  { %v293_v10 = vpack.c.bf16 %v256_v8, %v255_v7 }
 0x108   :  { %294 = vst [vmem:[%s499_s4] sm:$0xff] %v293_v10  }

// kernel: _lambda_.26
= control target key start
LH: loop header
LB: loop body
LE: loop exit
PB: predicated region body
PF: predicated region fallthrough
CT: control target
= control target key end

     0   :  { %s790_s0 = inlined_call_operand.vmem [shape: bf16[640,128], index: 0, kind: input, shape index: {}]   ;;  %s791_s1 = inlined_call_operand.vmem [shape: f32[2,128], index: 1, kind: input, shape index: {}]   ;;  %s792_s2 = inlined_call_operand.vmem [shape: bf16[2,576], index: 2, kind: input, shape index: {}]   ;;  %s793_s3 = inlined_call_operand.<no memory space> [shape: bf16[], index: 3, kind: input, shape index: {}]   ;;  %s794_s4 = inlined_call_operand.vmem [shape: bf16[2,64], index: 4, kind: input, shape index: {}]   ;;  %s795_s5 = inlined_call_operand.vmem [shape: bf16[16,128], index: 5, kind: output, shape index: {}]  }
   0x1   :  { %v10_v0 = vstv %s793_s3 }
   0x2   :  { %v597_v1 = vunpack.i.l.bf16 %v10_v0 }
   0x3   :  { %v197_v2 = vld [vmem:[%s790_s0 + $0x40] sm:$0xff]  ;;  %v34_v5 = vlaneseq  ;;  %v198_v8 = vld [vmem:[%s790_s0 + $0x48] sm:$0xff]  ;;  %v199_v12 = vld [vmem:[%s790_s0 + $0x50] sm:$0xff]  ;;  %v562_v36 = vmov 0.0   ;;  %vm563_vm2 = vmmov 0  }
   0x4   :  { %v213_v3 = vld [vmem:[%s790_s0 + $0xc0] sm:$0xff]  ;;  %v459_v6 = vpack.c.bf16 %v597_v1, %v597_v1  ;;  %480 = vmatprep.subr.bf16.mxu0 %v197_v2  ;;  %v214_v9 = vld [vmem:[%s790_s0 + $0xc8] sm:$0xff]  ;;  %v215_v13 = vld [vmem:[%s790_s0 + $0xd0] sm:$0xff] }
   0x5   :  { %v189_v4 = vld [vmem:[%s790_s0] sm:$0xff]  ;;  %502 = vmatprep.subr.bf16.mxu1 %v213_v3  ;;  %v190_v10 = vld [vmem:[%s790_s0 + $0x8] sm:$0xff]  ;;  %v631_v14 = vand.u32 127, %v34_v5  ;;  %v633_v15 = vshrl.u32 %v34_v5, 7  ;;  %v191_v16 = vld [vmem:[%s790_s0 + $0x10] sm:$0xff] }
   0x6   :  { %v205_v7 = vld [vmem:[%s790_s0 + $0x80] sm:$0xff]  ;;  %481 = vmatpush3.bf16.msra.mxu0 %v189_v4  ;;  %460 = vst [vmem:[#allocation13 + $0x18] sm:$0xff] %v459_v6   ;;  %465 = vst [vmem:[#allocation13 + $0x20] sm:$0xff] %v459_v6   ;;  %v206_v11 = vld [vmem:[%s790_s0 + $0x88] sm:$0xff] }
   0x7   :  { %503 = vmatpush3.bf16.msra.mxu1 %v205_v7  ;;  %482 = vmatprep.subr.bf16.mxu0 %v198_v8  ;;  %v207_v17 = vld [vmem:[%s790_s0 + $0x90] sm:$0xff]  ;;  %v200_v18 = vld [vmem:[%s790_s0 + $0x58] sm:$0xff]  ;;  %v124_v20 = vadd.s32 512, %v631_v14  ;;  %v201_v23 = vld [vmem:[%s790_s0 + $0x60] sm:$0xff]  ;;  %vm37_vm0 = vcmp.lt.s32.totalorder %v633_v15, 2  ;;  %vm432_vm3 = vcmp.lt.s32.totalorder %v631_v14, 64 }
   0x8   :  { %504 = vmatprep.subr.bf16.mxu1 %v214_v9  ;;  %v216_v19 = vld [vmem:[%s790_s0 + $0xd8] sm:$0xff]  ;;  %v31_v24 = vld [vmem:[%s792_s2] sm:$0x1]  ;;  %v438_v26 = vld [vmem:[%s792_s2 + $0x1] sm:$0x1] }
   0x9   :  { %v192_v21 = vld [vmem:[%s790_s0 + $0x18] sm:$0xff]  ;;  %v32_v25 = vunpack.c.l.bf16 %v31_v24  ;;  %v441_v27 = vld [vmem:[%s792_s2 + $0x4] sm:$0x1]  ;;  %v439_v28 = vld [vmem:[%s792_s2 + $0x2] sm:$0x1]  ;;  %v52_v30 = vunpack.c.l.bf16 %v438_v26  ;;  %vm125_vm1 = vcmp.lt.s32.totalorder %v124_v20, 576 }
   0xa   :  { %483 = vmatpush3.bf16.msra.mxu0 %v190_v10  ;;  %v208_v22 = vld [vmem:[%s790_s0 + $0x98] sm:$0xff]  ;;  %v217_v29 = vld [vmem:[%s790_s0 + $0xe0] sm:$0xff]  ;;  %v115_v31 = vunpack.c.l.bf16 %v441_v27  ;;  %v73_v32 = vunpack.c.l.bf16 %v439_v28  ;;  %v202_v45 = vld [vmem:[%s790_s0 + $0x68] sm:$0xff] }
   0xb   :  { %505 = vmatpush3.bf16.msra.mxu1 %v206_v11  ;;  %484 = vmatprep.subr.bf16.mxu0 %v199_v12  ;;  %v440_v33 = vld [vmem:[%s792_s2 + $0x3] sm:$0x1]  ;;  %v38_v34 = vsel %vm37_vm0, %v32_v25, %v597_v1  ;;  %v58_v38 = vsel %vm37_vm0, %v52_v30, %v597_v1  ;;  %v218_v46 = vld [vmem:[%s790_s0 + $0xe8] sm:$0xff]  ;;  %v203_v53 = vld [vmem:[%s790_s0 + $0x70] sm:$0xff] }
   0xc   :  { %506 = vmatprep.subr.bf16.mxu1 %v215_v13  ;;  %v94_v35 = vunpack.c.l.bf16 %v440_v33  ;;  %v44_v37 = vpack.c.bf16 %v562_v36, %v38_v34  ;;  %v121_v39 = vsel %vm37_vm0, %v115_v31, %v597_v1  ;;  %v193_v40 = vld [vmem:[%s790_s0 + $0x20] sm:$0xff]  ;;  %v65_v42 = vpack.c.bf16 %v562_v36, %v58_v38  ;;  %v194_v51 = vld [vmem:[%s790_s0 + $0x28] sm:$0xff]  ;;  %v219_v54 = vld [vmem:[%s790_s0 + $0xf0] sm:$0xff] }
   0xd   :  { %v209_v41 = vld [vmem:[%s790_s0 + $0xa0] sm:$0xff]  ;;  %v126_v43 = vsel %vm125_vm1, %v121_v39, %v597_v1  ;;  %v79_v44 = vsel %vm37_vm0, %v73_v32, %v597_v1  ;;  %v210_v52 = vld [vmem:[%s790_s0 + $0xa8] sm:$0xff]  ;;  %v195_v55 = vld [vmem:[%s790_s0 + $0x30] sm:$0xff] }
   0xe   :  { %485 = vmatpush3.bf16.msra.mxu0 %v191_v16  ;;  %46 = vst [vmem:[#allocation13] sm:$0xf] %v44_v37  ;;  %v454_v47 = vpack.c.bf16 %v597_v1, %v126_v43  ;;  %v86_v48 = vpack.c.bf16 %v562_v36, %v79_v44  ;;  %v100_v49 = vsel %vm37_vm0, %v94_v35, %v597_v1  ;;  %67 = vst [vmem:[#allocation13 + $0x4] sm:$0xf] %v65_v42  ;;  %v211_v56 = vld [vmem:[%s790_s0 + $0xb0] sm:$0xff]  ;;  %v204_v57 = vld [vmem:[%s790_s0 + $0x78] sm:$0xff] }
   0xf   :  { %507 = vmatpush3.bf16.msra.mxu1 %v207_v17  ;;  %486 = vmatprep.subr.bf16.mxu0 %v200_v18  ;;  %v107_v50 = vpack.c.bf16 %v562_v36, %v100_v49  ;;  %v220_v58 = vld [vmem:[%s790_s0 + $0xf8] sm:$0xff]  ;;  %v221_v2 = vld [vmem:[%s790_s0 + $0x100] sm:$0xff]  ;;  %v222_v3 = vld [vmem:[%s790_s0 + $0x108] sm:$0xff]  ;;  %v390_v35 = vsub.s32 0, %v633_v15  ;;  %v396_v37 = vsub.s32 1, %v633_v15 }
  0x10   :  { %508 = vmatprep.subr.bf16.mxu1 %v216_v19  ;;  %455 = vst [vmem:[#allocation13 + $0x10] sm:$0xff] %v454_v47   ;;  %88 = vst [vmem:[#allocation13 + $0x8] sm:$0xf] %v86_v48  ;;  %v196_v61 = vld [vmem:[%s790_s0 + $0x38] sm:$0xff]  ;;  %v223_v4 = vld [vmem:[%s790_s0 + $0x110] sm:$0xff] }
  0x11   :  { %109 = vst [vmem:[#allocation13 + $0xc] sm:$0xf] %v107_v50  ;;  %v212_v62 = vld [vmem:[%s790_s0 + $0xb8] sm:$0xff]  ;;  %v225_v6 = vld [vmem:[%s790_s0 + $0x120] sm:$0xff]  ;;  %v226_v7 = vld [vmem:[%s790_s0 + $0x128] sm:$0xff] }
  0x12   :  { %487 = vmatpush3.bf16.msra.mxu0 %v192_v21  ;;  %v224_v5 = vld [vmem:[%s790_s0 + $0x118] sm:$0xff]  ;;  %v227_v8 = vld [vmem:[%s790_s0 + $0x130] sm:$0xff]  ;;  %v424_v33 = vld [vmem:[%s794_s4] sm:$0x1] }
  0x13   :  { %509 = vmatpush3.bf16.msra.mxu1 %v208_v22  ;;  %488 = vmatprep.subr.bf16.mxu0 %v201_v23  ;;  %v228_v9 = vld [vmem:[%s790_s0 + $0x138] sm:$0xff]  ;;  %v385_v34 = vld [vmem:[%s791_s1] sm:$0x3] }
  0x14   :  { %510 = vmatprep.subr.bf16.mxu1 %v217_v29  ;;  %v391_v38 = vrot.slane %v385_v34, %v390_v35 }
  0x15   :  { %v557_v59 = vld [vmem:[#allocation13 + $0x4] ss:$20 sps:$4 sm:$0xff]  }
  0x16   :  { %489 = vmatpush3.bf16.msra.mxu0 %v193_v40  ;;  %287 = vmatprep.mubr.bf16.mxu0 %v557_v59  ;;  %v397_v40 = vrot.slane %v385_v34, %v396_v37 }
  0x17   :  { %511 = vmatpush3.bf16.msra.mxu1 %v209_v41  ;;  %490 = vmatprep.subr.bf16.mxu0 %v202_v45  ;;  %v555_v63 = vld [vmem:[#allocation13] ss:$20 sps:$4 sm:$0xff]   ;;  %v558_v0 = vld [vmem:[#allocation13 + $0x8] ss:$20 sps:$4 sm:$0xff]   ;;  %v561_v10 = vld [vmem:[#allocation13 + $0x10] ss:$20 sps:$4 sm:$0xff]  }
  0x18   :  { %512 = vmatprep.subr.bf16.mxu1 %v218_v46  ;;  %v560_v60 = vld [vmem:[#allocation13 + $0xc] ss:$20 sps:$4 sm:$0xff]  }
  0x19   :  { %328 = vmatprep.mubr.bf16.mxu1 %v560_v60 }
  0x1a   :  { %491 = vmatpush3.bf16.msra.mxu0 %v194_v51 }
  0x1b   :  { %513 = vmatpush3.bf16.msra.mxu1 %v210_v52  ;;  %492 = vmatprep.subr.bf16.mxu0 %v203_v53 }
  0x1c   :  { %514 = vmatprep.subr.bf16.mxu1 %v219_v54 }
  0x1e   :  { %493 = vmatpush3.bf16.msra.mxu0 %v195_v55 }
  0x1f   :  { %515 = vmatpush3.bf16.msra.mxu1 %v211_v56  ;;  %494 = vmatprep.subr.bf16.mxu0 %v204_v57 }
  0x20   :  { %516 = vmatprep.subr.bf16.mxu1 %v220_v58 }
  0x22   :  { %495 = vmatpush3.bf16.msra.mxu0 %v196_v61 }
  0x23   :  { %517 = vmatpush3.bf16.msra.mxu1 %v212_v62  ;;  %533 = vmatprep.subr.bf16.mxu0 %v562_v36 }
  0x25   :  { %288 = vmatmul.mubr.bf16.vlgmr.msra.gmra.mrb[0].mxu0 %v555_v63 }
  0x26   :  { %329 = vmatmul.mubr.bf16.vlgmr.msra.gmra.mrb[0].mxu1 %v558_v0  ;;  %534 = vmatpush3.bf16.msra.mxu0 %v221_v2 }
  0x27   :  { %549 = vmatprep.mubr.msk.bf16.mxu0 %vm563_vm2, %v562_v36  ;;  %535 = vmatprep.subr.bf16.mxu0 %v562_v36 }
  0x2a   :  { %536 = vmatpush3.bf16.msra.mxu0 %v222_v3 }
  0x2b   :  { %537 = vmatprep.subr.bf16.mxu0 %v562_v36 }
  0x2e   :  { %538 = vmatpush3.bf16.msra.mxu0 %v223_v4 }
  0x2f   :  { %539 = vmatprep.subr.bf16.mxu0 %v562_v36 }
  0x32   :  { %540 = vmatpush3.bf16.msra.mxu0 %v224_v5 }
  0x33   :  { %541 = vmatprep.subr.bf16.mxu0 %v562_v36 }
  0x36   :  { %542 = vmatpush3.bf16.msra.mxu0 %v225_v6 }
  0x37   :  { %543 = vmatprep.subr.bf16.mxu0 %v562_v36 }
  0x3a   :  { %544 = vmatpush3.bf16.msra.mxu0 %v226_v7 }
  0x3b   :  { %545 = vmatprep.subr.bf16.mxu0 %v562_v36 }
  0x3e   :  { %546 = vmatpush3.bf16.msra.mxu0 %v227_v8 }
  0x3f   :  { %547 = vmatprep.subr.bf16.mxu0 %v562_v36  ;;  %v425_v36 = vunpack.c.l.bf16 %v424_v33 }
  0x41   :  { %v429_v39 = vsel %vm37_vm0, %v425_v36, %v597_v1 }
  0x42   :  { %548 = vmatpush3.bf16.msra.mxu0 %v228_v9  ;;  %v433_v41 = vsel %vm432_vm3, %v429_v39, %v597_v1 }
  0x43   :  { %v469_v44 = vpack.c.bf16 %v597_v1, %v433_v41 }
  0x45   :  { %550 = vmatmul.mubr.bf16.vlgmr.msra.gmra.mrb[4].mxu0 %v561_v10  ;;  %v473_v47 = vunpack.c.l.bf16 %v469_v44  ;;  %v474_v48 = vunpack.c.h.bf16 %v469_v44 }
  0xf8   :  { %v496_v11 = vpop.f32.mrb[0].mxu0 }
  0xf9   :  { %v518_v12 = vpop.f32.mrb[0].mxu1  ;;  %v497_v13 = vpop.f32.mrb[1].mxu0 }
  0xfa   :  { %v519_v16 = vpop.f32.mrb[1].mxu1  ;;  %v498_v17 = vadd.f32 %v497_v13, %v496_v11  ;;  %v499_v19 = vpop.f32.mrb[2].mxu0 }
  0xfb   :  { %v520_v18 = vadd.f32 %v519_v16, %v518_v12  ;;  %v521_v20 = vpop.f32.mrb[2].mxu1  ;;  %v500_v21 = vpop.f32.mrb[3].mxu0 }
  0xfc   :  { %v522_v22 = vpop.f32.mrb[3].mxu1  ;;  %v501_v23 = vadd.f32 %v500_v21, %v499_v19 }
  0xfd   :  { %v523_v24 = vadd.f32 %v522_v22, %v521_v20  ;;  %v331_v25 = vadd.f32 %v520_v18, %v498_v17 }
  0xff   :  { %v334_v26 = vadd.f32 %v523_v24, %v501_v23 }
 0x118   :  { %v371_v27 = vpop.f32.mrb[4].mxu0 }
 0x119   :  { %v372_v28 = vadd.f32 %v371_v27, %v331_v25  ;;  %v551_v29 = vpop.f32.mrb[5].mxu0 }
 0x11a   :  { %v374_v30 = vpop.f32.mrb[6].mxu0 }
 0x11b   :  { %v375_v31 = vadd.f32 %v374_v30, %v334_v26  ;;  %v552_v32 = vpop.f32.mrb[7].mxu0  ;;  %v392_v42 = vmul.f32 %v391_v38, %v372_v28 }
 0x11d   :  { %v393_v43 = vmul.f32 %v391_v38, %v375_v31  ;;  %v398_v45 = vadd.f32 %v397_v40, %v392_v42 }
 0x11f   :  { %v399_v46 = vadd.f32 %v397_v40, %v393_v43  ;;  %v404_v49 = vmul.f32 0.8, %v398_v45 }
 0x121   :  { %v405_v14 = vmul.f32 0.8, %v399_v46  ;;  %v406_v50 = vadd.f32 %v473_v47, %v404_v49 }
 0x123   :  { %v407_v51 = vadd.f32 %v474_v48, %v405_v14  ;;  %v408_v52 = vmax.f32 %v406_v50, 0.0 }
 0x125   :  { %v409_v53 = vmax.f32 %v407_v51, 0.0 }
 0x127   :  { %v478_v54 = vpack.c.bf16 %v409_v53, %v408_v52 }
 0x129   :  { %479 = vst [vmem:[%s795_s5] sm:$0xff] %v478_v54  }

// kernel: _lambda_.21
= control target key start
LH: loop header
LB: loop body
LE: loop exit
PB: predicated region body
PF: predicated region fallthrough
CT: control target
= control target key end

     0   :  { %v71_v0 = vlaneseq  ;;  %v295_v1 = vmov 0.0|0.0   ;;  %vm296_vm0 = vmmov 0   ;;  %v297_v5 = vmov 0.0   ;;  %s414_s1 = inlined_call_operand.vmem [shape: f32[128,128], index: 1, kind: input, shape index: {}]   ;;  %s415_s0 = inlined_call_operand.vmem [shape: bf16[8,1,128], index: 0, kind: input, shape index: {}]   ;;  %s416_s2 = inlined_call_operand.vmem [shape: f32[1,128], index: 2, kind: input, shape index: {}]   ;;  %s417_s3 = inlined_call_operand.vmem [shape: f32[8,128], index: 3, kind: output, shape index: {0}]   ;;  %s418_s4 = inlined_call_operand.vmem [shape: f32[8,128], index: 4, kind: output, shape index: {1}]  }
   0x1   :  { %264 = vmatprep.subr.bf16.mxu0 %v295_v1  ;;  %v40_v2 = vld [vmem:[%s414_s1] sm:$0xff]  ;;  %v41_v3 = vld [vmem:[%s414_s1 + $0x8] sm:$0xff]  ;;  %v42_v4 = vld [vmem:[%s414_s1 + $0x10] sm:$0xff]  ;;  %261 = vmatprep.mubr.msk.f32.mxu0 %vm296_vm0, %v297_v5  ;;  %vm103_vm1 = vcmask 1041409   ;;  %vm105_vm2 = vcmask 1042434   ;;  %vm107_vm3 = vcmask 1043459  }
   0x2   :  { %v265_v6 = vpack.c.bf16 %v41_v3, %v40_v2  ;;  %v43_v7 = vld [vmem:[%s414_s1 + $0x18] sm:$0xff]  ;;  %v72_v8 = vshrl.u32 %v71_v0, 7  ;;  %v44_v10 = vld [vmem:[%s414_s1 + $0x20] sm:$0xff]  ;;  %v45_v11 = vld [vmem:[%s414_s1 + $0x28] sm:$0xff]  ;;  %vm109_vm4 = vcmask 1044484   ;;  %vm111_vm5 = vcmask 1045509  }
   0x3   :  { %v268_v9 = vpack.c.bf16 %v43_v7, %v42_v4  ;;  %v16_v12 = vld [vmem:[%s415_s0] sm:$0x1]  ;;  %v17_v13 = vld [vmem:[%s415_s0 + $0x1] sm:$0x1]  ;;  %v18_v15 = vld [vmem:[%s415_s0 + $0x2] sm:$0x1]  ;;  %v271_v18 = vpack.c.bf16 %v45_v11, %v44_v10 }
   0x4   :  { %266 = vmatpush3.bf16.msra.mxu0 %v265_v6  ;;  %v73_v14 = vsub.s32 0, %v72_v8  ;;  %v24_v16 = vunpack.c.l.bf16 %v16_v12  ;;  %v25_v17 = vunpack.c.l.bf16 %v17_v13  ;;  %v46_v19 = vld [vmem:[%s414_s1 + $0x30] sm:$0xff]  ;;  %v47_v20 = vld [vmem:[%s414_s1 + $0x38] sm:$0xff]  ;;  %v19_v21 = vld [vmem:[%s415_s0 + $0x3] sm:$0x1]  ;;  %v26_v22 = vunpack.c.l.bf16 %v18_v15 }
   0x5   :  { %267 = vmatprep.subr.bf16.mxu0 %v295_v1  ;;  %v274_v25 = vpack.c.bf16 %v47_v20, %v46_v19  ;;  %v20_v26 = vld [vmem:[%s415_s0 + $0x4] sm:$0x1]  ;;  %v27_v27 = vunpack.c.l.bf16 %v19_v21  ;;  %v49_v29 = vld [vmem:[%s414_s1 + $0x48] sm:$0xff]  ;;  %v21_v32 = vld [vmem:[%s415_s0 + $0x5] sm:$0x1]  ;;  %vm113_vm6 = vcmask 1046534  }
   0x6   :  { %v74_v23 = vrot.slane %v24_v16, %v73_v14  ;;  %v78_v24 = vrot.slane %v25_v17, %v73_v14  ;;  %v48_v28 = vld [vmem:[%s414_s1 + $0x40] sm:$0xff]  ;;  %v82_v30 = vrot.slane %v26_v22, %v73_v14  ;;  %v28_v33 = vunpack.c.l.bf16 %v20_v26  ;;  %v50_v36 = vld [vmem:[%s414_s1 + $0x50] sm:$0xff]  ;;  %v51_v37 = vld [vmem:[%s414_s1 + $0x58] sm:$0xff] }
   0x7   :  { %v277_v34 = vpack.c.bf16 %v49_v29, %v48_v28  ;;  %v86_v35 = vrot.slane %v27_v27, %v73_v14  ;;  %v22_v39 = vld [vmem:[%s415_s0 + $0x6] sm:$0x1]  ;;  %v29_v40 = vunpack.c.l.bf16 %v21_v32  ;;  %v280_v42 = vpack.c.bf16 %v51_v37, %v50_v36  ;;  %v53_v45 = vld [vmem:[%s414_s1 + $0x68] sm:$0xff]  ;;  %v23_v46 = vld [vmem:[%s415_s0 + $0x7] sm:$0x1] }
   0x8   :  { %269 = vmatpush3.bf16.msra.mxu0 %v268_v9  ;;  %v104_v31 = vsel %vm103_vm1, %v78_v24, %v74_v23  ;;  %v90_v41 = vrot.slane %v28_v33, %v73_v14  ;;  %v52_v44 = vld [vmem:[%s414_s1 + $0x60] sm:$0xff]  ;;  %v30_v47 = vunpack.c.l.bf16 %v22_v39  ;;  %v31_v51 = vunpack.c.l.bf16 %v23_v46  ;;  %v54_v52 = vld [vmem:[%s414_s1 + $0x70] sm:$0xff]  ;;  %v55_v53 = vld [vmem:[%s414_s1 + $0x78] sm:$0xff] }
   0x9   :  { %270 = vmatprep.subr.bf16.mxu0 %v295_v1  ;;  %v106_v38 = vsel %vm105_vm2, %v82_v30, %v104_v31  ;;  %v94_v48 = vrot.slane %v29_v40, %v73_v14  ;;  %v283_v50 = vpack.c.bf16 %v53_v45, %v52_v44  ;;  %v286_v56 = vpack.c.bf16 %v55_v53, %v54_v52  ;;  %v211_v61 = vld [vmem:[%s416_s2] ss:$0 sm:$0xff] }
   0xa   :  { %v108_v43 = vsel %vm107_vm3, %v86_v35, %v106_v38  ;;  %v98_v54 = vrot.slane %v30_v47, %v73_v14  ;;  %v102_v57 = vrot.slane %v31_v51, %v73_v14  ;;  %vm115_vm7 = vcmask 1047559  }
   0xb   :  { %v110_v49 = vsel %vm109_vm4, %v90_v41, %v108_v43  ;;  %v190_v60 = vand.u32 127, %v71_v0 }
   0xc   :  { %272 = vmatpush3.bf16.msra.mxu0 %v271_v18  ;;  %v112_v55 = vsel %vm111_vm5, %v94_v48, %v110_v49 }
   0xd   :  { %273 = vmatprep.subr.bf16.mxu0 %v295_v1  ;;  %v114_v58 = vsel %vm113_vm6, %v98_v54, %v112_v55  ;;  %vm191_vm8 = vcmp.lt.s32.totalorder %v190_v60, 10 }
   0xe   :  { %v116_v59 = vsel %vm115_vm7, %v102_v57, %v114_v58 }
  0x10   :  { %275 = vmatpush3.bf16.msra.mxu0 %v274_v25 }
  0x11   :  { %276 = vmatprep.subr.bf16.mxu0 %v295_v1 }
  0x14   :  { %278 = vmatpush3.bf16.msra.mxu0 %v277_v34 }
  0x15   :  { %279 = vmatprep.subr.bf16.mxu0 %v295_v1 }
  0x18   :  { %281 = vmatpush3.bf16.msra.mxu0 %v280_v42 }
  0x19   :  { %282 = vmatprep.subr.bf16.mxu0 %v295_v1 }
  0x1c   :  { %284 = vmatpush3.bf16.msra.mxu0 %v283_v50 }
  0x1d   :  { %285 = vmatprep.subr.bf16.mxu0 %v295_v1 }
  0x20   :  { %287 = vmatpush3.bf16.msra.mxu0 %v286_v56 }
  0x23   :  { %262 = vmatmul.mubr.f32.vlgmr.msra.gmra.mrb[0].mxu0 %v116_v59 }
  0xf6   :  { %v184_v62 = vpop.f32.mrb[0].mxu0 }
  0xf7   :  { %v185_v63 = vadd.f32 %v211_v61, %v184_v62  ;;  %v263_v2 = vpop.f32.mrb[1].mxu0 }
  0xf9   :  { %188 = vst [vmem:[%s417_s3] sm:$0xff] %v185_v63  ;;  %v192_v1 = vsel %vm191_vm8, %v185_v63, -inf }
  0xfa   :  { %193 = vmax.xlane.f32.xlu0 %v192_v1 }
 0x187   :  { %v194_v3 = vpop.xlane.xlu0 %193 }
 0x188   :  { %v195_v4 = vsub.f32 %v192_v1, %v194_v3 }
 0x18a   :  { %v196_v5 = vmul.f32 1.442695, %v195_v4 }
 0x18c   :  { %291 = vpow2.f32 %v196_v5 }
 0x196   :  { %v292_v6 = vpop.eup %291 }
 0x197   :  { %198 = vadd.xlane.f32.xlu0 %v292_v6 }
 0x224   :  { %v199_v0 = vpop.xlane.xlu0 %198 }
 0x225   :  { %293 = vrcp.f32 %v199_v0 }
 0x22f   :  { %v294_v7 = vpop.eup %293 }
 0x230   :  { %v201_v8 = vmul.f32 %v294_v7, %v292_v6 }
 0x232   :  { %202 = vst [vmem:[%s418_s4] sm:$0xff] %v201_v8 }

</bundles_post_ra>
